<compile_context>
chip_gen: v7x
topology: tpu7x:2x2x1
jax: 0.10.0
libtpu: 0.0.40
codegen_flags: <defaults>
</compile_context>

<pallas_src>
import jax
import jax.numpy as jnp
from jax import lax
from jax.experimental import pallas as pl
from jax.experimental.pallas import tpu as pltpu

_EPS = 1e-5


# ------------------------------ fused Pallas kernel ------------------------------

def _make_fused_kernel(H, W, CIN, C, P_PAD):
    """One fused kernel: 1x1 conv -> 3x3 (dil=1) -> 3x3 (dil=2) -> residual add."""
    Wc = W + 4                       # unified canvas width padding (2 each side)
    # tap offsets (flattened canvas lanes), tap order t = ky*3 + kx
    offs_d1 = [dy * Wc + dx for dy in (-1, 0, 1) for dx in (-1, 0, 1)]          # dil=1
    offs_d2 = [2 * dy * Wc + 2 * dx for dy in (-1, 0, 1) for dx in (-1, 0, 1)]  # dil=2

    def conv3x3(canv, w_ref, offs):
        # 9 accumulated weights-stationary matmuls over lane-rolled canvas views.
        # For image positions the rolled reads never wrap (canvas has >=2 pad
        # rows/cols on every side); wrapped garbage lands only in pad lanes that
        # are masked / discarded downstream.
        acc = None
        for t, off in enumerate(offs):
            v = canv if off == 0 else pltpu.roll(canv, (-off) % P_PAD, axis=1)
            part = jnp.dot(w_ref[t], v, preferred_element_type=jnp.float32)
            acc = part if acc is None else acc + part
        return acc

    def kernel(x_ref, mask_ref, w1_ref, b1_ref, w2_ref, s2_ref, h2_ref,
               w3_ref, s3_ref, h3_ref, o_ref):
        mask = mask_ref[...]                              # (1, P_PAD): 1 inside image

        # stage 1: 1x1 conv + bias + ReLU, landed directly on the padded canvas;
        # one full-canvas mask multiply realises conv2's zero padding.
        canv_a = jnp.maximum(
            jnp.dot(w1_ref[...], x_ref[0], preferred_element_type=jnp.float32)
            + b1_ref[...], 0.0) * mask                    # (C, P_PAD)

        # stage 2: 3x3 conv (dil=1) + folded BN + ReLU, masked onto the canvas grid
        t1 = conv3x3(canv_a, w2_ref, offs_d1)
        canv_t = jnp.maximum(t1 * s2_ref[...] + h2_ref[...], 0.0) * mask

        # stage 3: 3x3 conv (dil=2) + folded BN + ReLU + fused residual add
        t2 = conv3x3(canv_t, w3_ref, offs_d2)
        t2 = jnp.maximum(t2 * s3_ref[...] + h3_ref[...], 0.0)

        # single lane-dense store (pad lanes hold don't-care values, stripped later)
        o_ref[0] = canv_a + t2

    return kernel


# ----------------------------------- wrapper -------------------------------------

def refinement_stage_block_forward(x_nchw, params):
    """Fused Pallas forward. Input / output: NCHW float32 (PyTorch convention)."""
    n, cin, h, w = x_nchw.shape
    c = params["w1"].shape[0]
    hc, wc = h + 4, w + 4
    p = hc * wc
    p_pad = ((p + 127) // 128) * 128                      # lane-dense pixel dim

    # Zero-pad 2 rows/cols on each side (covers both dil=1 and dil=2 receptive
    # fields), flatten spatial, pad the lane dim up to a multiple of 128.
    xp = jnp.pad(x_nchw, ((0, 0), (0, 0), (2, 2), (2, 2))).reshape(n, cin, p)
    xp = jnp.pad(xp, ((0, 0), (0, 0), (0, p_pad - p)))

    # valid-pixel mask on the padded canvas (built once, VMEM-resident in kernel)
    mask2d = jnp.zeros((hc, wc), jnp.float32).at[2:2 + h, 2:2 + w].set(1.0)
    mask = jnp.pad(mask2d.reshape(1, p), ((0, 0), (0, p_pad - p)))

    kernel = _make_fused_kernel(h, w, cin, c, p_pad)
    const2 = lambda b: (0, 0)
    const3 = lambda b: (0, 0, 0)

    out = pl.pallas_call(
        kernel,
        out_shape=jax.ShapeDtypeStruct((n, c, p_pad), jnp.float32),
        grid_spec=pltpu.PrefetchScalarGridSpec(
            num_scalar_prefetch=0,
            grid=(n,),
            in_specs=[
                pl.BlockSpec((1, cin, p_pad), lambda b: (b, 0, 0)),  # padded image
                pl.BlockSpec((1, p_pad), const2),                    # pad mask
                pl.BlockSpec((c, cin), const2),                      # w1 (Cout, Cin)
                pl.BlockSpec((c, 1), const2),                        # b1
                pl.BlockSpec((9, c, c), const3),                     # w2 taps (t, O, I)
                pl.BlockSpec((c, 1), const2),                        # scale2 (BN fold)
                pl.BlockSpec((c, 1), const2),                        # shift2
                pl.BlockSpec((9, c, c), const3),                     # w3 taps
                pl.BlockSpec((c, 1), const2),                        # scale3
                pl.BlockSpec((c, 1), const2),                        # shift3
            ],
            out_specs=pl.BlockSpec((1, c, p_pad), lambda b: (b, 0, 0)),
        ),
        compiler_params=pltpu.CompilerParams(
            dimension_semantics=("parallel",),
            vmem_limit_bytes=48 * 1024 * 1024),
    )(xp, mask, params["w1"], params["b1"],
      params["w2"], params["scale2"], params["shift2"],
      params["w3"], params["scale3"], params["shift3"])

    # strip the lane tail + the 2-pixel spatial padding (cheap XLA slice)
    return out[:, :, :p].reshape(n, c, hc, wc)[:, :, 2:2 + h, 2:2 + w]


# --------------------------- deterministic parameters ----------------------------

def init_params(key, in_channels, out_channels):
    ks = jax.random.split(key, 14)

    def nrm(k, shape, s=0.1):
        return s * jax.random.normal(k, shape, jnp.float32)

    # initial: Conv2d(Cin, Cout, 1) + bias (no BN)
    w1_oihw = nrm(ks[0], (out_channels, in_channels, 1, 1))
    b1 = nrm(ks[1], (out_channels,))
    # trunk conv #1: Conv2d(Cout, Cout, 3, pad=1) + bias, BN
    w2_oihw = nrm(ks[2], (out_channels, out_channels, 3, 3))
    b2 = nrm(ks[3], (out_channels,))
    g2 = 1.0 + nrm(ks[4], (out_channels,))
    beta2 = nrm(ks[5], (out_channels,))
    mu2 = nrm(ks[6], (out_channels,))
    var2 = jax.random.uniform(ks[7], (out_channels,), jnp.float32, 0.5, 1.5)
    # trunk conv #2: Conv2d(Cout, Cout, 3, pad=2, dil=2) + bias, BN
    w3_oihw = nrm(ks[8], (out_channels, out_channels, 3, 3))
    b3 = nrm(ks[9], (out_channels,))
    g3 = 1.0 + nrm(ks[10], (out_channels,))
    beta3 = nrm(ks[11], (out_channels,))
    mu3 = nrm(ks[12], (out_channels,))
    var3 = jax.random.uniform(ks[13], (out_channels,), jnp.float32, 0.5, 1.5)

    raw = dict(w1_oihw=w1_oihw, b1=b1,
               w2_oihw=w2_oihw, b2=b2, g2=g2, beta2=beta2, mu2=mu2, var2=var2,
               w3_oihw=w3_oihw, b3=b3, g3=g3, beta3=beta3, mu3=mu3, var3=var3)

    def fold_bn(bias, g, beta, mu, var):
        s = g / jnp.sqrt(var + _EPS)
        return s, (bias - mu) * s + beta

    s2, sh2 = fold_bn(b2, g2, beta2, mu2, var2)
    s3, sh3 = fold_bn(b3, g3, beta3, mu3, var3)

    co = out_channels
    # Weights-stationary, channels-first kernel layout:
    #   w1: (Cout, Cin); w2/w3: (9, Cout, Cin) with taps ordered t = ky*3 + kx.
    kernel_params = dict(
        w1=w1_oihw[:, :, 0, 0],
        b1=b1.reshape(co, 1),
        w2=jnp.transpose(w2_oihw, (2, 3, 0, 1)).reshape(9, co, co),
        scale2=s2.reshape(co, 1),
        shift2=sh2.reshape(co, 1),
        w3=jnp.transpose(w3_oihw, (2, 3, 0, 1)).reshape(9, co, co),
        scale3=s3.reshape(co, 1),
        shift3=sh3.reshape(co, 1),
    )
    return kernel_params, raw


# --------------------------------- JAX reference ----------------------------------

def _conv2d_nchw(x, w_oihw, b, padding, dilation):
    y = lax.conv_general_dilated(
        x, w_oihw, window_strides=(1, 1),
        padding=((padding, padding), (padding, padding)),
        rhs_dilation=(dilation, dilation),
        dimension_numbers=("NCHW", "OIHW", "NCHW"),
        precision=lax.Precision.HIGHEST)
    return y + b[None, :, None, None]


def _bn_infer(x, g, beta, mu, var):
    inv = (g / jnp.sqrt(var + _EPS))[None, :, None, None]
    return (x - mu[None, :, None, None]) * inv + beta[None, :, None, None]


def reference_forward(x, r):
    init = jax.nn.relu(_conv2d_nchw(x, r["w1_oihw"], r["b1"], 0, 1))
    t = jax.nn.relu(_bn_infer(_conv2d_nchw(init, r["w2_oihw"], r["b2"], 1, 1),
                              r["g2"], r["beta2"], r["mu2"], r["var2"]))
    t = jax.nn.relu(_bn_infer(_conv2d_nchw(t, r["w3_oihw"], r["b3"], 2, 2),
                              r["g3"], r["beta3"], r["mu3"], r["var3"]))
    return init + t


# -------------------------------------- main ---------------------------------------

if __name__ == "__main__":
    key = jax.random.PRNGKey(0)
    kx, kp = jax.random.split(key)

    N, CIN, COUT, H, W = 2, 8, 32, 16, 16
    x = jax.random.normal(kx, (N, CIN, H, W), jnp.float32)
    params, raw = init_params(kp, CIN, COUT)

    out = jax.jit(refinement_stage_block_forward)(x, params)
    out = jax.block_until_ready(out)

    ref = reference_forward(x, raw)
    assert out.shape == (N, COUT, H, W), out.shape
    max_err = float(jnp.max(jnp.abs(out - ref)))
    assert max_err < 2e-3, f"max abs err {max_err}"

    print("KERNEL_OK")
</pallas_src>

<mosaic_0001>
module attributes {stable_mosaic.version = 11 : i64} {
  func.func @kernel(%arg0: i32, %arg1: memref<1x8x512xf32, #tpu.memory_space<vmem>>, %arg2: memref<1x512xf32, #tpu.memory_space<vmem>>, %arg3: memref<32x8xf32, #tpu.memory_space<vmem>>, %arg4: memref<32x1xf32, #tpu.memory_space<vmem>>, %arg5: memref<9x32x32xf32, #tpu.memory_space<vmem>>, %arg6: memref<32x1xf32, #tpu.memory_space<vmem>>, %arg7: memref<32x1xf32, #tpu.memory_space<vmem>>, %arg8: memref<9x32x32xf32, #tpu.memory_space<vmem>>, %arg9: memref<32x1xf32, #tpu.memory_space<vmem>>, %arg10: memref<32x1xf32, #tpu.memory_space<vmem>>, %arg11: memref<1x32x512xf32, #tpu.memory_space<vmem>>) attributes {dimension_semantics = [#tpu.dimension_semantics<parallel>], iteration_bounds = array<i64: 2>, scalar_prefetch = 0 : i64, scratch_operands = 0 : i64, tpu.core_type = #tpu.core_type<tc>, window_params = [{transform_indices = @transform_0, window_bounds = array<i64: 1, 8, 512>}, {pipeline_mode = #tpu.pipeline_mode<synchronous>, transform_indices = @transform_1, window_bounds = array<i64: 1, 512>}, {pipeline_mode = #tpu.pipeline_mode<synchronous>, transform_indices = @transform_2, window_bounds = array<i64: 32, 8>}, {pipeline_mode = #tpu.pipeline_mode<synchronous>, transform_indices = @transform_3, window_bounds = array<i64: 32, 1>}, {pipeline_mode = #tpu.pipeline_mode<synchronous>, transform_indices = @transform_4, window_bounds = array<i64: 9, 32, 32>}, {pipeline_mode = #tpu.pipeline_mode<synchronous>, transform_indices = @transform_5, window_bounds = array<i64: 32, 1>}, {pipeline_mode = #tpu.pipeline_mode<synchronous>, transform_indices = @transform_6, window_bounds = array<i64: 32, 1>}, {pipeline_mode = #tpu.pipeline_mode<synchronous>, transform_indices = @transform_7, window_bounds = array<i64: 9, 32, 32>}, {pipeline_mode = #tpu.pipeline_mode<synchronous>, transform_indices = @transform_8, window_bounds = array<i64: 32, 1>}, {pipeline_mode = #tpu.pipeline_mode<synchronous>, transform_indices = @transform_9, window_bounds = array<i64: 32, 1>}, {transform_indices = @transform_10, window_bounds = array<i64: 1, 32, 512>}]} {
    %c0 = arith.constant 0 : index
    %c0_0 = arith.constant 0 : index
    %0 = vector.load %arg2[%c0, %c0_0] : memref<1x512xf32, #tpu.memory_space<vmem>>, vector<1x512xf32>
    %c0_1 = arith.constant 0 : index
    %c0_2 = arith.constant 0 : index
    %1 = vector.load %arg3[%c0_1, %c0_2] : memref<32x8xf32, #tpu.memory_space<vmem>>, vector<32x8xf32>
    %c0_3 = arith.constant 0 : index
    %c0_4 = arith.constant 0 : index
    %c0_5 = arith.constant 0 : index
    %2 = vector.load %arg1[%c0_3, %c0_4, %c0_5] : memref<1x8x512xf32, #tpu.memory_space<vmem>>, vector<1x8x512xf32>
    %3 = vector.shape_cast %2 : vector<1x8x512xf32> to vector<8x512xf32>
    %cst = arith.constant dense<0.000000e+00> : vector<32x512xf32>
    %4 = tpu.matmul %1, %3, %cst {dimension_numbers = #tpu.dot_dimension_numbers<[1], [0], [0], [1], [0, 0, 1, 1], [], []>} : vector<32x8xf32>, vector<8x512xf32>, vector<32x512xf32> -> vector<32x512xf32>
    %c0_6 = arith.constant 0 : index
    %c0_7 = arith.constant 0 : index
    %5 = vector.load %arg4[%c0_6, %c0_7] : memref<32x1xf32, #tpu.memory_space<vmem>>, vector<32x1xf32>
    %6 = vector.broadcast %5 : vector<32x1xf32> to vector<32x512xf32>
    %7 = arith.addf %4, %6 : vector<32x512xf32>
    %cst_8 = arith.constant 0.000000e+00 : f32
    %8 = vector.broadcast %cst_8 : f32 to vector<32x512xf32>
    %9 = arith.maximumf %7, %8 : vector<32x512xf32>
    %10 = vector.broadcast %0 : vector<1x512xf32> to vector<32x512xf32>
    %11 = arith.mulf %9, %10 : vector<32x512xf32>
    %c21_i32 = arith.constant 21 : i32
    %12 = tpu.dynamic_rotate %11 by %c21_i32 dim 1 : vector<32x512xf32>, i32 -> vector<32x512xf32>
    %c0_9 = arith.constant 0 : index
    %c0_10 = arith.constant 0 : index
    %c0_11 = arith.constant 0 : index
    %13 = vector.load %arg5[%c0_9, %c0_10, %c0_11] : memref<9x32x32xf32, #tpu.memory_space<vmem>>, vector<1x32x32xf32>
    %14 = vector.shape_cast %13 : vector<1x32x32xf32> to vector<32x32xf32>
    %cst_12 = arith.constant dense<0.000000e+00> : vector<32x512xf32>
    %15 = tpu.matmul %14, %12, %cst_12 {dimension_numbers = #tpu.dot_dimension_numbers<[1], [0], [0], [1], [0, 0, 1, 1], [], []>} : vector<32x32xf32>, vector<32x512xf32>, vector<32x512xf32> -> vector<32x512xf32>
    %c20_i32 = arith.constant 20 : i32
    %16 = tpu.dynamic_rotate %11 by %c20_i32 dim 1 : vector<32x512xf32>, i32 -> vector<32x512xf32>
    %c1 = arith.constant 1 : index
    %c0_13 = arith.constant 0 : index
    %c0_14 = arith.constant 0 : index
    %17 = vector.load %arg5[%c1, %c0_13, %c0_14] : memref<9x32x32xf32, #tpu.memory_space<vmem>>, vector<1x32x32xf32>
    %18 = vector.shape_cast %17 : vector<1x32x32xf32> to vector<32x32xf32>
    %cst_15 = arith.constant dense<0.000000e+00> : vector<32x512xf32>
    %19 = tpu.matmul %18, %16, %cst_15 {dimension_numbers = #tpu.dot_dimension_numbers<[1], [0], [0], [1], [0, 0, 1, 1], [], []>} : vector<32x32xf32>, vector<32x512xf32>, vector<32x512xf32> -> vector<32x512xf32>
    %20 = arith.addf %15, %19 : vector<32x512xf32>
    %c19_i32 = arith.constant 19 : i32
    %21 = tpu.dynamic_rotate %11 by %c19_i32 dim 1 : vector<32x512xf32>, i32 -> vector<32x512xf32>
    %c2 = arith.constant 2 : index
    %c0_16 = arith.constant 0 : index
    %c0_17 = arith.constant 0 : index
    %22 = vector.load %arg5[%c2, %c0_16, %c0_17] : memref<9x32x32xf32, #tpu.memory_space<vmem>>, vector<1x32x32xf32>
    %23 = vector.shape_cast %22 : vector<1x32x32xf32> to vector<32x32xf32>
    %cst_18 = arith.constant dense<0.000000e+00> : vector<32x512xf32>
    %24 = tpu.matmul %23, %21, %cst_18 {dimension_numbers = #tpu.dot_dimension_numbers<[1], [0], [0], [1], [0, 0, 1, 1], [], []>} : vector<32x32xf32>, vector<32x512xf32>, vector<32x512xf32> -> vector<32x512xf32>
    %25 = arith.addf %20, %24 : vector<32x512xf32>
    %c1_i32 = arith.constant 1 : i32
    %26 = tpu.dynamic_rotate %11 by %c1_i32 dim 1 : vector<32x512xf32>, i32 -> vector<32x512xf32>
    %c3 = arith.constant 3 : index
    %c0_19 = arith.constant 0 : index
    %c0_20 = arith.constant 0 : index
    %27 = vector.load %arg5[%c3, %c0_19, %c0_20] : memref<9x32x32xf32, #tpu.memory_space<vmem>>, vector<1x32x32xf32>
    %28 = vector.shape_cast %27 : vector<1x32x32xf32> to vector<32x32xf32>
    %cst_21 = arith.constant dense<0.000000e+00> : vector<32x512xf32>
    %29 = tpu.matmul %28, %26, %cst_21 {dimension_numbers = #tpu.dot_dimension_numbers<[1], [0], [0], [1], [0, 0, 1, 1], [], []>} : vector<32x32xf32>, vector<32x512xf32>, vector<32x512xf32> -> vector<32x512xf32>
    %30 = arith.addf %25, %29 : vector<32x512xf32>
    %c4 = arith.constant 4 : index
    %c0_22 = arith.constant 0 : index
    %c0_23 = arith.constant 0 : index
    %31 = vector.load %arg5[%c4, %c0_22, %c0_23] : memref<9x32x32xf32, #tpu.memory_space<vmem>>, vector<1x32x32xf32>
    %32 = vector.shape_cast %31 : vector<1x32x32xf32> to vector<32x32xf32>
    %cst_24 = arith.constant dense<0.000000e+00> : vector<32x512xf32>
    %33 = tpu.matmul %32, %11, %cst_24 {dimension_numbers = #tpu.dot_dimension_numbers<[1], [0], [0], [1], [0, 0, 1, 1], [], []>} : vector<32x32xf32>, vector<32x512xf32>, vector<32x512xf32> -> vector<32x512xf32>
    %34 = arith.addf %30, %33 : vector<32x512xf32>
    %c511_i32 = arith.constant 511 : i32
    %35 = tpu.dynamic_rotate %11 by %c511_i32 dim 1 : vector<32x512xf32>, i32 -> vector<32x512xf32>
    %c5 = arith.constant 5 : index
    %c0_25 = arith.constant 0 : index
    %c0_26 = arith.constant 0 : index
    %36 = vector.load %arg5[%c5, %c0_25, %c0_26] : memref<9x32x32xf32, #tpu.memory_space<vmem>>, vector<1x32x32xf32>
    %37 = vector.shape_cast %36 : vector<1x32x32xf32> to vector<32x32xf32>
    %cst_27 = arith.constant dense<0.000000e+00> : vector<32x512xf32>
    %38 = tpu.matmul %37, %35, %cst_27 {dimension_numbers = #tpu.dot_dimension_numbers<[1], [0], [0], [1], [0, 0, 1, 1], [], []>} : vector<32x32xf32>, vector<32x512xf32>, vector<32x512xf32> -> vector<32x512xf32>
    %39 = arith.addf %34, %38 : vector<32x512xf32>
    %c493_i32 = arith.constant 493 : i32
    %40 = tpu.dynamic_rotate %11 by %c493_i32 dim 1 : vector<32x512xf32>, i32 -> vector<32x512xf32>
    %c6 = arith.constant 6 : index
    %c0_28 = arith.constant 0 : index
    %c0_29 = arith.constant 0 : index
    %41 = vector.load %arg5[%c6, %c0_28, %c0_29] : memref<9x32x32xf32, #tpu.memory_space<vmem>>, vector<1x32x32xf32>
    %42 = vector.shape_cast %41 : vector<1x32x32xf32> to vector<32x32xf32>
    %cst_30 = arith.constant dense<0.000000e+00> : vector<32x512xf32>
    %43 = tpu.matmul %42, %40, %cst_30 {dimension_numbers = #tpu.dot_dimension_numbers<[1], [0], [0], [1], [0, 0, 1, 1], [], []>} : vector<32x32xf32>, vector<32x512xf32>, vector<32x512xf32> -> vector<32x512xf32>
    %44 = arith.addf %39, %43 : vector<32x512xf32>
    %c492_i32 = arith.constant 492 : i32
    %45 = tpu.dynamic_rotate %11 by %c492_i32 dim 1 : vector<32x512xf32>, i32 -> vector<32x512xf32>
    %c7 = arith.constant 7 : index
    %c0_31 = arith.constant 0 : index
    %c0_32 = arith.constant 0 : index
    %46 = vector.load %arg5[%c7, %c0_31, %c0_32] : memref<9x32x32xf32, #tpu.memory_space<vmem>>, vector<1x32x32xf32>
    %47 = vector.shape_cast %46 : vector<1x32x32xf32> to vector<32x32xf32>
    %cst_33 = arith.constant dense<0.000000e+00> : vector<32x512xf32>
    %48 = tpu.matmul %47, %45, %cst_33 {dimension_numbers = #tpu.dot_dimension_numbers<[1], [0], [0], [1], [0, 0, 1, 1], [], []>} : vector<32x32xf32>, vector<32x512xf32>, vector<32x512xf32> -> vector<32x512xf32>
    %49 = arith.addf %44, %48 : vector<32x512xf32>
    %c491_i32 = arith.constant 491 : i32
    %50 = tpu.dynamic_rotate %11 by %c491_i32 dim 1 : vector<32x512xf32>, i32 -> vector<32x512xf32>
    %c8 = arith.constant 8 : index
    %c0_34 = arith.constant 0 : index
    %c0_35 = arith.constant 0 : index
    %51 = vector.load %arg5[%c8, %c0_34, %c0_35] : memref<9x32x32xf32, #tpu.memory_space<vmem>>, vector<1x32x32xf32>
    %52 = vector.shape_cast %51 : vector<1x32x32xf32> to vector<32x32xf32>
    %cst_36 = arith.constant dense<0.000000e+00> : vector<32x512xf32>
    %53 = tpu.matmul %52, %50, %cst_36 {dimension_numbers = #tpu.dot_dimension_numbers<[1], [0], [0], [1], [0, 0, 1, 1], [], []>} : vector<32x32xf32>, vector<32x512xf32>, vector<32x512xf32> -> vector<32x512xf32>
    %54 = arith.addf %49, %53 : vector<32x512xf32>
    %c0_37 = arith.constant 0 : index
    %c0_38 = arith.constant 0 : index
    %55 = vector.load %arg6[%c0_37, %c0_38] : memref<32x1xf32, #tpu.memory_space<vmem>>, vector<32x1xf32>
    %56 = vector.broadcast %55 : vector<32x1xf32> to vector<32x512xf32>
    %57 = arith.mulf %54, %56 : vector<32x512xf32>
    %c0_39 = arith.constant 0 : index
    %c0_40 = arith.constant 0 : index
    %58 = vector.load %arg7[%c0_39, %c0_40] : memref<32x1xf32, #tpu.memory_space<vmem>>, vector<32x1xf32>
    %59 = vector.broadcast %58 : vector<32x1xf32> to vector<32x512xf32>
    %60 = arith.addf %57, %59 : vector<32x512xf32>
    %cst_41 = arith.constant 0.000000e+00 : f32
    %61 = vector.broadcast %cst_41 : f32 to vector<32x512xf32>
    %62 = arith.maximumf %60, %61 : vector<32x512xf32>
    %63 = vector.broadcast %0 : vector<1x512xf32> to vector<32x512xf32>
    %64 = arith.mulf %62, %63 : vector<32x512xf32>
    %c42_i32 = arith.constant 42 : i32
    %65 = tpu.dynamic_rotate %64 by %c42_i32 dim 1 : vector<32x512xf32>, i32 -> vector<32x512xf32>
    %c0_42 = arith.constant 0 : index
    %c0_43 = arith.constant 0 : index
    %c0_44 = arith.constant 0 : index
    %66 = vector.load %arg8[%c0_42, %c0_43, %c0_44] : memref<9x32x32xf32, #tpu.memory_space<vmem>>, vector<1x32x32xf32>
    %67 = vector.shape_cast %66 : vector<1x32x32xf32> to vector<32x32xf32>
    %cst_45 = arith.constant dense<0.000000e+00> : vector<32x512xf32>
    %68 = tpu.matmul %67, %65, %cst_45 {dimension_numbers = #tpu.dot_dimension_numbers<[1], [0], [0], [1], [0, 0, 1, 1], [], []>} : vector<32x32xf32>, vector<32x512xf32>, vector<32x512xf32> -> vector<32x512xf32>
    %c40_i32 = arith.constant 40 : i32
    %69 = tpu.dynamic_rotate %64 by %c40_i32 dim 1 : vector<32x512xf32>, i32 -> vector<32x512xf32>
    %c1_46 = arith.constant 1 : index
    %c0_47 = arith.constant 0 : index
    %c0_48 = arith.constant 0 : index
    %70 = vector.load %arg8[%c1_46, %c0_47, %c0_48] : memref<9x32x32xf32, #tpu.memory_space<vmem>>, vector<1x32x32xf32>
    %71 = vector.shape_cast %70 : vector<1x32x32xf32> to vector<32x32xf32>
    %cst_49 = arith.constant dense<0.000000e+00> : vector<32x512xf32>
    %72 = tpu.matmul %71, %69, %cst_49 {dimension_numbers = #tpu.dot_dimension_numbers<[1], [0], [0], [1], [0, 0, 1, 1], [], []>} : vector<32x32xf32>, vector<32x512xf32>, vector<32x512xf32> -> vector<32x512xf32>
    %73 = arith.addf %68, %72 : vector<32x512xf32>
    %c38_i32 = arith.constant 38 : i32
    %74 = tpu.dynamic_rotate %64 by %c38_i32 dim 1 : vector<32x512xf32>, i32 -> vector<32x512xf32>
    %c2_50 = arith.constant 2 : index
    %c0_51 = arith.constant 0 : index
    %c0_52 = arith.constant 0 : index
    %75 = vector.load %arg8[%c2_50, %c0_51, %c0_52] : memref<9x32x32xf32, #tpu.memory_space<vmem>>, vector<1x32x32xf32>
    %76 = vector.shape_cast %75 : vector<1x32x32xf32> to vector<32x32xf32>
    %cst_53 = arith.constant dense<0.000000e+00> : vector<32x512xf32>
    %77 = tpu.matmul %76, %74, %cst_53 {dimension_numbers = #tpu.dot_dimension_numbers<[1], [0], [0], [1], [0, 0, 1, 1], [], []>} : vector<32x32xf32>, vector<32x512xf32>, vector<32x512xf32> -> vector<32x512xf32>
    %78 = arith.addf %73, %77 : vector<32x512xf32>
    %c2_i32 = arith.constant 2 : i32
    %79 = tpu.dynamic_rotate %64 by %c2_i32 dim 1 : vector<32x512xf32>, i32 -> vector<32x512xf32>
    %c3_54 = arith.constant 3 : index
    %c0_55 = arith.constant 0 : index
    %c0_56 = arith.constant 0 : index
    %80 = vector.load %arg8[%c3_54, %c0_55, %c0_56] : memref<9x32x32xf32, #tpu.memory_space<vmem>>, vector<1x32x32xf32>
    %81 = vector.shape_cast %80 : vector<1x32x32xf32> to vector<32x32xf32>
    %cst_57 = arith.constant dense<0.000000e+00> : vector<32x512xf32>
    %82 = tpu.matmul %81, %79, %cst_57 {dimension_numbers = #tpu.dot_dimension_numbers<[1], [0], [0], [1], [0, 0, 1, 1], [], []>} : vector<32x32xf32>, vector<32x512xf32>, vector<32x512xf32> -> vector<32x512xf32>
    %83 = arith.addf %78, %82 : vector<32x512xf32>
    %c4_58 = arith.constant 4 : index
    %c0_59 = arith.constant 0 : index
    %c0_60 = arith.constant 0 : index
    %84 = vector.load %arg8[%c4_58, %c0_59, %c0_60] : memref<9x32x32xf32, #tpu.memory_space<vmem>>, vector<1x32x32xf32>
    %85 = vector.shape_cast %84 : vector<1x32x32xf32> to vector<32x32xf32>
    %cst_61 = arith.constant dense<0.000000e+00> : vector<32x512xf32>
    %86 = tpu.matmul %85, %64, %cst_61 {dimension_numbers = #tpu.dot_dimension_numbers<[1], [0], [0], [1], [0, 0, 1, 1], [], []>} : vector<32x32xf32>, vector<32x512xf32>, vector<32x512xf32> -> vector<32x512xf32>
    %87 = arith.addf %83, %86 : vector<32x512xf32>
    %c510_i32 = arith.constant 510 : i32
    %88 = tpu.dynamic_rotate %64 by %c510_i32 dim 1 : vector<32x512xf32>, i32 -> vector<32x512xf32>
    %c5_62 = arith.constant 5 : index
    %c0_63 = arith.constant 0 : index
    %c0_64 = arith.constant 0 : index
    %89 = vector.load %arg8[%c5_62, %c0_63, %c0_64] : memref<9x32x32xf32, #tpu.memory_space<vmem>>, vector<1x32x32xf32>
    %90 = vector.shape_cast %89 : vector<1x32x32xf32> to vector<32x32xf32>
    %cst_65 = arith.constant dense<0.000000e+00> : vector<32x512xf32>
    %91 = tpu.matmul %90, %88, %cst_65 {dimension_numbers = #tpu.dot_dimension_numbers<[1], [0], [0], [1], [0, 0, 1, 1], [], []>} : vector<32x32xf32>, vector<32x512xf32>, vector<32x512xf32> -> vector<32x512xf32>
    %92 = arith.addf %87, %91 : vector<32x512xf32>
    %c474_i32 = arith.constant 474 : i32
    %93 = tpu.dynamic_rotate %64 by %c474_i32 dim 1 : vector<32x512xf32>, i32 -> vector<32x512xf32>
    %c6_66 = arith.constant 6 : index
    %c0_67 = arith.constant 0 : index
    %c0_68 = arith.constant 0 : index
    %94 = vector.load %arg8[%c6_66, %c0_67, %c0_68] : memref<9x32x32xf32, #tpu.memory_space<vmem>>, vector<1x32x32xf32>
    %95 = vector.shape_cast %94 : vector<1x32x32xf32> to vector<32x32xf32>
    %cst_69 = arith.constant dense<0.000000e+00> : vector<32x512xf32>
    %96 = tpu.matmul %95, %93, %cst_69 {dimension_numbers = #tpu.dot_dimension_numbers<[1], [0], [0], [1], [0, 0, 1, 1], [], []>} : vector<32x32xf32>, vector<32x512xf32>, vector<32x512xf32> -> vector<32x512xf32>
    %97 = arith.addf %92, %96 : vector<32x512xf32>
    %c472_i32 = arith.constant 472 : i32
    %98 = tpu.dynamic_rotate %64 by %c472_i32 dim 1 : vector<32x512xf32>, i32 -> vector<32x512xf32>
    %c7_70 = arith.constant 7 : index
    %c0_71 = arith.constant 0 : index
    %c0_72 = arith.constant 0 : index
    %99 = vector.load %arg8[%c7_70, %c0_71, %c0_72] : memref<9x32x32xf32, #tpu.memory_space<vmem>>, vector<1x32x32xf32>
    %100 = vector.shape_cast %99 : vector<1x32x32xf32> to vector<32x32xf32>
    %cst_73 = arith.constant dense<0.000000e+00> : vector<32x512xf32>
    %101 = tpu.matmul %100, %98, %cst_73 {dimension_numbers = #tpu.dot_dimension_numbers<[1], [0], [0], [1], [0, 0, 1, 1], [], []>} : vector<32x32xf32>, vector<32x512xf32>, vector<32x512xf32> -> vector<32x512xf32>
    %102 = arith.addf %97, %101 : vector<32x512xf32>
    %c470_i32 = arith.constant 470 : i32
    %103 = tpu.dynamic_rotate %64 by %c470_i32 dim 1 : vector<32x512xf32>, i32 -> vector<32x512xf32>
    %c8_74 = arith.constant 8 : index
    %c0_75 = arith.constant 0 : index
    %c0_76 = arith.constant 0 : index
    %104 = vector.load %arg8[%c8_74, %c0_75, %c0_76] : memref<9x32x32xf32, #tpu.memory_space<vmem>>, vector<1x32x32xf32>
    %105 = vector.shape_cast %104 : vector<1x32x32xf32> to vector<32x32xf32>
    %cst_77 = arith.constant dense<0.000000e+00> : vector<32x512xf32>
    %106 = tpu.matmul %105, %103, %cst_77 {dimension_numbers = #tpu.dot_dimension_numbers<[1], [0], [0], [1], [0, 0, 1, 1], [], []>} : vector<32x32xf32>, vector<32x512xf32>, vector<32x512xf32> -> vector<32x512xf32>
    %107 = arith.addf %102, %106 : vector<32x512xf32>
    %c0_78 = arith.constant 0 : index
    %c0_79 = arith.constant 0 : index
    %108 = vector.load %arg9[%c0_78, %c0_79] : memref<32x1xf32, #tpu.memory_space<vmem>>, vector<32x1xf32>
    %109 = vector.broadcast %108 : vector<32x1xf32> to vector<32x512xf32>
    %110 = arith.mulf %107, %109 : vector<32x512xf32>
    %c0_80 = arith.constant 0 : index
    %c0_81 = arith.constant 0 : index
    %111 = vector.load %arg10[%c0_80, %c0_81] : memref<32x1xf32, #tpu.memory_space<vmem>>, vector<32x1xf32>
    %112 = vector.broadcast %111 : vector<32x1xf32> to vector<32x512xf32>
    %113 = arith.addf %110, %112 : vector<32x512xf32>
    %cst_82 = arith.constant 0.000000e+00 : f32
    %114 = vector.broadcast %cst_82 : f32 to vector<32x512xf32>
    %115 = arith.maximumf %113, %114 : vector<32x512xf32>
    %116 = arith.addf %11, %115 : vector<32x512xf32>
    %c0_83 = arith.constant 0 : index
    %c0_84 = arith.constant 0 : index
    %c0_85 = arith.constant 0 : index
    %117 = vector.load %arg11[%c0_83, %c0_84, %c0_85] : memref<1x32x512xf32, #tpu.memory_space<vmem>>, vector<1x32x512xf32>
    %118 = vector.shape_cast %117 : vector<1x32x512xf32> to vector<32x512xf32>
    %119 = vector.shape_cast %116 : vector<32x512xf32> to vector<1x32x512xf32>
    tpu.vector_store %arg11[%c0_83, %c0_84, %c0_85], %119 {strides = array<i32>} : memref<1x32x512xf32, #tpu.memory_space<vmem>>, vector<1x32x512xf32>,
    return
  }
  func.func @transform_0(%arg0: i32) -> (i32, i32, i32) {
    %c0_i32 = arith.constant 0 : i32
    %c0_i32_0 = arith.constant 0 : i32
    %c0_i32_1 = arith.constant 0 : i32
    return %arg0, %c0_i32, %c0_i32_0 : i32, i32, i32
  }
  func.func @transform_1(%arg0: i32) -> (i32, i32) {
    %c0_i32 = arith.constant 0 : i32
    %c0_i32_0 = arith.constant 0 : i32
    %c0_i32_1 = arith.constant 0 : i32
    return %c0_i32, %c0_i32_0 : i32, i32
  }
  func.func @transform_2(%arg0: i32) -> (i32, i32) {
    %c0_i32 = arith.constant 0 : i32
    %c0_i32_0 = arith.constant 0 : i32
    %c0_i32_1 = arith.constant 0 : i32
    return %c0_i32, %c0_i32_0 : i32, i32
  }
  func.func @transform_3(%arg0: i32) -> (i32, i32) {
    %c0_i32 = arith.constant 0 : i32
    %c0_i32_0 = arith.constant 0 : i32
    %c0_i32_1 = arith.constant 0 : i32
    return %c0_i32, %c0_i32_0 : i32, i32
  }
  func.func @transform_4(%arg0: i32) -> (i32, i32, i32) {
    %c0_i32 = arith.constant 0 : i32
    %c0_i32_0 = arith.constant 0 : i32
    %c0_i32_1 = arith.constant 0 : i32
    %c0_i32_2 = arith.constant 0 : i32
    return %c0_i32, %c0_i32_0, %c0_i32_1 : i32, i32, i32
  }
  func.func @transform_5(%arg0: i32) -> (i32, i32) {
    %c0_i32 = arith.constant 0 : i32
    %c0_i32_0 = arith.constant 0 : i32
    %c0_i32_1 = arith.constant 0 : i32
    return %c0_i32, %c0_i32_0 : i32, i32
  }
  func.func @transform_6(%arg0: i32) -> (i32, i32) {
    %c0_i32 = arith.constant 0 : i32
    %c0_i32_0 = arith.constant 0 : i32
    %c0_i32_1 = arith.constant 0 : i32
    return %c0_i32, %c0_i32_0 : i32, i32
  }
  func.func @transform_7(%arg0: i32) -> (i32, i32, i32) {
    %c0_i32 = arith.constant 0 : i32
    %c0_i32_0 = arith.constant 0 : i32
    %c0_i32_1 = arith.constant 0 : i32
    %c0_i32_2 = arith.constant 0 : i32
    return %c0_i32, %c0_i32_0, %c0_i32_1 : i32, i32, i32
  }
  func.func @transform_8(%arg0: i32) -> (i32, i32) {
    %c0_i32 = arith.constant 0 : i32
    %c0_i32_0 = arith.constant 0 : i32
    %c0_i32_1 = arith.constant 0 : i32
    return %c0_i32, %c0_i32_0 : i32, i32
  }
  func.func @transform_9(%arg0: i32) -> (i32, i32) {
    %c0_i32 = arith.constant 0 : i32
    %c0_i32_0 = arith.constant 0 : i32
    %c0_i32_1 = arith.constant 0 : i32
    return %c0_i32, %c0_i32_0 : i32, i32
  }
  func.func @transform_10(%arg0: i32) -> (i32, i32, i32) {
    %c0_i32 = arith.constant 0 : i32
    %c0_i32_0 = arith.constant 0 : i32
    %c0_i32_1 = arith.constant 0 : i32
    return %arg0, %c0_i32, %c0_i32_0 : i32, i32, i32
  }
}

</mosaic_0001>

<bundles_post_ra>
// kernel: refinement_stage_block_forward.1
= control target key start
LH: loop header
LB: loop body
LE: loop exit
PB: predicated region body
PF: predicated region fallthrough
CT: control target
= control target key end

     0   :  { %s6973_s13 = smov 0   ;;  %s8657_s0 = inlined_call_operand.vmem [shape: f32[2,8,512], index: 0, kind: input, shape index: {}]   ;;  %s8658_s1 = inlined_call_operand.vmem [shape: f32[1,512], index: 1, kind: input, shape index: {}]   ;;  %s8659_s2 = inlined_call_operand.vmem [shape: f32[32,8], index: 2, kind: input, shape index: {}]   ;;  %s8660_s3 = inlined_call_operand.vmem [shape: f32[32,1], index: 3, kind: input, shape index: {}]   ;;  %s8661_s4 = inlined_call_operand.vmem [shape: f32[9,32,32], index: 4, kind: input, shape index: {}]   ;;  %s8662_s5 = inlined_call_operand.vmem [shape: f32[32,1], index: 5, kind: input, shape index: {}]   ;;  %s8663_s6 = inlined_call_operand.vmem [shape: f32[32,1], index: 6, kind: input, shape index: {}]   ;;  %s8664_s7 = inlined_call_operand.vmem [shape: f32[9,32,32], index: 7, kind: input, shape index: {}]   ;;  %s8665_s8 = inlined_call_operand.vmem [shape: f32[32,1], index: 8, kind: input, shape index: {}]   ;;  %s8666_s9 = inlined_call_operand.vmem [shape: f32[32,1], index: 9, kind: input, shape index: {}]   ;;  %s8667_s10 = inlined_call_operand.vmem [shape: f32[2,32,512], index: 10, kind: output, shape index: {}]  }
   0x1 LB: > { %s5451_s14 = sadd.s32 4294967295, %s6898_s13   ;;  %p5455_p0 = scmp.ge.s32.totalorder %s6898_s13, 1  ;;  %s6898_s13 = sphi %s6973_s13, %s20_s13  }
   0x2   : > { %p312_p1 = scmp.lt.s32.totalorder %s6898_s13, 3 }
   0x4   : > { %p313_p2 = pnand %p5455_p0, %p312_p1 }
   0x5   : > { %p350_p3 = scmp.lt.s32.totalorder (!%p313_p2), %s5451_s14, 1  ;;  %v6900_v0 = vmov (!%p313_p2), 0.0   ;;  %v369_v1 = vld [vmem:[%s8660_s3] sm:$0xff] (!%p313_p2)  ;;  %v6901_v2 = vmov (!%p313_p2), 0   ;;  %v371_v3 = vld [vmem:[%s8660_s3 + $0x10] sm:$0xff] (!%p313_p2)  ;;  %vm393_vm0 = vcmask (!%p313_p2), 64512   ;;  %v601_v14 = vlaneseq (!%p313_p2) }
   0x6   : > { %316 = sbr.rel (%p313_p2) target bundleno = 1237 (0x4d5), region = 60  ;;  %470 = vmatprep.mubr.f32.mxu0 (!%p313_p2), %v6900_v0  ;;  %559 = vmatprep.mubr.f32.mxu1 (!%p313_p2), %v6900_v0  ;;  %v361_v4 = vld [vmem:[%s8659_s2] sm:$0xff] (!%p313_p2)  ;;  %v370_v9 = vld [vmem:[%s8660_s3 + $0x8] sm:$0xff] (!%p313_p2)  ;;  %v372_v10 = vld [vmem:[%s8660_s3 + $0x18] sm:$0xff] (!%p313_p2)  ;;  %s6903_s20 = smov (!%p313_p2), 21   ;;  %vm746_vm3 = vcmask (!%p313_p2), 261120  }
   0x7   : > { %6250 = vset.pattern.permute.xlu0 (!%p313_p2), %v6901_v2  ;;  %6251 = vset.pattern.permute.xlu1 (!%p313_p2), %v6901_v2  ;;  %v362_v11 = vld [vmem:[%s8659_s2 + $0x8] sm:$0xff] (!%p313_p2)  ;;  %v363_v12 = vld [vmem:[%s8659_s2 + $0x10] sm:$0xff] (!%p313_p2)  ;;  %v364_v13 = vld [vmem:[%s8659_s2 + $0x18] sm:$0xff] (!%p313_p2)  ;;  %v602_v16 = vshrl.u32 (!%p313_p2), %v601_v14, 7  ;;  %s6904_s21 = smov (!%p313_p2), 19   ;;  %s6906_s23 = smov (!%p313_p2), 127  }
   0x8   : > { %375 = vperm.xlu0 (!%p313_p2), %6250, %v369_v1   ;;  %385 = vperm.xlu1 (!%p313_p2), %6251, %v371_v3   ;;  %v360_v23 = vld [vmem:[%s8658_s1] sm:$0xf] (!%p313_p2)  ;;  %s6907_s24 = smov (!%p313_p2), 109   ;;  %s6908_s25 = smov (!%p313_p2), 108  }
   0x9   : > { %v603_v20 = vsub.s32 (!%p313_p2), 0, %v602_v16  ;;  %v607_v25 = vsub.s32 (!%p313_p2), 1, %v602_v16  ;;  %v611_v26 = vsub.s32 (!%p313_p2), 2, %v602_v16  ;;  %v615_v28 = vsub.s32 (!%p313_p2), 3, %v602_v16  ;;  %s6909_s26 = smov (!%p313_p2), 107   ;;  %s6912_s27 = smov (!%p313_p2), 38  }
   0xa   : > { %s6913_s28 = smov (!%p313_p2), 2   ;;  %s6914_s29 = smov (!%p313_p2), 126  }
   0xb   : > { %v7033_v35 = vrot.slane (!%p313_p2), %v360_v23, %v603_v20  ;;  %v7035_v41 = vrot.slane (!%p313_p2), %v360_v23, %v607_v25  ;;  %v7037_v44 = vrot.slane (!%p313_p2), %v360_v23, %v611_v26  ;;  %v7039_v45 = vrot.slane (!%p313_p2), %v360_v23, %v615_v28  ;;  %s6915_s30 = smov (!%p313_p2), 90   ;;  %s6916_s11 = smov (!%p313_p2), 88  }
   0xc   : > { %380 = vperm.xlu0 (!%p313_p2), %6250, %v370_v9   ;;  %390 = vperm.xlu1 (!%p313_p2), %6251, %v372_v10   ;;  %s6917_s12 = smov (!%p313_p2), 86  }
   0xd   : > { %s8669_s14 = smov (!%p350_p3, %s5451_s14), 1 }
   0xe   : > { %s5678_s19 = sshll.u32 %s8669_s14, 5 }
   0xf   : > { %s354_s22 = scalar_lea.vmem %s8657_s0, %s5678_s19  ;;  %s6902_s19 = smov 20  }
  0x10   : > { %v366_v5 = vld [vmem:[%s354_s22 + $0x8] sm:$0xff]  ;;  %v368_v6 = vld [vmem:[%s354_s22 + $0x18] sm:$0xff]  ;;  %v365_v7 = vld [vmem:[%s354_s22] sm:$0xff] }
  0x11   : > { %406 = vmatprep.subr.mxu0 %v366_v5  ;;  %495 = vmatprep.subr.mxu1 %v368_v6  ;;  %v367_v8 = vld [vmem:[%s354_s22 + $0x10] sm:$0xff]  ;;  %s6905_s22 = smov 1  }
  0x12   : > { %407 = vmatpush1.msra.mxu0 %v365_v7  ;;  %496 = vmatpush1.msra.mxu1 %v367_v8 }
  0x13   : > { %5460 = vmatmul.mubr.msk.f32.vlgmr.msra.gmra.mrb[0].mxu0 %vm393_vm0, %v361_v4  ;;  %5464 = vmatmul.mubr.msk.f32.vlgmr.msra.gmra.mrb[0].mxu1 %vm393_vm0, %v361_v4 }
  0x14   : > { %476 = vmatprep.mubr.f32.mxu0 %v6900_v0  ;;  %565 = vmatprep.mubr.f32.mxu1 %v6900_v0 }
  0x17   : > { %5461 = vmatmul.mubr.msk.f32.gmra.mrb[2].mxu0 %vm393_vm0, %v362_v11  ;;  %5465 = vmatmul.mubr.msk.f32.gmra.mrb[2].mxu1 %vm393_vm0, %v362_v11 }
  0x18   : > { %482 = vmatprep.mubr.f32.mxu0 %v6900_v0  ;;  %571 = vmatprep.mubr.f32.mxu1 %v6900_v0 }
  0x1b   : > { %5462 = vmatmul.mubr.msk.f32.gmra.mrb[4].mxu0 %vm393_vm0, %v363_v12  ;;  %5466 = vmatmul.mubr.msk.f32.gmra.mrb[4].mxu1 %vm393_vm0, %v363_v12 }
  0x1c   : > { %488 = vmatprep.mubr.f32.mxu0 %v6900_v0  ;;  %577 = vmatprep.mubr.f32.mxu1 %v6900_v0 }
  0x1f   : > { %5463 = vmatmul.mubr.msk.f32.gmra.mrb[6].mxu0 %vm393_vm0, %v364_v13  ;;  %5467 = vmatmul.mubr.msk.f32.gmra.mrb[6].mxu1 %vm393_vm0, %v364_v13 }
  0x20   : > { %823 = vmatprep.mubr.f32.mxu0 %v6900_v0  ;;  %912 = vmatprep.mubr.f32.mxu1 %v6900_v0 }
  0x87   : > { %v376_v15 = vpop.permute.xlu0 %375  ;;  %v386_v29 = vpop.permute.xlu1 %385 }
  0x8b   : > { %v381_v27 = vpop.permute.xlu0 %380  ;;  %v391_v63 = vpop.permute.xlu1 %390 }
  0xe6   : > { %v472_v17 = vpop.f32.mrb[0].mxu0  ;;  %v561_v18 = vpop.f32.mrb[0].mxu1 }
  0xe7   : > { %v473_v19 = vadd.f32 %v472_v17, %v376_v15  ;;  %v474_v21 = vpop.f32.mrb[1].mxu0  ;;  %v563_v22 = vpop.f32.mrb[1].mxu1  ;;  %v562_v30 = vadd.f32 %v561_v18, %v376_v15 }
  0xe8   : > { %v475_v24 = vadd.f32 %v474_v21, %v376_v15  ;;  %v564_v31 = vadd.f32 %v563_v22, %v376_v15 }
  0xe9   : > { %v584_v34 = vmax.f32 %v473_v19, 0.0  ;;  %v586_v48 = vmax.f32 %v562_v30, 0.0 }
  0xea   : > { %v478_v32 = vpop.f32.mrb[2].mxu0  ;;  %v567_v33 = vpop.f32.mrb[2].mxu1  ;;  %v585_v40 = vmax.f32 %v475_v24, 0.0  ;;  %v587_v49 = vmax.f32 %v564_v31, 0.0 }
  0xeb   : > { %v479_v36 = vadd.f32 %v478_v32, %v381_v27  ;;  %v568_v37 = vadd.f32 %v567_v33, %v381_v27  ;;  %v480_v38 = vpop.f32.mrb[3].mxu0  ;;  %v569_v39 = vpop.f32.mrb[3].mxu1  ;;  %v7042_v54 = vmul.f32 %v7033_v35, %v584_v34  ;;  %v7061_v2 = vmul.f32 %v7037_v44, %v586_v48 }
  0xec   : > { %v481_v42 = vadd.f32 %v480_v38, %v381_v27  ;;  %v570_v43 = vadd.f32 %v569_v39, %v381_v27  ;;  %v7048_v59 = vmul.f32 %v7035_v41, %v585_v40  ;;  %v7064_v3 = vmul.f32 %v7039_v45, %v587_v49 }
  0xed   : > { %v588_v46 = vmax.f32 %v479_v36, 0.0  ;;  %v590_v47 = vmax.f32 %v568_v37, 0.0  ;;  %v7186_v40 = vand.u32 127, %v601_v14 }
  0xee   : > { %v589_v50 = vmax.f32 %v481_v42, 0.0  ;;  %v591_v51 = vmax.f32 %v570_v43, 0.0  ;;  %v484_v52 = vpop.f32.mrb[4].mxu0  ;;  %v573_v53 = vpop.f32.mrb[4].mxu1 }
  0xef   : > { %v7045_v55 = vmul.f32 %v7033_v35, %v588_v46  ;;  %v485_v56 = vadd.f32 %v484_v52, %v386_v29  ;;  %v486_v57 = vpop.f32.mrb[5].mxu0  ;;  %v575_v58 = vpop.f32.mrb[5].mxu1  ;;  %v7054_v62 = vmul.f32 %v7037_v44, %v590_v47  ;;  %v574_v9 = vadd.f32 %v573_v53, %v386_v29 }
  0xf0   : > { %v7051_v60 = vmul.f32 %v7035_v41, %v589_v50  ;;  %v487_v61 = vadd.f32 %v486_v57, %v386_v29  ;;  %v7067_v4 = vmul.f32 %v7039_v45, %v591_v51  ;;  %v576_v16 = vadd.f32 %v575_v58, %v386_v29 }
  0xf1   : > { %v7058_v1 = vpack.i.bf16 %v7045_v55, %v7042_v54  ;;  %v592_v8 = vmax.f32 %v485_v56, 0.0  ;;  %v7079_v21 = vpack.i.bf16 %v7054_v62, %v7061_v2  ;;  %v594_v26 = vmax.f32 %v574_v9, 0.0 }
  0xf2   : > { %v490_v5 = vpop.f32.mrb[6].mxu0  ;;  %v579_v6 = vpop.f32.mrb[6].mxu1  ;;  %v7071_v7 = vpack.i.bf16 %v7051_v60, %v7048_v59  ;;  %v593_v15 = vmax.f32 %v487_v61, 0.0  ;;  %v7083_v24 = vpack.i.bf16 %v7067_v4, %v7064_v3  ;;  %v595_v29 = vmax.f32 %v576_v16, 0.0 }
  0xf3   : > { %v491_v10 = vadd.f32 %v490_v5, %v391_v63  ;;  %v580_v11 = vadd.f32 %v579_v6, %v391_v63  ;;  %v492_v12 = vpop.f32.mrb[7].mxu0  ;;  %v581_v13 = vpop.f32.mrb[7].mxu1  ;;  %6253 = vrot.lane.b32.xlu0 %v7058_v1, %s6902_s19  ;;  %v7086_v25 = vmul.f32 %v7033_v35, %v592_v8  ;;  %v7116_v36 = vmul.f32 %v7037_v44, %v594_v26 }
  0xf4   : > { %v493_v17 = vadd.f32 %v492_v12, %v391_v63  ;;  %v582_v18 = vadd.f32 %v581_v13, %v391_v63  ;;  %6263 = vrot.lane.b32.xlu1 %v7071_v7, %s6902_s19  ;;  %v7094_v28 = vmul.f32 %v7035_v41, %v593_v15  ;;  %v7121_v37 = vmul.f32 %v7039_v45, %v595_v29 }
  0xf5   : > { %v596_v19 = vmax.f32 %v491_v10, 0.0  ;;  %v598_v20 = vmax.f32 %v580_v11, 0.0  ;;  %vm724_vm1 = vcmp.lt.s32.totalorder %v7186_v40, 20  ;;  %vm671_vm2 = vcmp.lt.s32.totalorder %v7186_v40, 21 }
  0xf6   : > { %v597_v22 = vmax.f32 %v493_v17, 0.0  ;;  %v599_v23 = vmax.f32 %v582_v18, 0.0  ;;  %vm1159_vm4 = vcmp.lt.s32.totalorder %v7186_v40, 19  ;;  %vm1419_vm5 = vcmp.lt.s32.totalorder %v7186_v40, 1 }
  0xf7   : > { %v7089_v27 = vmul.f32 %v7033_v35, %v596_v19  ;;  %6258 = vrot.lane.b32.xlu0 %v7079_v21, %s6902_s19  ;;  %v7102_v31 = vmul.f32 %v7037_v44, %v598_v20  ;;  %v2898_v19 = vld [vmem:[%s8662_s5] sm:$0xff]  ;;  %vm1890_vm6 = vcmp.lt.s32.totalorder %v7186_v40, 127  ;;  %vm2150_vm7 = vcmp.lt.s32.totalorder %v7186_v40, 109 }
  0xf8   : > { %v7097_v30 = vmul.f32 %v7035_v41, %v597_v22  ;;  %6268 = vrot.lane.b32.xlu1 %v7083_v24, %s6902_s19  ;;  %v7109_v33 = vmul.f32 %v7039_v45, %v599_v23  ;;  %vm2410_vm8 = vcmp.lt.s32.totalorder %v7186_v40, 108  ;;  %vm2670_vm9 = vcmp.lt.s32.totalorder %v7186_v40, 107 }
  0xf9   : > { %v7106_v32 = vpack.i.bf16 %v7089_v27, %v7086_v25  ;;  %v7127_v38 = vpack.i.bf16 %v7102_v31, %v7116_v36  ;;  %vm3095_vm10 = vcmp.lt.s32.totalorder %v7186_v40, 40  ;;  %vm3042_vm11 = vcmp.lt.s32.totalorder %v7186_v40, 42 }
  0xfa   : > { %v7113_v34 = vpack.i.bf16 %v7097_v30, %v7094_v28  ;;  %v7131_v39 = vpack.i.bf16 %v7109_v33, %v7121_v37  ;;  %vm3529_vm12 = vcmp.lt.s32.totalorder %v7186_v40, 38  ;;  %vm3789_vm13 = vcmp.lt.s32.totalorder %v7186_v40, 2 }
  0xfb   : > { %6273 = vrot.lane.b32.xlu0 %v7106_v32, %s6902_s19  ;;  %vm4260_vm14 = vcmp.lt.s32.totalorder %v7186_v40, 126  ;;  %vm4520_vm15 = vcmp.lt.s32.totalorder %v7186_v40, 90  ;;  %vm4780_vm0 = vcmp.lt.s32.totalorder %v7186_v40, 88 }
  0xfc   : > { %6288 = vrot.lane.b32.xlu1 %v7113_v34, %s6902_s19 }
  0xff   : > { %6278 = vrot.lane.b32.xlu0 %v7127_v38, %s6902_s19 }
 0x100   : > { %6293 = vrot.lane.b32.xlu1 %v7131_v39, %s6902_s19 }
 0x103   : > { %6283 = vrot.lane.b32.xlu0 %v7058_v1, %s6903_s20 }
 0x104   : > { %6298 = vrot.lane.b32.xlu1 %v7071_v7, %s6903_s20 }
 0x107   : > { %6303 = vrot.lane.b32.xlu0 %v7079_v21, %s6903_s20 }
 0x108   : > { %6308 = vrot.lane.b32.xlu1 %v7083_v24, %s6903_s20 }
 0x10b   : > { %6313 = vrot.lane.b32.xlu0 %v7106_v32, %s6903_s20 }
 0x10c   : > { %6328 = vrot.lane.b32.xlu1 %v7113_v34, %s6903_s20 }
 0x10f   : > { %6318 = vrot.lane.b32.xlu0 %v7127_v38, %s6903_s20 }
 0x110   : > { %6333 = vrot.lane.b32.xlu1 %v7131_v39, %s6903_s20 }
 0x113   : > { %6323 = vrot.lane.b32.xlu0 %v7058_v1, %s6904_s21 }
 0x114   : > { %6338 = vrot.lane.b32.xlu1 %v7071_v7, %s6904_s21 }
 0x117   : > { %6343 = vrot.lane.b32.xlu0 %v7079_v21, %s6904_s21 }
 0x118   : > { %6348 = vrot.lane.b32.xlu1 %v7083_v24, %s6904_s21 }
 0x11b   : > { %6353 = vrot.lane.b32.xlu0 %v7106_v32, %s6904_s21 }
 0x11c   : > { %6368 = vrot.lane.b32.xlu1 %v7113_v34, %s6904_s21 }
 0x11f   : > { %6358 = vrot.lane.b32.xlu0 %v7127_v38, %s6904_s21 }
 0x120   : > { %6373 = vrot.lane.b32.xlu1 %v7131_v39, %s6904_s21 }
 0x123   : > { %6363 = vrot.lane.b32.xlu0 %v7058_v1, %s6905_s22 }
 0x124   : > { %6378 = vrot.lane.b32.xlu1 %v7071_v7, %s6905_s22 }
 0x127   : > { %6383 = vrot.lane.b32.xlu0 %v7079_v21, %s6905_s22 }
 0x128   : > { %6388 = vrot.lane.b32.xlu1 %v7083_v24, %s6905_s22 }
 0x12b   : > { %6393 = vrot.lane.b32.xlu0 %v7106_v32, %s6905_s22 }
 0x12c   : > { %6403 = vrot.lane.b32.xlu1 %v7113_v34, %s6905_s22 }
 0x12f   : > { %6398 = vrot.lane.b32.xlu0 %v7127_v38, %s6905_s22 }
 0x130   : > { %6408 = vrot.lane.b32.xlu1 %v7131_v39, %s6905_s22 }
 0x133   : > { %6413 = vrot.lane.b32.xlu0 %v7058_v1, %s6906_s23 }
 0x134   : > { %6418 = vrot.lane.b32.xlu1 %v7071_v7, %s6906_s23 }
 0x137   : > { %6423 = vrot.lane.b32.xlu0 %v7079_v21, %s6906_s23 }
 0x138   : > { %6428 = vrot.lane.b32.xlu1 %v7083_v24, %s6906_s23 }
 0x13b   : > { %6433 = vrot.lane.b32.xlu0 %v7106_v32, %s6906_s23 }
 0x13c   : > { %6448 = vrot.lane.b32.xlu1 %v7113_v34, %s6906_s23 }
 0x13f   : > { %6438 = vrot.lane.b32.xlu0 %v7127_v38, %s6906_s23 }
 0x140   : > { %6453 = vrot.lane.b32.xlu1 %v7131_v39, %s6906_s23 }
 0x143   : > { %6443 = vrot.lane.b32.xlu0 %v7058_v1, %s6907_s24 }
 0x144   : > { %6458 = vrot.lane.b32.xlu1 %v7071_v7, %s6907_s24 }
 0x147   : > { %6463 = vrot.lane.b32.xlu0 %v7079_v21, %s6907_s24 }
 0x148   : > { %6468 = vrot.lane.b32.xlu1 %v7083_v24, %s6907_s24 }
 0x14b   : > { %6473 = vrot.lane.b32.xlu0 %v7106_v32, %s6907_s24 }
 0x14c   : > { %6488 = vrot.lane.b32.xlu1 %v7113_v34, %s6907_s24 }
 0x14f   : > { %6478 = vrot.lane.b32.xlu0 %v7127_v38, %s6907_s24 }
 0x150   : > { %6493 = vrot.lane.b32.xlu1 %v7131_v39, %s6907_s24 }
 0x153   : > { %6483 = vrot.lane.b32.xlu0 %v7058_v1, %s6908_s25 }
 0x154   : > { %6498 = vrot.lane.b32.xlu1 %v7071_v7, %s6908_s25 }
 0x157   : > { %6503 = vrot.lane.b32.xlu0 %v7079_v21, %s6908_s25 }
 0x158   : > { %6508 = vrot.lane.b32.xlu1 %v7083_v24, %s6908_s25 }
 0x15b   : > { %6513 = vrot.lane.b32.xlu0 %v7106_v32, %s6908_s25 }
 0x15c   : > { %6528 = vrot.lane.b32.xlu1 %v7113_v34, %s6908_s25 }
 0x15f   : > { %6518 = vrot.lane.b32.xlu0 %v7127_v38, %s6908_s25 }
 0x160   : > { %6533 = vrot.lane.b32.xlu1 %v7131_v39, %s6908_s25  ;;  %s6910_s25 = smov 40  }
 0x163   : > { %6523 = vrot.lane.b32.xlu0 %v7058_v1, %s6909_s26 }
 0x164   : > { %6538 = vrot.lane.b32.xlu1 %v7071_v7, %s6909_s26 }
 0x165   : > { %v6254_v42 = vpop.permute.xlu0 %6253 }
 0x166   : > { %v6256_v43 = vunpack.i.h.bf16 %v6254_v42  ;;  %v6255_v46 = vunpack.i.l.bf16 %v6254_v42  ;;  %v6264_v47 = vpop.permute.xlu1 %6263 }
 0x167   : > { %v6266_v48 = vunpack.i.h.bf16 %v6264_v47  ;;  %v6265_v49 = vunpack.i.l.bf16 %v6264_v47  ;;  %6543 = vrot.lane.b32.xlu0 %v7079_v21, %s6909_s26  ;;  %v2899_v21 = vld [vmem:[%s8662_s5 + $0x8] sm:$0xff] }
 0x168   : > { %6548 = vrot.lane.b32.xlu1 %v7083_v24, %s6909_s26 }
 0x169   : > { %v6259_v14 = vpop.permute.xlu0 %6258  ;;  %v733_v50 = vsel %vm724_vm1, %v6255_v46, %v6265_v49  ;;  %v734_v51 = vsel %vm724_vm1, %v6256_v43, %v6266_v48 }
 0x16a   : > { %v6261_v52 = vunpack.i.h.bf16 %v6259_v14  ;;  %v6260_v53 = vunpack.i.l.bf16 %v6259_v14  ;;  %v6269_v56 = vpop.permute.xlu1 %6268  ;;  %v5680_v57 = vpack.c.bf16 %v734_v51, %v733_v50 }
 0x16b   : > { %v6271_v58 = vunpack.i.h.bf16 %v6269_v56  ;;  %v6270_v61 = vunpack.i.l.bf16 %v6269_v56  ;;  %6553 = vrot.lane.b32.xlu0 %v7106_v32, %s6909_s26 }
 0x16c   : > { %v730_v63 = vsel %vm724_vm1, %v6266_v48, %v6261_v52  ;;  %v729_v1 = vsel %vm724_vm1, %v6265_v49, %v6260_v53  ;;  %6563 = vrot.lane.b32.xlu1 %v7113_v34, %s6909_s26  ;;  %5681 = vmatprep.subr.bf16.mxu0 %v5680_v57  ;;  %v2939_v49 = vld [vmem:[%s8663_s6 + $0x8] sm:$0xff] }
 0x16d   : > { %v737_v5 = vsel %vm724_vm1, %v6270_v61, %v6255_v46  ;;  %v738_v6 = vsel %vm724_vm1, %v6271_v58, %v6256_v43  ;;  %v6274_v7 = vpop.permute.xlu0 %6273  ;;  %v725_v8 = vsel %vm724_vm1, %v6260_v53, %v6270_v61  ;;  %v726_v9 = vsel %vm724_vm1, %v6261_v52, %v6271_v58  ;;  %v2938_v43 = vld [vmem:[%s8663_s6] sm:$0xff] }
 0x16e   : > { %v6276_v10 = vunpack.i.h.bf16 %v6274_v7  ;;  %v6275_v11 = vunpack.i.l.bf16 %v6274_v7  ;;  %v6289_v12 = vpop.permute.xlu1 %6288  ;;  %v5682_v13 = vpack.c.bf16 %v738_v6, %v737_v5  ;;  %v5688_v15 = vpack.c.bf16 %v726_v9, %v725_v8  ;;  %v5468_v5 = vld [vmem:[%s8661_s4 + $0x20] sm:$0xff]  ;;  %v2901_v7 = vld [vmem:[%s8662_s5 + $0x18] sm:$0xff] }
 0x16f   : > { %v6291_v16 = vunpack.i.h.bf16 %v6289_v12  ;;  %v6290_v17 = vunpack.i.l.bf16 %v6289_v12  ;;  %6558 = vrot.lane.b32.xlu0 %v7127_v38, %s6909_s26  ;;  %v5690_v18 = vpack.c.bf16 %v730_v63, %v729_v1  ;;  %v2900_v1 = vld [vmem:[%s8662_s5 + $0x10] sm:$0xff] }
 0x170   : > { %6568 = vrot.lane.b32.xlu1 %v7131_v39, %s6909_s26  ;;  %5683 = vmatpush1.bf16.msra.mxu0 %v5682_v13  ;;  %s6911_s26 = smov 42  }
 0x171   : > { %5689 = vmatprep.subr.bf16.mxu1 %v5688_v15  ;;  %v6279_v20 = vpop.permute.xlu0 %6278  ;;  %v735_v22 = vsel %vm724_vm1, %v6275_v11, %v6290_v17  ;;  %v736_v23 = vsel %vm724_vm1, %v6276_v10, %v6291_v16 }
 0x172   : > { %v6281_v24 = vunpack.i.h.bf16 %v6279_v20  ;;  %v6280_v26 = vunpack.i.l.bf16 %v6279_v20  ;;  %5691 = vmatpush1.bf16.msra.mxu1 %v5690_v18  ;;  %v6294_v29 = vpop.permute.xlu1 %6293  ;;  %v5684_v32 = vpack.c.bf16 %v736_v23, %v735_v22  ;;  %v5469_v20 = vld [vmem:[%s8661_s4 + $0x28] sm:$0xff] }
 0x173   : > { %v6296_v34 = vunpack.i.h.bf16 %v6294_v29  ;;  %v6295_v38 = vunpack.i.l.bf16 %v6294_v29  ;;  %2904 = vperm.xlu0 %6250, %v2898_v19   ;;  %v2940_v19 = vld [vmem:[%s8663_s6 + $0x10] sm:$0xff] }
 0x174   : > { %v732_v39 = vsel %vm724_vm1, %v6291_v16, %v6281_v24  ;;  %v731_v42 = vsel %vm724_vm1, %v6290_v17, %v6280_v26  ;;  %2909 = vperm.xlu1 %6251, %v2899_v21   ;;  %5685 = vmatprep.subr.bf16.mxu0 %v5684_v32 }
 0x175   : > { %v739_v46 = vsel %vm724_vm1, %v6295_v38, %v6275_v11  ;;  %v740_v47 = vsel %vm724_vm1, %v6296_v34, %v6276_v10  ;;  %v6284_v48 = vpop.permute.xlu0 %6283  ;;  %v727_v14 = vsel %vm724_vm1, %v6280_v26, %v6295_v38  ;;  %v728_v50 = vsel %vm724_vm1, %v6281_v24, %v6296_v34  ;;  %v2941_v24 = vld [vmem:[%s8663_s6 + $0x18] sm:$0xff] }
 0x176   : > { %v6286_v51 = vunpack.i.h.bf16 %v6284_v48  ;;  %v6285_v52 = vunpack.i.l.bf16 %v6284_v48  ;;  %v6299_v53 = vpop.permute.xlu1 %6298  ;;  %v5686_v56 = vpack.c.bf16 %v740_v47, %v739_v46  ;;  %v5692_v57 = vpack.c.bf16 %v728_v50, %v727_v14  ;;  %v5470_v48 = vld [vmem:[%s8661_s4 + $0x30] sm:$0xff] }
 0x177   : > { %v6301_v58 = vunpack.i.h.bf16 %v6299_v53  ;;  %v6300_v61 = vunpack.i.l.bf16 %v6299_v53  ;;  %2944 = vperm.xlu0 %6250, %v2938_v43   ;;  %v5694_v63 = vpack.c.bf16 %v732_v39, %v731_v42  ;;  %vm5040_vm1 = vcmp.lt.s32.totalorder %v7186_v40, 86  ;;  %v5654_v40 = vld [vmem:[%s8664_s7 + $0xf0] sm:$0xff] }
 0x178   : > { %2949 = vperm.xlu1 %6251, %v2939_v49   ;;  %5687 = vmatpush1.bf16.msra.mxu0 %v5686_v56 }
 0x179   : > { %5693 = vmatprep.subr.bf16.mxu1 %v5692_v57  ;;  %v6304_v6 = vpop.permute.xlu0 %6303  ;;  %v680_v8 = vsel %vm671_vm2, %v6285_v52, %v6300_v61  ;;  %v681_v9 = vsel %vm671_vm2, %v6286_v51, %v6301_v58 }
 0x17a   : > { %v6306_v10 = vunpack.i.h.bf16 %v6304_v6  ;;  %v6305_v11 = vunpack.i.l.bf16 %v6304_v6  ;;  %5695 = vmatpush1.bf16.msra.mxu1 %v5694_v63  ;;  %v6309_v12 = vpop.permute.xlu1 %6308  ;;  %v5696_v13 = vpack.c.bf16 %v681_v9, %v680_v8 }
 0x17b   : > { %v6311_v15 = vunpack.i.h.bf16 %v6309_v12  ;;  %v6310_v16 = vunpack.i.l.bf16 %v6309_v12  ;;  %2914 = vperm.xlu0 %6250, %v2900_v1   ;;  %5472 = vmatmul.mubr.msk.f32.vlgmr.msra.gmra.mrb[8].mxu0 %vm746_vm3, %v5468_v5  ;;  %v5471_v1 = vld [vmem:[%s8661_s4 + $0x38] sm:$0xff] }
 0x17c   : > { %v677_v17 = vsel %vm671_vm2, %v6301_v58, %v6306_v10  ;;  %v676_v18 = vsel %vm671_vm2, %v6300_v61, %v6305_v11  ;;  %2919 = vperm.xlu1 %6251, %v2901_v7   ;;  %5697 = vmatprep.subr.bf16.mxu0 %v5696_v13 }
 0x17d   : > { %v684_v21 = vsel %vm671_vm2, %v6310_v16, %v6285_v52  ;;  %v685_v22 = vsel %vm671_vm2, %v6311_v15, %v6286_v51  ;;  %5476 = vmatmul.mubr.msk.f32.vlgmr.msra.gmra.mrb[8].mxu1 %vm746_vm3, %v5468_v5  ;;  %v6314_v23 = vpop.permute.xlu0 %6313  ;;  %829 = vmatprep.mubr.f32.mxu0 %v6900_v0  ;;  %v672_v26 = vsel %vm671_vm2, %v6305_v11, %v6310_v16 }
 0x17e   : > { %v6316_v29 = vunpack.i.h.bf16 %v6314_v23  ;;  %v6315_v32 = vunpack.i.l.bf16 %v6314_v23  ;;  %v6329_v34 = vpop.permute.xlu1 %6328  ;;  %918 = vmatprep.mubr.f32.mxu1 %v6900_v0  ;;  %v5698_v38 = vpack.c.bf16 %v685_v22, %v684_v21  ;;  %v673_v39 = vsel %vm671_vm2, %v6306_v10, %v6311_v15 }
 0x17f   : > { %v6331_v42 = vunpack.i.h.bf16 %v6329_v34  ;;  %v6330_v43 = vunpack.i.l.bf16 %v6329_v34  ;;  %2954 = vperm.xlu0 %6250, %v2940_v19   ;;  %5473 = vmatmul.mubr.msk.f32.gmra.mrb[10].mxu0 %vm746_vm3, %v5469_v20  ;;  %v5704_v46 = vpack.c.bf16 %v673_v39, %v672_v26  ;;  %v5706_v47 = vpack.c.bf16 %v677_v17, %v676_v18  ;;  %v688_v19 = vld [vmem:[%s8661_s4] sm:$0xff] }
 0x180   : > { %2959 = vperm.xlu1 %6251, %v2941_v24   ;;  %5699 = vmatpush1.bf16.msra.mxu0 %v5698_v38 }
 0x181   : > { %5477 = vmatmul.mubr.msk.f32.gmra.mrb[10].mxu1 %vm746_vm3, %v5469_v20  ;;  %5705 = vmatprep.subr.bf16.mxu1 %v5704_v46  ;;  %v6319_v49 = vpop.permute.xlu0 %6318  ;;  %v682_v14 = vsel %vm671_vm2, %v6315_v32, %v6330_v43  ;;  %v683_v50 = vsel %vm671_vm2, %v6316_v29, %v6331_v42 }
 0x182   : > { %v6321_v51 = vunpack.i.h.bf16 %v6319_v49  ;;  %v6320_v52 = vunpack.i.l.bf16 %v6319_v49  ;;  %5707 = vmatpush1.bf16.msra.mxu1 %v5706_v47  ;;  %v6334_v53 = vpop.permute.xlu1 %6333  ;;  %835 = vmatprep.mubr.f32.mxu0 %v6900_v0  ;;  %v5700_v56 = vpack.c.bf16 %v683_v50, %v682_v14 }
 0x183   : > { %v6336_v57 = vunpack.i.h.bf16 %v6334_v53  ;;  %v6335_v58 = vunpack.i.l.bf16 %v6334_v53  ;;  %5474 = vmatmul.mubr.msk.f32.gmra.mrb[12].mxu0 %vm746_vm3, %v5470_v48  ;;  %924 = vmatprep.mubr.f32.mxu1 %v6900_v0 }
 0x184   : > { %v679_v61 = vsel %vm671_vm2, %v6331_v42, %v6321_v51  ;;  %v678_v63 = vsel %vm671_vm2, %v6330_v43, %v6320_v52  ;;  %5701 = vmatprep.subr.bf16.mxu0 %v5700_v56  ;;  %841 = vmatprep.mubr.f32.mxu0 %v6900_v0  ;;  %v689_v42 = vld [vmem:[%s8661_s4 + $0x8] sm:$0xff] }
 0x185   : > { %v686_v5 = vsel %vm671_vm2, %v6335_v58, %v6315_v32  ;;  %v687_v6 = vsel %vm671_vm2, %v6336_v57, %v6316_v29  ;;  %5478 = vmatmul.mubr.msk.f32.gmra.mrb[12].mxu1 %vm746_vm3, %v5470_v48  ;;  %v6324_v7 = vpop.permute.xlu0 %6323  ;;  %v674_v8 = vsel %vm671_vm2, %v6320_v52, %v6335_v58  ;;  %v675_v9 = vsel %vm671_vm2, %v6321_v51, %v6336_v57 }
 0x186   : > { %v6326_v10 = vunpack.i.h.bf16 %v6324_v7  ;;  %v6325_v11 = vunpack.i.l.bf16 %v6324_v7  ;;  %v6339_v12 = vpop.permute.xlu1 %6338  ;;  %930 = vmatprep.mubr.f32.mxu1 %v6900_v0  ;;  %v5702_v13 = vpack.c.bf16 %v687_v6, %v686_v5  ;;  %v5708_v15 = vpack.c.bf16 %v675_v9, %v674_v8 }
 0x187   : > { %v6341_v16 = vunpack.i.h.bf16 %v6339_v12  ;;  %v6340_v17 = vunpack.i.l.bf16 %v6339_v12  ;;  %5475 = vmatmul.mubr.msk.f32.gmra.mrb[14].mxu0 %vm746_vm3, %v5471_v1  ;;  %v5710_v18 = vpack.c.bf16 %v679_v61, %v678_v63  ;;  %v690_v61 = vld [vmem:[%s8661_s4 + $0x10] sm:$0xff] }
 0x188   : > { %5703 = vmatpush1.bf16.msra.mxu0 %v5702_v13  ;;  %5709 = vmatprep.subr.bf16.mxu1 %v5708_v15  ;;  %v691_v15 = vld [vmem:[%s8661_s4 + $0x18] sm:$0xff] }
 0x189   : > { %5479 = vmatmul.mubr.msk.f32.gmra.mrb[14].mxu1 %vm746_vm3, %v5471_v1  ;;  %v6344_v20 = vpop.permute.xlu0 %6343  ;;  %1013 = vmatprep.mubr.f32.mxu0 %v6900_v0  ;;  %v1168_v21 = vsel %vm1159_vm4, %v6325_v11, %v6340_v17  ;;  %v1169_v22 = vsel %vm1159_vm4, %v6326_v10, %v6341_v16 }
 0x18a   : > { %v6346_v23 = vunpack.i.h.bf16 %v6344_v20  ;;  %v6345_v24 = vunpack.i.l.bf16 %v6344_v20  ;;  %5711 = vmatpush1.bf16.msra.mxu1 %v5710_v18  ;;  %v6349_v26 = vpop.permute.xlu1 %6348  ;;  %1102 = vmatprep.mubr.f32.mxu1 %v6900_v0  ;;  %v5712_v29 = vpack.c.bf16 %v1169_v22, %v1168_v21 }
 0x18b   : > { %v6351_v32 = vunpack.i.h.bf16 %v6349_v26  ;;  %v6350_v34 = vunpack.i.l.bf16 %v6349_v26  ;;  %5480 = vmatmul.mubr.msk.f32.vlgmr.msra.gmra.mrb[8].mxu0 %vm746_vm3, %v688_v19 }
 0x18c   : > { %v1165_v38 = vsel %vm1159_vm4, %v6341_v16, %v6346_v23  ;;  %v1164_v39 = vsel %vm1159_vm4, %v6340_v17, %v6345_v24  ;;  %5713 = vmatprep.subr.bf16.mxu0 %v5712_v29  ;;  %1019 = vmatprep.mubr.f32.mxu0 %v6900_v0 }
 0x18d   : > { %v1172_v43 = vsel %vm1159_vm4, %v6350_v34, %v6325_v11  ;;  %v1173_v46 = vsel %vm1159_vm4, %v6351_v32, %v6326_v10  ;;  %5484 = vmatmul.mubr.msk.f32.vlgmr.msra.gmra.mrb[8].mxu1 %vm746_vm3, %v688_v19  ;;  %v6354_v47 = vpop.permute.xlu0 %6353  ;;  %v1160_v48 = vsel %vm1159_vm4, %v6345_v24, %v6350_v34  ;;  %v1161_v49 = vsel %vm1159_vm4, %v6346_v23, %v6351_v32 }
 0x18e   : > { %v6356_v14 = vunpack.i.h.bf16 %v6354_v47  ;;  %v6355_v50 = vunpack.i.l.bf16 %v6354_v47  ;;  %v6369_v51 = vpop.permute.xlu1 %6368  ;;  %1108 = vmatprep.mubr.f32.mxu1 %v6900_v0  ;;  %v5714_v52 = vpack.c.bf16 %v1173_v46, %v1172_v43  ;;  %v5720_v53 = vpack.c.bf16 %v1161_v49, %v1160_v48 }
 0x18f   : > { %v6371_v56 = vunpack.i.h.bf16 %v6369_v51  ;;  %v6370_v57 = vunpack.i.l.bf16 %v6369_v51  ;;  %5481 = vmatmul.mubr.msk.f32.gmra.mrb[10].mxu0 %vm746_vm3, %v689_v42  ;;  %v5722_v58 = vpack.c.bf16 %v1165_v38, %v1164_v39  ;;  %v5488_v38 = vld [vmem:[%s8661_s4 + $0x40] sm:$0xff] }
 0x190   : > { %5715 = vmatpush1.bf16.msra.mxu0 %v5714_v52  ;;  %5721 = vmatprep.subr.bf16.mxu1 %v5720_v53  ;;  %v5489_v53 = vld [vmem:[%s8661_s4 + $0x48] sm:$0xff] }
 0x191   : > { %5485 = vmatmul.mubr.msk.f32.gmra.mrb[10].mxu1 %vm746_vm3, %v689_v42  ;;  %v6359_v63 = vpop.permute.xlu0 %6358  ;;  %1025 = vmatprep.mubr.f32.mxu0 %v6900_v0  ;;  %v1170_v1 = vsel %vm1159_vm4, %v6355_v50, %v6370_v57  ;;  %v1171_v5 = vsel %vm1159_vm4, %v6356_v14, %v6371_v56 }
 0x192   : > { %v6361_v6 = vunpack.i.h.bf16 %v6359_v63  ;;  %v6360_v7 = vunpack.i.l.bf16 %v6359_v63  ;;  %5723 = vmatpush1.bf16.msra.mxu1 %v5722_v58  ;;  %v6374_v8 = vpop.permute.xlu1 %6373  ;;  %1114 = vmatprep.mubr.f32.mxu1 %v6900_v0  ;;  %v5716_v9 = vpack.c.bf16 %v1171_v5, %v1170_v1 }
 0x193   : > { %v6376_v10 = vunpack.i.h.bf16 %v6374_v8  ;;  %v6375_v11 = vunpack.i.l.bf16 %v6374_v8  ;;  %5482 = vmatmul.mubr.msk.f32.gmra.mrb[12].mxu0 %vm746_vm3, %v690_v61 }
 0x194   : > { %v1167_v12 = vsel %vm1159_vm4, %v6371_v56, %v6361_v6  ;;  %v1166_v13 = vsel %vm1159_vm4, %v6370_v57, %v6360_v7  ;;  %5717 = vmatprep.subr.bf16.mxu0 %v5716_v9  ;;  %1031 = vmatprep.mubr.f32.mxu0 %v6900_v0 }
 0x195   : > { %v1174_v16 = vsel %vm1159_vm4, %v6375_v11, %v6355_v50  ;;  %v1175_v17 = vsel %vm1159_vm4, %v6376_v10, %v6356_v14  ;;  %5486 = vmatmul.mubr.msk.f32.gmra.mrb[12].mxu1 %vm746_vm3, %v690_v61  ;;  %v6364_v18 = vpop.permute.xlu0 %6363  ;;  %v1162_v19 = vsel %vm1159_vm4, %v6360_v7, %v6375_v11  ;;  %v1163_v20 = vsel %vm1159_vm4, %v6361_v6, %v6376_v10 }
 0x196   : > { %v6366_v21 = vunpack.i.h.bf16 %v6364_v18  ;;  %v6365_v22 = vunpack.i.l.bf16 %v6364_v18  ;;  %v6379_v23 = vpop.permute.xlu1 %6378  ;;  %1120 = vmatprep.mubr.f32.mxu1 %v6900_v0  ;;  %v5718_v24 = vpack.c.bf16 %v1175_v17, %v1174_v16  ;;  %v5724_v26 = vpack.c.bf16 %v1163_v20, %v1162_v19 }
 0x197   : > { %v6381_v29 = vunpack.i.h.bf16 %v6379_v23  ;;  %v6380_v32 = vunpack.i.l.bf16 %v6379_v23  ;;  %5483 = vmatmul.mubr.msk.f32.gmra.mrb[14].mxu0 %vm746_vm3, %v691_v15  ;;  %v5726_v34 = vpack.c.bf16 %v1167_v12, %v1166_v13  ;;  %v5490_v12 = vld [vmem:[%s8661_s4 + $0x50] sm:$0xff] }
 0x198   : > { %5719 = vmatpush1.bf16.msra.mxu0 %v5718_v24  ;;  %5725 = vmatprep.subr.bf16.mxu1 %v5724_v26  ;;  %v5491_v26 = vld [vmem:[%s8661_s4 + $0x58] sm:$0xff] }
 0x199   : > { %5487 = vmatmul.mubr.msk.f32.gmra.mrb[14].mxu1 %vm746_vm3, %v691_v15  ;;  %v6384_v39 = vpop.permute.xlu0 %6383  ;;  %1257 = vmatprep.mubr.f32.mxu0 %v6900_v0  ;;  %v1428_v42 = vsel %vm1419_vm5, %v6365_v22, %v6380_v32  ;;  %v1429_v43 = vsel %vm1419_vm5, %v6366_v21, %v6381_v29 }
 0x19a   : > { %v6386_v46 = vunpack.i.h.bf16 %v6384_v39  ;;  %v6385_v47 = vunpack.i.l.bf16 %v6384_v39  ;;  %5727 = vmatpush1.bf16.msra.mxu1 %v5726_v34  ;;  %v6389_v48 = vpop.permute.xlu1 %6388  ;;  %1346 = vmatprep.mubr.f32.mxu1 %v6900_v0  ;;  %v5728_v49 = vpack.c.bf16 %v1429_v43, %v1428_v42 }
 0x19b   : > { %v6391_v14 = vunpack.i.h.bf16 %v6389_v48  ;;  %v6390_v50 = vunpack.i.l.bf16 %v6389_v48  ;;  %5492 = vmatmul.mubr.msk.f32.vlgmr.msra.gmra.mrb[8].mxu0 %vm746_vm3, %v5488_v38 }
 0x19c   : > { %v1425_v51 = vsel %vm1419_vm5, %v6381_v29, %v6386_v46  ;;  %v1424_v52 = vsel %vm1419_vm5, %v6380_v32, %v6385_v47  ;;  %5729 = vmatprep.subr.bf16.mxu0 %v5728_v49  ;;  %1263 = vmatprep.mubr.f32.mxu0 %v6900_v0  ;;  %v5500_v49 = vld [vmem:[%s8661_s4 + $0x60] sm:$0xff] }
 0x19d   : > { %v1432_v56 = vsel %vm1419_vm5, %v6390_v50, %v6365_v22  ;;  %v1433_v57 = vsel %vm1419_vm5, %v6391_v14, %v6366_v21  ;;  %5496 = vmatmul.mubr.msk.f32.vlgmr.msra.gmra.mrb[8].mxu1 %vm746_vm3, %v5488_v38  ;;  %v6394_v58 = vpop.permute.xlu0 %6393  ;;  %v1420_v61 = vsel %vm1419_vm5, %v6385_v47, %v6390_v50  ;;  %v1421_v63 = vsel %vm1419_vm5, %v6386_v46, %v6391_v14 }
 0x19e   : > { %v6396_v1 = vunpack.i.h.bf16 %v6394_v58  ;;  %v6395_v5 = vunpack.i.l.bf16 %v6394_v58  ;;  %v6404_v6 = vpop.permute.xlu1 %6403  ;;  %1352 = vmatprep.mubr.f32.mxu1 %v6900_v0  ;;  %v5730_v7 = vpack.c.bf16 %v1433_v57, %v1432_v56  ;;  %v5736_v8 = vpack.c.bf16 %v1421_v63, %v1420_v61 }
 0x19f   : > { %v6406_v9 = vunpack.i.h.bf16 %v6404_v6  ;;  %v6405_v10 = vunpack.i.l.bf16 %v6404_v6  ;;  %5493 = vmatmul.mubr.msk.f32.gmra.mrb[10].mxu0 %vm746_vm3, %v5489_v53  ;;  %v5738_v11 = vpack.c.bf16 %v1425_v51, %v1424_v52  ;;  %v5744_v47 = vpack.c.bf16 %v7051_v60, %v7048_v59 }
 0x1a0   : > { %5731 = vmatpush1.bf16.msra.mxu0 %v5730_v7  ;;  %5737 = vmatprep.subr.bf16.mxu1 %v5736_v8  ;;  %v5752_v50 = vpack.c.bf16 %v7067_v4, %v7064_v3  ;;  %v5746_v51 = vpack.c.bf16 %v7045_v55, %v7042_v54  ;;  %v5748_v52 = vpack.c.bf16 %v7097_v30, %v7094_v28  ;;  %v5501_v8 = vld [vmem:[%s8661_s4 + $0x68] sm:$0xff] }
 0x1a1   : > { %5497 = vmatmul.mubr.msk.f32.gmra.mrb[10].mxu1 %vm746_vm3, %v5489_v53  ;;  %v6399_v13 = vpop.permute.xlu0 %6398  ;;  %1269 = vmatprep.mubr.f32.mxu0 %v6900_v0  ;;  %v1430_v15 = vsel %vm1419_vm5, %v6395_v5, %v6405_v10  ;;  %v1431_v16 = vsel %vm1419_vm5, %v6396_v1, %v6406_v9 }
 0x1a2   : > { %v6401_v17 = vunpack.i.h.bf16 %v6399_v13  ;;  %v6400_v18 = vunpack.i.l.bf16 %v6399_v13  ;;  %5739 = vmatpush1.bf16.msra.mxu1 %v5738_v11  ;;  %v6409_v19 = vpop.permute.xlu1 %6408  ;;  %1358 = vmatprep.mubr.f32.mxu1 %v6900_v0  ;;  %v5732_v20 = vpack.c.bf16 %v1431_v16, %v1430_v15  ;;  %v5750_v15 = vpack.c.bf16 %v7089_v27, %v7086_v25 }
 0x1a3   : > { %v6411_v21 = vunpack.i.h.bf16 %v6409_v19  ;;  %v6410_v22 = vunpack.i.l.bf16 %v6409_v19  ;;  %5494 = vmatmul.mubr.msk.f32.gmra.mrb[12].mxu0 %vm746_vm3, %v5490_v12  ;;  %v5758_v19 = vpack.c.bf16 %v7102_v31, %v7116_v36 }
 0x1a4   : > { %v1427_v23 = vsel %vm1419_vm5, %v6406_v9, %v6401_v17  ;;  %v1426_v24 = vsel %vm1419_vm5, %v6405_v10, %v6400_v18  ;;  %5733 = vmatprep.subr.bf16.mxu0 %v5732_v20  ;;  %1275 = vmatprep.mubr.f32.mxu0 %v6900_v0  ;;  %v5502_v20 = vld [vmem:[%s8661_s4 + $0x70] sm:$0xff] }
 0x1a5   : > { %v1434_v29 = vsel %vm1419_vm5, %v6410_v22, %v6395_v5  ;;  %v1435_v32 = vsel %vm1419_vm5, %v6411_v21, %v6396_v1  ;;  %5498 = vmatmul.mubr.msk.f32.gmra.mrb[12].mxu1 %vm746_vm3, %v5490_v12  ;;  %v7435_v34 = vpop.permute.xlu0 %6413  ;;  %v1422_v38 = vsel %vm1419_vm5, %v6400_v18, %v6410_v22  ;;  %v1423_v39 = vsel %vm1419_vm5, %v6401_v17, %v6411_v21 }
 0x1a6   : > { %v7441_v42 = vpop.permute.xlu1 %6418  ;;  %1364 = vmatprep.mubr.f32.mxu1 %v6900_v0  ;;  %v5734_v43 = vpack.c.bf16 %v1435_v32, %v1434_v29  ;;  %v5740_v46 = vpack.c.bf16 %v1423_v39, %v1422_v38  ;;  %v5742_v48 = vpack.c.bf16 %v1427_v23, %v1426_v24  ;;  %v5754_v5 = vpack.c.bf16 %v7054_v62, %v7061_v2 }
 0x1a7   : > { %5495 = vmatmul.mubr.msk.f32.gmra.mrb[14].mxu0 %vm746_vm3, %v5491_v26  ;;  %v6421_v53 = vunpack.i.h.bf16 %v7441_v42  ;;  %v6420_v56 = vunpack.i.l.bf16 %v7441_v42  ;;  %v6416_v6 = vunpack.i.h.bf16 %v7435_v34  ;;  %v6415_v7 = vunpack.i.l.bf16 %v7435_v34 }
 0x1a8   : > { %5735 = vmatpush1.bf16.msra.mxu0 %v5734_v43  ;;  %5741 = vmatprep.subr.bf16.mxu1 %v5740_v46  ;;  %v5756_v12 = vpack.c.bf16 %v7109_v33, %v7121_v37  ;;  %v5503_v43 = vld [vmem:[%s8661_s4 + $0x78] sm:$0xff] }
 0x1a9   : > { %5499 = vmatmul.mubr.msk.f32.gmra.mrb[14].mxu1 %vm746_vm3, %v5491_v26  ;;  %v6424_v14 = vpop.permute.xlu0 %6423  ;;  %5745 = vmatprep.subr.bf16.mxu0 %v5744_v47  ;;  %v1899_v23 = vsel %vm1890_vm6, %v6415_v7, %v6420_v56  ;;  %v1900_v26 = vsel %vm1890_vm6, %v6416_v6, %v6421_v53 }
 0x1aa   : > { %v6426_v57 = vunpack.i.h.bf16 %v6424_v14  ;;  %v6425_v58 = vunpack.i.l.bf16 %v6424_v14  ;;  %5743 = vmatpush1.bf16.msra.mxu1 %v5742_v48  ;;  %v6429_v61 = vpop.permute.xlu1 %6428  ;;  %1517 = vmatprep.mubr.f32.mxu0 %v6900_v0 }
 0x1ab   : > { %v6431_v63 = vunpack.i.h.bf16 %v6429_v61  ;;  %v6430_v1 = vunpack.i.l.bf16 %v6429_v61  ;;  %5753 = vmatprep.subr.bf16.mxu1 %v5752_v50  ;;  %5504 = vmatmul.mubr.msk.f32.vlgmr.msra.gmra.mrb[8].mxu0 %vm746_vm3, %v5500_v49 }
 0x1ac   : > { %1606 = vmatprep.mubr.f32.mxu1 %v6900_v0  ;;  %5747 = vmatpush1.bf16.msra.mxu0 %v5746_v51  ;;  %v1895_v9 = vsel %vm1890_vm6, %v6420_v56, %v6425_v58  ;;  %v1896_v10 = vsel %vm1890_vm6, %v6421_v53, %v6426_v57  ;;  %v5512_v51 = vld [vmem:[%s8661_s4 + $0x80] sm:$0xff] }
 0x1ad   : > { %5508 = vmatmul.mubr.msk.f32.vlgmr.msra.gmra.mrb[8].mxu1 %vm746_vm3, %v5500_v49  ;;  %v6434_v11 = vpop.permute.xlu0 %6433  ;;  %5749 = vmatprep.subr.bf16.mxu0 %v5748_v52  ;;  %v1903_v16 = vsel %vm1890_vm6, %v6430_v1, %v6415_v7  ;;  %v1904_v17 = vsel %vm1890_vm6, %v6431_v63, %v6416_v6  ;;  %v5760_v18 = vpack.c.bf16 %v1896_v10, %v1895_v9 }
 0x1ae   : > { %5755 = vmatpush1.bf16.msra.mxu1 %v5754_v5  ;;  %v6449_v13 = vpop.permute.xlu1 %6448  ;;  %1523 = vmatprep.mubr.f32.mxu0 %v6900_v0  ;;  %v5768_v22 = vpack.c.bf16 %v1904_v17, %v1903_v16  ;;  %v1891_v29 = vsel %vm1890_vm6, %v6425_v58, %v6430_v1  ;;  %v1892_v32 = vsel %vm1890_vm6, %v6426_v57, %v6431_v63  ;;  %v6436_v34 = vunpack.i.h.bf16 %v6434_v11 }
 0x1af   : > { %5757 = vmatprep.subr.bf16.mxu1 %v5756_v12  ;;  %5505 = vmatmul.mubr.msk.f32.gmra.mrb[10].mxu0 %vm746_vm3, %v5501_v8  ;;  %v6435_v38 = vunpack.i.l.bf16 %v6434_v11  ;;  %v6451_v46 = vunpack.i.h.bf16 %v6449_v13  ;;  %v6450_v47 = vunpack.i.l.bf16 %v6449_v13  ;;  %v5762_v52 = vpack.c.bf16 %v1900_v26, %v1899_v23 }
 0x1b0   : > { %1612 = vmatprep.mubr.f32.mxu1 %v6900_v0  ;;  %5751 = vmatpush1.bf16.msra.mxu0 %v5750_v15  ;;  %v5770_v57 = vpack.c.bf16 %v1892_v32, %v1891_v29 }
 0x1b1   : > { %5509 = vmatmul.mubr.msk.f32.gmra.mrb[10].mxu1 %vm746_vm3, %v5501_v8  ;;  %v6439_v21 = vpop.permute.xlu0 %6438  ;;  %5761 = vmatprep.subr.bf16.mxu0 %v5760_v18  ;;  %v1901_v58 = vsel %vm1890_vm6, %v6435_v38, %v6450_v47  ;;  %v1902_v61 = vsel %vm1890_vm6, %v6436_v34, %v6451_v46  ;;  %v5513_v18 = vld [vmem:[%s8661_s4 + $0x88] sm:$0xff] }
 0x1b2   : > { %5759 = vmatpush1.bf16.msra.mxu1 %v5758_v19  ;;  %v6454_v24 = vpop.permute.xlu1 %6453  ;;  %1529 = vmatprep.mubr.f32.mxu0 %v6900_v0  ;;  %v6441_v39 = vunpack.i.h.bf16 %v6439_v21  ;;  %v6440_v42 = vunpack.i.l.bf16 %v6439_v21  ;;  %v5766_v29 = vpack.c.bf16 %v1902_v61, %v1901_v58 }
 0x1b3   : > { %5769 = vmatprep.subr.bf16.mxu1 %v5768_v22  ;;  %5506 = vmatmul.mubr.msk.f32.gmra.mrb[12].mxu0 %vm746_vm3, %v5502_v20  ;;  %v6456_v48 = vunpack.i.h.bf16 %v6454_v24  ;;  %v6455_v49 = vunpack.i.l.bf16 %v6454_v24 }
 0x1b4   : > { %1618 = vmatprep.mubr.f32.mxu1 %v6900_v0  ;;  %1535 = vmatprep.mubr.f32.mxu0 %v6900_v0  ;;  %v1897_v53 = vsel %vm1890_vm6, %v6450_v47, %v6440_v42  ;;  %v1898_v56 = vsel %vm1890_vm6, %v6451_v46, %v6441_v39 }
 0x1b5   : > { %5510 = vmatmul.mubr.msk.f32.gmra.mrb[12].mxu1 %vm746_vm3, %v5502_v20  ;;  %v7508_v14 = vpop.permute.xlu0 %6443  ;;  %v1905_v1 = vsel %vm1890_vm6, %v6455_v49, %v6435_v38  ;;  %v1906_v5 = vsel %vm1890_vm6, %v6456_v48, %v6436_v34  ;;  %v1893_v11 = vsel %vm1890_vm6, %v6440_v42, %v6455_v49  ;;  %v5764_v15 = vpack.c.bf16 %v1898_v56, %v1897_v53  ;;  %v5514_v42 = vld [vmem:[%s8661_s4 + $0x90] sm:$0xff] }
 0x1b6   : > { %v7510_v50 = vpop.permute.xlu1 %6458  ;;  %1624 = vmatprep.mubr.f32.mxu1 %v6900_v0  ;;  %v6446_v16 = vunpack.i.h.bf16 %v7508_v14  ;;  %v6445_v17 = vunpack.i.l.bf16 %v7508_v14  ;;  %v1894_v21 = vsel %vm1890_vm6, %v6441_v39, %v6456_v48  ;;  %v5772_v23 = vpack.c.bf16 %v1906_v5, %v1905_v1 }
 0x1b7   : > { %5507 = vmatmul.mubr.msk.f32.gmra.mrb[14].mxu0 %vm746_vm3, %v5503_v43  ;;  %v6461_v6 = vunpack.i.h.bf16 %v7510_v50  ;;  %v6460_v7 = vunpack.i.l.bf16 %v7510_v50  ;;  %v5774_v39 = vpack.c.bf16 %v1894_v21, %v1893_v11  ;;  %v5515_v50 = vld [vmem:[%s8661_s4 + $0x98] sm:$0xff] }
 0x1b8   : > { %1728 = vmatprep.mubr.f32.mxu0 %v6900_v0 }
 0x1b9   : > { %5511 = vmatmul.mubr.msk.f32.gmra.mrb[14].mxu1 %vm746_vm3, %v5503_v43  ;;  %v7528_v63 = vpop.permute.xlu0 %6463  ;;  %v2159_v47 = vsel %vm2150_vm7, %v6445_v17, %v6460_v7  ;;  %v2160_v48 = vsel %vm2150_vm7, %v6446_v16, %v6461_v6 }
 0x1ba   : > { %v6466_v8 = vunpack.i.h.bf16 %v7528_v63  ;;  %v6465_v9 = vunpack.i.l.bf16 %v7528_v63  ;;  %v6469_v10 = vpop.permute.xlu1 %6468  ;;  %1817 = vmatprep.mubr.f32.mxu1 %v6900_v0 }
 0x1bb   : > { %v6471_v12 = vunpack.i.h.bf16 %v6469_v10  ;;  %v6470_v13 = vunpack.i.l.bf16 %v6469_v10  ;;  %5516 = vmatmul.mubr.msk.f32.vlgmr.msra.gmra.mrb[8].mxu0 %vm746_vm3, %v5512_v51 }
 0x1bc   : > { %5763 = vmatpush1.bf16.msra.mxu0 %v5762_v52  ;;  %1734 = vmatprep.mubr.f32.mxu0 %v6900_v0  ;;  %v2155_v19 = vsel %vm2150_vm7, %v6460_v7, %v6465_v9  ;;  %v2156_v20 = vsel %vm2150_vm7, %v6461_v6, %v6466_v8  ;;  %v5524_v6 = vld [vmem:[%s8661_s4 + $0xa0] sm:$0xff]  ;;  %v5778_v7 = vpack.c.bf16 %v2160_v48, %v2159_v47 }
 0x1bd   : > { %5520 = vmatmul.mubr.msk.f32.vlgmr.msra.gmra.mrb[8].mxu1 %vm746_vm3, %v5512_v51  ;;  %5765 = vmatprep.subr.bf16.mxu0 %v5764_v15  ;;  %v7555_v22 = vpop.permute.xlu0 %6473  ;;  %v5776_v24 = vpack.c.bf16 %v2156_v20, %v2155_v19  ;;  %v2163_v32 = vsel %vm2150_vm7, %v6470_v13, %v6445_v17  ;;  %v2164_v34 = vsel %vm2150_vm7, %v6471_v12, %v6446_v16 }
 0x1be   : > { %5771 = vmatpush1.bf16.msra.mxu1 %v5770_v57  ;;  %v6489_v26 = vpop.permute.xlu1 %6488  ;;  %1823 = vmatprep.mubr.f32.mxu1 %v6900_v0  ;;  %v5784_v38 = vpack.c.bf16 %v2164_v34, %v2163_v32  ;;  %v6475_v51 = vunpack.i.l.bf16 %v7555_v22  ;;  %v2151_v58 = vsel %vm2150_vm7, %v6465_v9, %v6470_v13  ;;  %v2152_v61 = vsel %vm2150_vm7, %v6466_v8, %v6471_v12  ;;  %v5525_v32 = vld [vmem:[%s8661_s4 + $0xa8] sm:$0xff] }
 0x1bf   : > { %5773 = vmatprep.subr.bf16.mxu1 %v5772_v23  ;;  %5517 = vmatmul.mubr.msk.f32.gmra.mrb[10].mxu0 %vm746_vm3, %v5513_v18  ;;  %v6490_v52 = vunpack.i.l.bf16 %v6489_v26  ;;  %v6491_v63 = vunpack.i.h.bf16 %v6489_v26  ;;  %v6476_v5 = vunpack.i.h.bf16 %v7555_v22  ;;  %v5786_v12 = vpack.c.bf16 %v2152_v61, %v2151_v58 }
 0x1c0   : > { %5767 = vmatpush1.bf16.msra.mxu0 %v5766_v29  ;;  %1740 = vmatprep.mubr.f32.mxu0 %v6900_v0 }
 0x1c1   : > { %5521 = vmatmul.mubr.msk.f32.gmra.mrb[10].mxu1 %vm746_vm3, %v5513_v18  ;;  %5777 = vmatprep.subr.bf16.mxu0 %v5776_v24  ;;  %v6479_v43 = vpop.permute.xlu0 %6478  ;;  %v2161_v10 = vsel %vm2150_vm7, %v6475_v51, %v6490_v52  ;;  %v2162_v21 = vsel %vm2150_vm7, %v6476_v5, %v6491_v63 }
 0x1c2   : > { %5775 = vmatpush1.bf16.msra.mxu1 %v5774_v39  ;;  %v6494_v46 = vpop.permute.xlu1 %6493  ;;  %1829 = vmatprep.mubr.f32.mxu1 %v6900_v0  ;;  %v6481_v49 = vunpack.i.h.bf16 %v6479_v43  ;;  %v6480_v14 = vunpack.i.l.bf16 %v6479_v43 }
 0x1c3   : > { %5785 = vmatprep.subr.bf16.mxu1 %v5784_v38  ;;  %5518 = vmatmul.mubr.msk.f32.gmra.mrb[12].mxu0 %vm746_vm3, %v5514_v42  ;;  %v6496_v53 = vunpack.i.h.bf16 %v6494_v46  ;;  %v6495_v56 = vunpack.i.l.bf16 %v6494_v46 }
 0x1c4   : > { %1746 = vmatprep.mubr.f32.mxu0 %v6900_v0  ;;  %v2157_v8 = vsel %vm2150_vm7, %v6490_v52, %v6480_v14  ;;  %v2158_v9 = vsel %vm2150_vm7, %v6491_v63, %v6481_v49 }
 0x1c5   : > { %5522 = vmatmul.mubr.msk.f32.gmra.mrb[12].mxu1 %vm746_vm3, %v5514_v42  ;;  %v7580_v57 = vpop.permute.xlu0 %6483  ;;  %v2165_v13 = vsel %vm2150_vm7, %v6495_v56, %v6475_v51  ;;  %v2166_v15 = vsel %vm2150_vm7, %v6496_v53, %v6476_v5  ;;  %v5780_v24 = vpack.c.bf16 %v2158_v9, %v2157_v8  ;;  %v2153_v26 = vsel %vm2150_vm7, %v6480_v14, %v6495_v56  ;;  %v5527_v5 = vld [vmem:[%s8661_s4 + $0xb8] sm:$0xff] }
 0x1c6   : > { %v7586_v1 = vpop.permute.xlu1 %6498  ;;  %1835 = vmatprep.mubr.f32.mxu1 %v6900_v0  ;;  %v6485_v29 = vunpack.i.l.bf16 %v7580_v57  ;;  %v2154_v39 = vsel %vm2150_vm7, %v6481_v49, %v6496_v53  ;;  %v6486_v42 = vunpack.i.h.bf16 %v7580_v57  ;;  %v5788_v46 = vpack.c.bf16 %v2166_v15, %v2165_v13  ;;  %v5526_v53 = vld [vmem:[%s8661_s4 + $0xb0] sm:$0xff] }
 0x1c7   : > { %5519 = vmatmul.mubr.msk.f32.gmra.mrb[14].mxu0 %vm746_vm3, %v5515_v50  ;;  %v6501_v16 = vunpack.i.h.bf16 %v7586_v1  ;;  %v6500_v17 = vunpack.i.l.bf16 %v7586_v1  ;;  %v5782_v14 = vpack.c.bf16 %v2162_v21, %v2161_v10  ;;  %v5790_v51 = vpack.c.bf16 %v2154_v39, %v2153_v26 }
 0x1c8   : > { %1988 = vmatprep.mubr.f32.mxu0 %v6900_v0 }
 0x1c9   : > { %5523 = vmatmul.mubr.msk.f32.gmra.mrb[14].mxu1 %vm746_vm3, %v5515_v50  ;;  %v7603_v11 = vpop.permute.xlu0 %6503  ;;  %v2419_v58 = vsel %vm2410_vm8, %v6485_v29, %v6500_v17  ;;  %v2420_v61 = vsel %vm2410_vm8, %v6486_v42, %v6501_v16 }
 0x1ca   : > { %v6506_v18 = vunpack.i.h.bf16 %v7603_v11  ;;  %v6505_v19 = vunpack.i.l.bf16 %v7603_v11  ;;  %v6509_v20 = vpop.permute.xlu1 %6508  ;;  %2077 = vmatprep.mubr.f32.mxu1 %v6900_v0 }
 0x1cb   : > { %v6511_v22 = vunpack.i.h.bf16 %v6509_v20  ;;  %v6510_v23 = vunpack.i.l.bf16 %v6509_v20  ;;  %5528 = vmatmul.mubr.msk.f32.vlgmr.msra.gmra.mrb[8].mxu0 %vm746_vm3, %v5524_v6 }
 0x1cc   : > { %5779 = vmatpush1.bf16.msra.mxu0 %v5778_v7  ;;  %1994 = vmatprep.mubr.f32.mxu0 %v6900_v0  ;;  %v2415_v34 = vsel %vm2410_vm8, %v6500_v17, %v6505_v19  ;;  %v2416_v38 = vsel %vm2410_vm8, %v6501_v16, %v6506_v18  ;;  %v5794_v17 = vpack.c.bf16 %v2420_v61, %v2419_v58 }
 0x1cd   : > { %5532 = vmatmul.mubr.msk.f32.vlgmr.msra.gmra.mrb[8].mxu1 %vm746_vm3, %v5524_v6  ;;  %5781 = vmatprep.subr.bf16.mxu0 %v5780_v24  ;;  %v7632_v43 = vpop.permute.xlu0 %6513  ;;  %v5792_v47 = vpack.c.bf16 %v2416_v38, %v2415_v34  ;;  %v2423_v50 = vsel %vm2410_vm8, %v6510_v23, %v6485_v29  ;;  %v2424_v49 = vsel %vm2410_vm8, %v6511_v22, %v6486_v42 }
 0x1ce   : > { %5787 = vmatpush1.bf16.msra.mxu1 %v5786_v12  ;;  %v6529_v48 = vpop.permute.xlu1 %6528  ;;  %2083 = vmatprep.mubr.f32.mxu1 %v6900_v0  ;;  %v5800_v52 = vpack.c.bf16 %v2424_v49, %v2423_v50  ;;  %v6515_v6 = vunpack.i.l.bf16 %v7632_v43  ;;  %v2411_v11 = vsel %vm2410_vm8, %v6505_v19, %v6510_v23  ;;  %v2412_v12 = vsel %vm2410_vm8, %v6506_v18, %v6511_v22  ;;  %v5536_v19 = vld [vmem:[%s8661_s4 + $0xc0] sm:$0xff]  ;;  %v5537_v50 = vld [vmem:[%s8661_s4 + $0xc8] sm:$0xff] }
 0x1cf   : > { %5789 = vmatprep.subr.bf16.mxu1 %v5788_v46  ;;  %5529 = vmatmul.mubr.msk.f32.gmra.mrb[10].mxu0 %vm746_vm3, %v5525_v32  ;;  %v6530_v7 = vunpack.i.l.bf16 %v6529_v48  ;;  %v6531_v13 = vunpack.i.h.bf16 %v6529_v48  ;;  %v6516_v16 = vunpack.i.h.bf16 %v7632_v43  ;;  %v5802_v21 = vpack.c.bf16 %v2412_v12, %v2411_v11 }
 0x1d0   : > { %5783 = vmatpush1.bf16.msra.mxu0 %v5782_v14  ;;  %2000 = vmatprep.mubr.f32.mxu0 %v6900_v0 }
 0x1d1   : > { %5533 = vmatmul.mubr.msk.f32.gmra.mrb[10].mxu1 %vm746_vm3, %v5525_v32  ;;  %5793 = vmatprep.subr.bf16.mxu0 %v5792_v47  ;;  %v6519_v56 = vpop.permute.xlu0 %6518  ;;  %v2421_v22 = vsel %vm2410_vm8, %v6515_v6, %v6530_v7  ;;  %v2422_v42 = vsel %vm2410_vm8, %v6516_v16, %v6531_v13 }
 0x1d2   : > { %5791 = vmatpush1.bf16.msra.mxu1 %v5790_v51  ;;  %v6534_v57 = vpop.permute.xlu1 %6533  ;;  %2089 = vmatprep.mubr.f32.mxu1 %v6900_v0  ;;  %v6521_v63 = vunpack.i.h.bf16 %v6519_v56  ;;  %v6520_v1 = vunpack.i.l.bf16 %v6519_v56  ;;  %v5798_v61 = vpack.c.bf16 %v2422_v42, %v2421_v22 }
 0x1d3   : > { %5801 = vmatprep.subr.bf16.mxu1 %v5800_v52  ;;  %5530 = vmatmul.mubr.msk.f32.gmra.mrb[12].mxu0 %vm746_vm3, %v5526_v53  ;;  %v6536_v8 = vunpack.i.h.bf16 %v6534_v57  ;;  %v6535_v9 = vunpack.i.l.bf16 %v6534_v57 }
 0x1d4   : > { %2006 = vmatprep.mubr.f32.mxu0 %v6900_v0  ;;  %v2417_v18 = vsel %vm2410_vm8, %v6530_v7, %v6520_v1  ;;  %v2418_v20 = vsel %vm2410_vm8, %v6531_v13, %v6521_v63  ;;  %v5539_v13 = vld [vmem:[%s8661_s4 + $0xd8] sm:$0xff] }
 0x1d5   : > { %5534 = vmatmul.mubr.msk.f32.gmra.mrb[12].mxu1 %vm746_vm3, %v5526_v53  ;;  %v7657_v10 = vpop.permute.xlu0 %6523  ;;  %v2425_v24 = vsel %vm2410_vm8, %v6535_v9, %v6515_v6  ;;  %v2426_v26 = vsel %vm2410_vm8, %v6536_v8, %v6516_v16  ;;  %v5796_v47 = vpack.c.bf16 %v2418_v20, %v2417_v18  ;;  %v2413_v48 = vsel %vm2410_vm8, %v6520_v1, %v6535_v9 }
 0x1d6   : > { %v7663_v15 = vpop.permute.xlu1 %6538  ;;  %2095 = vmatprep.mubr.f32.mxu1 %v6900_v0  ;;  %v6525_v14 = vunpack.i.l.bf16 %v7657_v10  ;;  %v2414_v52 = vsel %vm2410_vm8, %v6521_v63, %v6536_v8  ;;  %v6526_v53 = vunpack.i.h.bf16 %v7657_v10  ;;  %v5804_v57 = vpack.c.bf16 %v2426_v26, %v2425_v24  ;;  %v5538_v8 = vld [vmem:[%s8661_s4 + $0xd0] sm:$0xff]  ;;  %v5548_v24 = vld [vmem:[%s8661_s4 + $0xe0] sm:$0xff] }
 0x1d7   : > { %5531 = vmatmul.mubr.msk.f32.gmra.mrb[14].mxu0 %vm746_vm3, %v5527_v5  ;;  %v6541_v29 = vunpack.i.h.bf16 %v7663_v15  ;;  %v6540_v32 = vunpack.i.l.bf16 %v7663_v15  ;;  %v5806_v6 = vpack.c.bf16 %v2414_v52, %v2413_v48 }
 0x1d8   : > { %2248 = vmatprep.mubr.f32.mxu0 %v6900_v0 }
 0x1d9   : > { %5535 = vmatmul.mubr.msk.f32.gmra.mrb[14].mxu1 %vm746_vm3, %v5527_v5  ;;  %v7680_v23 = vpop.permute.xlu0 %6543  ;;  %v2679_v18 = vsel %vm2670_vm9, %v6525_v14, %v6540_v32  ;;  %v2680_v20 = vsel %vm2670_vm9, %v6526_v53, %v6541_v29 }
 0x1da   : > { %v6546_v34 = vunpack.i.h.bf16 %v7680_v23  ;;  %v6545_v38 = vunpack.i.l.bf16 %v7680_v23  ;;  %v7690_v39 = vpop.permute.xlu1 %6548  ;;  %2337 = vmatprep.mubr.f32.mxu1 %v6900_v0  ;;  %v5810_v42 = vpack.c.bf16 %v2680_v20, %v2679_v18 }
 0x1db   : > { %v6551_v43 = vunpack.i.h.bf16 %v7690_v39  ;;  %v6550_v46 = vunpack.i.l.bf16 %v7690_v39  ;;  %5540 = vmatmul.mubr.msk.f32.vlgmr.msra.gmra.mrb[8].mxu0 %vm746_vm3, %v5536_v19 }
 0x1dc   : > { %5795 = vmatpush1.bf16.msra.mxu0 %v5794_v17  ;;  %2254 = vmatprep.mubr.f32.mxu0 %v6900_v0  ;;  %v2675_v49 = vsel %vm2670_vm9, %v6540_v32, %v6545_v38  ;;  %v2676_v51 = vsel %vm2670_vm9, %v6541_v29, %v6546_v34 }
 0x1dd   : > { %5544 = vmatmul.mubr.msk.f32.vlgmr.msra.gmra.mrb[8].mxu1 %vm746_vm3, %v5536_v19  ;;  %5797 = vmatprep.subr.bf16.mxu0 %v5796_v47  ;;  %v6554_v56 = vpop.permute.xlu0 %6553  ;;  %v5808_v58 = vpack.c.bf16 %v2676_v51, %v2675_v49  ;;  %v2683_v5 = vsel %vm2670_vm9, %v6550_v46, %v6525_v14  ;;  %v2684_v63 = vsel %vm2670_vm9, %v6551_v43, %v6526_v53  ;;  %v5550_v53 = vld [vmem:[%s8661_s4 + $0xf0] sm:$0xff] }
 0x1de   : > { %5803 = vmatpush1.bf16.msra.mxu1 %v5802_v21  ;;  %v6564_v1 = vpop.permute.xlu1 %6563  ;;  %2343 = vmatprep.mubr.f32.mxu1 %v6900_v0  ;;  %v5816_v7 = vpack.c.bf16 %v2684_v63, %v2683_v5  ;;  %v6556_v21 = vunpack.i.h.bf16 %v6554_v56  ;;  %v6555_v22 = vunpack.i.l.bf16 %v6554_v56  ;;  %v2671_v29 = vsel %vm2670_vm9, %v6545_v38, %v6550_v46  ;;  %v5551_v56 = vld [vmem:[%s8661_s4 + $0xf8] sm:$0xff] }
 0x1df   : > { %5805 = vmatprep.subr.bf16.mxu1 %v5804_v57  ;;  %5541 = vmatmul.mubr.msk.f32.gmra.mrb[10].mxu0 %vm746_vm3, %v5537_v50  ;;  %v6566_v15 = vunpack.i.h.bf16 %v6564_v1  ;;  %v6565_v16 = vunpack.i.l.bf16 %v6564_v1  ;;  %v2672_v32 = vsel %vm2670_vm9, %v6546_v34, %v6551_v43  ;;  %v5549_v43 = vld [vmem:[%s8661_s4 + $0xe8] sm:$0xff]  ;;  %v5560_v57 = vld [vmem:[%s8661_s4 + $0x100] sm:$0xff]  ;;  %v5563_v1 = vld [vmem:[%s8661_s4 + $0x118] sm:$0xff] }
 0x1e0   : > { %5799 = vmatpush1.bf16.msra.mxu0 %v5798_v61  ;;  %2260 = vmatprep.mubr.f32.mxu0 %v6900_v0  ;;  %v5818_v38 = vpack.c.bf16 %v2672_v32, %v2671_v29  ;;  %v5562_v61 = vld [vmem:[%s8661_s4 + $0x110] sm:$0xff] }
 0x1e1   : > { %5545 = vmatmul.mubr.msk.f32.gmra.mrb[10].mxu1 %vm746_vm3, %v5537_v50  ;;  %5809 = vmatprep.subr.bf16.mxu0 %v5808_v58  ;;  %v6559_v9 = vpop.permute.xlu0 %6558  ;;  %v2681_v14 = vsel %vm2670_vm9, %v6555_v22, %v6565_v16  ;;  %v2682_v23 = vsel %vm2670_vm9, %v6556_v21, %v6566_v15  ;;  %v5561_v58 = vld [vmem:[%s8661_s4 + $0x108] sm:$0xff] }
 0x1e2   : > { %5807 = vmatpush1.bf16.msra.mxu1 %v5806_v6  ;;  %2349 = vmatprep.mubr.f32.mxu1 %v6900_v0  ;;  %v6569_v10 = vpop.permute.xlu1 %6568  ;;  %v6561_v11 = vunpack.i.h.bf16 %v6559_v9  ;;  %v6560_v12 = vunpack.i.l.bf16 %v6559_v9  ;;  %v5814_v51 = vpack.c.bf16 %v2682_v23, %v2681_v14 }
 0x1e3   : > { %5817 = vmatprep.subr.bf16.mxu1 %v5816_v7  ;;  %5542 = vmatmul.mubr.msk.f32.gmra.mrb[12].mxu0 %vm746_vm3, %v5538_v8  ;;  %v6571_v17 = vunpack.i.h.bf16 %v6569_v10  ;;  %v6570_v19 = vunpack.i.l.bf16 %v6569_v10 }
 0x1e4   : > { %2266 = vmatprep.mubr.f32.mxu0 %v6900_v0  ;;  %v2677_v26 = vsel %vm2670_vm9, %v6565_v16, %v6560_v12  ;;  %v2678_v39 = vsel %vm2670_vm9, %v6566_v15, %v6561_v11 }
 0x1e5   : > { %5546 = vmatmul.mubr.msk.f32.gmra.mrb[12].mxu1 %vm746_vm3, %v5538_v8  ;;  %v2685_v47 = vsel %vm2670_vm9, %v6570_v19, %v6555_v22  ;;  %v2686_v48 = vsel %vm2670_vm9, %v6571_v17, %v6556_v21  ;;  %v5812_v34 = vpack.c.bf16 %v2678_v39, %v2677_v26  ;;  %v2673_v46 = vsel %vm2670_vm9, %v6560_v12, %v6570_v19 }
 0x1e6   : > { %2355 = vmatprep.mubr.f32.mxu1 %v6900_v0  ;;  %v2674_v50 = vsel %vm2670_vm9, %v6561_v11, %v6571_v17  ;;  %v5820_v49 = vpack.c.bf16 %v2686_v48, %v2685_v47 }
 0x1e7   : > { %5543 = vmatmul.mubr.msk.f32.gmra.mrb[14].mxu0 %vm746_vm3, %v5539_v13  ;;  %v5822_v52 = vpack.c.bf16 %v2674_v50, %v2673_v46 }
 0x1e8   : > { %2508 = vmatprep.mubr.f32.mxu0 %v6900_v0 }
 0x1e9   : > { %5547 = vmatmul.mubr.msk.f32.gmra.mrb[14].mxu1 %vm746_vm3, %v5539_v13 }
 0x1ea   : > { %2597 = vmatprep.mubr.f32.mxu1 %v6900_v0 }
 0x1eb   : > { %5552 = vmatmul.mubr.msk.f32.vlgmr.msra.gmra.mrb[8].mxu0 %vm746_vm3, %v5548_v24 }
 0x1ec   : > { %5811 = vmatpush1.bf16.msra.mxu0 %v5810_v42  ;;  %2514 = vmatprep.mubr.f32.mxu0 %v6900_v0 }
 0x1ed   : > { %5556 = vmatmul.mubr.msk.f32.vlgmr.msra.gmra.mrb[8].mxu1 %vm746_vm3, %v5548_v24  ;;  %5813 = vmatprep.subr.bf16.mxu0 %v5812_v34 }
 0x1ee   : > { %5819 = vmatpush1.bf16.msra.mxu1 %v5818_v38  ;;  %2603 = vmatprep.mubr.f32.mxu1 %v6900_v0 }
 0x1ef   : > { %5821 = vmatprep.subr.bf16.mxu1 %v5820_v49  ;;  %5553 = vmatmul.mubr.msk.f32.gmra.mrb[10].mxu0 %vm746_vm3, %v5549_v43 }
 0x1f0   : > { %5815 = vmatpush1.bf16.msra.mxu0 %v5814_v51  ;;  %2520 = vmatprep.mubr.f32.mxu0 %v6900_v0 }
 0x1f1   : > { %5557 = vmatmul.mubr.msk.f32.gmra.mrb[10].mxu1 %vm746_vm3, %v5549_v43 }
 0x1f2   : > { %5823 = vmatpush1.bf16.msra.mxu1 %v5822_v52  ;;  %2609 = vmatprep.mubr.f32.mxu1 %v6900_v0  ;;  %v2905_v5 = vpop.permute.xlu0 %2904 }
 0x1f3   : > { %5554 = vmatmul.mubr.msk.f32.gmra.mrb[12].mxu0 %vm746_vm3, %v5550_v53  ;;  %v2910_v63 = vpop.permute.xlu1 %2909 }
 0x1f4   : > { %2526 = vmatprep.mubr.f32.mxu0 %v6900_v0 }
 0x1f5   : > { %5558 = vmatmul.mubr.msk.f32.gmra.mrb[12].mxu1 %vm746_vm3, %v5550_v53 }
 0x1f6   : > { %2615 = vmatprep.mubr.f32.mxu1 %v6900_v0  ;;  %v2945_v6 = vpop.permute.xlu0 %2944 }
 0x1f7   : > { %5555 = vmatmul.mubr.msk.f32.gmra.mrb[14].mxu0 %vm746_vm3, %v5551_v56  ;;  %v2950_v10 = vpop.permute.xlu1 %2949 }
 0x1f8   : > { %2768 = vmatprep.mubr.f32.mxu0 %v6900_v0 }
 0x1f9   : > { %5559 = vmatmul.mubr.msk.f32.gmra.mrb[14].mxu1 %vm746_vm3, %v5551_v56 }
 0x1fa   : > { %2857 = vmatprep.mubr.f32.mxu1 %v6900_v0  ;;  %v2915_v17 = vpop.permute.xlu0 %2914 }
 0x1fb   : > { %5564 = vmatmul.mubr.msk.f32.vlgmr.msra.gmra.mrb[8].mxu0 %vm746_vm3, %v5560_v57  ;;  %v2920_v38 = vpop.permute.xlu1 %2919 }
 0x1fc   : > { %2774 = vmatprep.mubr.f32.mxu0 %v6900_v0 }
 0x1fd   : > { %5568 = vmatmul.mubr.msk.f32.vlgmr.msra.gmra.mrb[8].mxu1 %vm746_vm3, %v5560_v57 }
 0x1fe   : > { %2863 = vmatprep.mubr.f32.mxu1 %v6900_v0 }
 0x1ff   : > { %5565 = vmatmul.mubr.msk.f32.gmra.mrb[10].mxu0 %vm746_vm3, %v5561_v58 }
 0x200   : > { %2780 = vmatprep.mubr.f32.mxu0 %v6900_v0 }
 0x201   : > { %5569 = vmatmul.mubr.msk.f32.gmra.mrb[10].mxu1 %vm746_vm3, %v5561_v58 }
 0x202   : > { %2869 = vmatprep.mubr.f32.mxu1 %v6900_v0 }
 0x203   : > { %5566 = vmatmul.mubr.msk.f32.gmra.mrb[12].mxu0 %vm746_vm3, %v5562_v61 }
 0x204   : > { %2786 = vmatprep.mubr.f32.mxu0 %v6900_v0 }
 0x205   : > { %5570 = vmatmul.mubr.msk.f32.gmra.mrb[12].mxu1 %vm746_vm3, %v5562_v61  ;;  %v2955_v61 = vpop.permute.xlu0 %2954 }
 0x206   : > { %2875 = vmatprep.mubr.f32.mxu1 %v6900_v0 }
 0x207   : > { %5567 = vmatmul.mubr.msk.f32.gmra.mrb[14].mxu0 %vm746_vm3, %v5563_v1 }
 0x208   : > { %3193 = vmatprep.mubr.f32.mxu0 %v6900_v0 }
 0x209   : > { %5571 = vmatmul.mubr.msk.f32.gmra.mrb[14].mxu1 %vm746_vm3, %v5563_v1 }
 0x20a   : > { %3282 = vmatprep.mubr.f32.mxu1 %v6900_v0 }
 0x2ce   : > { %v2770_v7 = vpop.f32.mrb[8].mxu0 }
 0x2cf   : > { %v2922_v8 = vmul.f32 %v2905_v5, %v2770_v7  ;;  %v2772_v9 = vpop.f32.mrb[9].mxu0 }
 0x2d0   : > { %v2923_v11 = vmul.f32 %v2905_v5, %v2772_v9  ;;  %v2859_v12 = vpop.f32.mrb[8].mxu1 }
 0x2d1   : > { %v2962_v13 = vadd.f32 %v2945_v6, %v2922_v8  ;;  %v2924_v15 = vmul.f32 %v2905_v5, %v2859_v12  ;;  %v2861_v16 = vpop.f32.mrb[9].mxu1 }
 0x2d2   : > { %v2963_v19 = vadd.f32 %v2945_v6, %v2923_v11  ;;  %v2925_v18 = vmul.f32 %v2905_v5, %v2861_v16  ;;  %v2776_v20 = vpop.f32.mrb[10].mxu0 }
 0x2d3   : > { %v2978_v21 = vmax.f32 %v2962_v13, 0.0  ;;  %v2964_v22 = vadd.f32 %v2945_v6, %v2924_v15  ;;  %v2926_v24 = vmul.f32 %v2910_v63, %v2776_v20  ;;  %v2778_v26 = vpop.f32.mrb[11].mxu0 }
 0x2d4   : > { %v2979_v39 = vmax.f32 %v2963_v19, 0.0  ;;  %v2965_v29 = vadd.f32 %v2945_v6, %v2925_v18  ;;  %v2927_v32 = vmul.f32 %v2910_v63, %v2778_v26  ;;  %v2865_v42 = vpop.f32.mrb[10].mxu1 }
 0x2d5   : > { %v7825_v47 = vmul.f32 %v2978_v21, %v7033_v35  ;;  %v2980_v48 = vmax.f32 %v2964_v22, 0.0  ;;  %v2966_v14 = vadd.f32 %v2950_v10, %v2926_v24  ;;  %v2928_v23 = vmul.f32 %v2910_v63, %v2865_v42  ;;  %v2867_v34 = vpop.f32.mrb[11].mxu1 }
 0x2d6   : > { %v7828_v43 = vmul.f32 %v2979_v39, %v7035_v41  ;;  %v2981_v46 = vmax.f32 %v2965_v29, 0.0  ;;  %v2967_v50 = vadd.f32 %v2950_v10, %v2927_v32  ;;  %v2929_v49 = vmul.f32 %v2910_v63, %v2867_v34  ;;  %v2782_v51 = vpop.f32.mrb[12].mxu0  ;;  %v2960_v39 = vpop.permute.xlu1 %2959 }
 0x2d7   : > { %v7831_v52 = vmul.f32 %v2980_v48, %v7037_v44  ;;  %v2982_v53 = vmax.f32 %v2966_v14, 0.0  ;;  %v2968_v56 = vadd.f32 %v2950_v10, %v2928_v23  ;;  %v2930_v57 = vmul.f32 %v2915_v17, %v2782_v51  ;;  %v2784_v58 = vpop.f32.mrb[13].mxu0 }
 0x2d8   : > { %v7834_v1 = vmul.f32 %v2981_v46, %v7039_v45  ;;  %v2983_v5 = vmax.f32 %v2967_v50, 0.0  ;;  %v2969_v6 = vadd.f32 %v2950_v10, %v2929_v49  ;;  %v2931_v7 = vmul.f32 %v2915_v17, %v2784_v58  ;;  %v2871_v8 = vpop.f32.mrb[12].mxu1 }
 0x2d9   : > { %v7837_v9 = vmul.f32 %v2982_v53, %v7033_v35  ;;  %v2984_v63 = vmax.f32 %v2968_v56, 0.0  ;;  %v2970_v11 = vadd.f32 %v2955_v61, %v2930_v57  ;;  %v2932_v12 = vmul.f32 %v2915_v17, %v2871_v8  ;;  %v2873_v13 = vpop.f32.mrb[13].mxu1 }
 0x2da   : > { %v7840_v15 = vmul.f32 %v2983_v5, %v7035_v41  ;;  %v2985_v16 = vmax.f32 %v2969_v6, 0.0  ;;  %v2971_v19 = vadd.f32 %v2955_v61, %v2931_v7  ;;  %v2933_v18 = vmul.f32 %v2915_v17, %v2873_v13  ;;  %v2788_v20 = vpop.f32.mrb[14].mxu0 }
 0x2db   : > { %v7843_v21 = vmul.f32 %v2984_v63, %v7037_v44  ;;  %v2986_v10 = vmax.f32 %v2970_v11, 0.0  ;;  %v2972_v22 = vadd.f32 %v2955_v61, %v2932_v12  ;;  %v2934_v24 = vmul.f32 %v2920_v38, %v2788_v20  ;;  %v2790_v26 = vpop.f32.mrb[15].mxu0 }
 0x2dc   : > { %v7846_v29 = vmul.f32 %v2985_v16, %v7039_v45  ;;  %v2987_v32 = vmax.f32 %v2971_v19, 0.0  ;;  %v2973_v42 = vadd.f32 %v2955_v61, %v2933_v18  ;;  %v2935_v48 = vmul.f32 %v2920_v38, %v2790_v26  ;;  %v2877_v14 = vpop.f32.mrb[14].mxu1 }
 0x2dd   : > { %v7849_v23 = vmul.f32 %v2986_v10, %v7033_v35  ;;  %v2988_v17 = vmax.f32 %v2972_v22, 0.0  ;;  %v2974_v34 = vadd.f32 %v2960_v39, %v2934_v24  ;;  %v2936_v46 = vmul.f32 %v2920_v38, %v2877_v14  ;;  %v2879_v50 = vpop.f32.mrb[15].mxu1 }
 0x2de   : > { %v7852_v49 = vmul.f32 %v2987_v32, %v7035_v41  ;;  %v2989_v51 = vmax.f32 %v2973_v42, 0.0  ;;  %v2975_v53 = vadd.f32 %v2960_v39, %v2935_v48  ;;  %v2937_v56 = vmul.f32 %v2920_v38, %v2879_v50 }
 0x2df   : > { %v7855_v57 = vmul.f32 %v2988_v17, %v7037_v44  ;;  %v2990_v58 = vmax.f32 %v2974_v34, 0.0  ;;  %v2976_v61 = vadd.f32 %v2960_v39, %v2936_v46  ;;  %v7859_v5 = vpack.i.bf16 %v7837_v9, %v7825_v47 }
 0x2e0   : > { %v7862_v6 = vmul.f32 %v2989_v51, %v7039_v45  ;;  %v2991_v7 = vmax.f32 %v2975_v53, 0.0  ;;  %v2977_v8 = vadd.f32 %v2960_v39, %v2937_v56  ;;  %v7866_v63 = vpack.i.bf16 %v7840_v15, %v7828_v43 }
 0x2e1   : > { %v7869_v38 = vmul.f32 %v2990_v58, %v7033_v35  ;;  %v2992_v11 = vmax.f32 %v2976_v61, 0.0  ;;  %6573 = vrot.lane.b32.xlu0 %v7859_v5, %s6910_s25  ;;  %v7874_v12 = vpack.i.bf16 %v7843_v21, %v7831_v52  ;;  %v7878_v13 = vpack.i.bf16 %v7846_v29, %v7834_v1 }
 0x2e2   : > { %v7881_v16 = vmul.f32 %v2991_v7, %v7035_v41  ;;  %v2993_v19 = vmax.f32 %v2977_v8, 0.0  ;;  %6583 = vrot.lane.b32.xlu1 %v7866_v63, %s6910_s25  ;;  %v5896_v22 = vpack.c.bf16 %v7846_v29, %v7834_v1  ;;  %v5890_v24 = vpack.c.bf16 %v7837_v9, %v7825_v47 }
 0x2e3   : > { %v7885_v35 = vmul.f32 %v2992_v11, %v7037_v44  ;;  %v7889_v18 = vpack.i.bf16 %v7869_v38, %v7849_v23  ;;  %v5898_v39 = vpack.c.bf16 %v7843_v21, %v7831_v52  ;;  %v5894_v42 = vpack.c.bf16 %v7869_v38, %v7849_v23  ;;  %v5606_v52 = vld [vmem:[%s8664_s7 + $0x70] sm:$0xff] }
 0x2e4   : > { %v7892_v20 = vmul.f32 %v2993_v19, %v7039_v45  ;;  %v7896_v10 = vpack.i.bf16 %v7881_v16, %v7852_v49  ;;  %v5888_v45 = vpack.c.bf16 %v7840_v15, %v7828_v43  ;;  %v5892_v26 = vpack.c.bf16 %v7881_v16, %v7852_v49  ;;  %v5605_v43 = vld [vmem:[%s8664_s7 + $0x68] sm:$0xff] }
 0x2e5   : > { %6578 = vrot.lane.b32.xlu0 %v7874_v12, %s6910_s25  ;;  %v7901_v41 = vpack.i.bf16 %v7885_v35, %v7855_v57  ;;  %v5902_v48 = vpack.c.bf16 %v7885_v35, %v7855_v57  ;;  %v5607_v57 = vld [vmem:[%s8664_s7 + $0x78] sm:$0xff] }
 0x2e6   : > { %6588 = vrot.lane.b32.xlu1 %v7878_v13, %s6910_s25  ;;  %v7906_v44 = vpack.i.bf16 %v7892_v20, %v7862_v6  ;;  %v5900_v32 = vpack.c.bf16 %v7892_v20, %v7862_v6 }
 0x2e9   : > { %6593 = vrot.lane.b32.xlu0 %v7889_v18, %s6910_s25 }
 0x2ea   : > { %6608 = vrot.lane.b32.xlu1 %v7896_v10, %s6910_s25 }
 0x2ed   : > { %6598 = vrot.lane.b32.xlu0 %v7901_v41, %s6910_s25 }
 0x2ee   : > { %6613 = vrot.lane.b32.xlu1 %v7906_v44, %s6910_s25 }
 0x2f1   : > { %6603 = vrot.lane.b32.xlu0 %v7859_v5, %s6911_s26 }
 0x2f2   : > { %6618 = vrot.lane.b32.xlu1 %v7866_v63, %s6911_s26 }
 0x2f5   : > { %6623 = vrot.lane.b32.xlu0 %v7874_v12, %s6911_s26 }
 0x2f6   : > { %6628 = vrot.lane.b32.xlu1 %v7878_v13, %s6911_s26 }
 0x2f9   : > { %6633 = vrot.lane.b32.xlu0 %v7889_v18, %s6911_s26 }
 0x2fa   : > { %6648 = vrot.lane.b32.xlu1 %v7896_v10, %s6911_s26 }
 0x2fd   : > { %6638 = vrot.lane.b32.xlu0 %v7901_v41, %s6911_s26 }
 0x2fe   : > { %6653 = vrot.lane.b32.xlu1 %v7906_v44, %s6911_s26 }
 0x301   : > { %6643 = vrot.lane.b32.xlu0 %v7859_v5, %s6912_s27 }
 0x302   : > { %6658 = vrot.lane.b32.xlu1 %v7866_v63, %s6912_s27 }
 0x305   : > { %6663 = vrot.lane.b32.xlu0 %v7874_v12, %s6912_s27 }
 0x306   : > { %6668 = vrot.lane.b32.xlu1 %v7878_v13, %s6912_s27 }
 0x309   : > { %6673 = vrot.lane.b32.xlu0 %v7889_v18, %s6912_s27 }
 0x30a   : > { %6688 = vrot.lane.b32.xlu1 %v7896_v10, %s6912_s27 }
 0x30d   : > { %6678 = vrot.lane.b32.xlu0 %v7901_v41, %s6912_s27 }
 0x30e   : > { %6693 = vrot.lane.b32.xlu1 %v7906_v44, %s6912_s27 }
 0x311   : > { %6683 = vrot.lane.b32.xlu0 %v7859_v5, %s6913_s28 }
 0x312   : > { %6698 = vrot.lane.b32.xlu1 %v7866_v63, %s6913_s28 }
 0x315   : > { %6703 = vrot.lane.b32.xlu0 %v7874_v12, %s6913_s28 }
 0x316   : > { %6708 = vrot.lane.b32.xlu1 %v7878_v13, %s6913_s28 }
 0x319   : > { %6713 = vrot.lane.b32.xlu0 %v7889_v18, %s6913_s28 }
 0x31a   : > { %6723 = vrot.lane.b32.xlu1 %v7896_v10, %s6913_s28 }
 0x31d   : > { %6718 = vrot.lane.b32.xlu0 %v7901_v41, %s6913_s28 }
 0x31e   : > { %6728 = vrot.lane.b32.xlu1 %v7906_v44, %s6913_s28 }
 0x321   : > { %6733 = vrot.lane.b32.xlu0 %v7859_v5, %s6914_s29 }
 0x322   : > { %6738 = vrot.lane.b32.xlu1 %v7866_v63, %s6914_s29 }
 0x325   : > { %6743 = vrot.lane.b32.xlu0 %v7874_v12, %s6914_s29 }
 0x326   : > { %6748 = vrot.lane.b32.xlu1 %v7878_v13, %s6914_s29 }
 0x329   : > { %6753 = vrot.lane.b32.xlu0 %v7889_v18, %s6914_s29 }
 0x32a   : > { %6768 = vrot.lane.b32.xlu1 %v7896_v10, %s6914_s29 }
 0x32d   : > { %6758 = vrot.lane.b32.xlu0 %v7901_v41, %s6914_s29 }
 0x32e   : > { %6773 = vrot.lane.b32.xlu1 %v7906_v44, %s6914_s29 }
 0x331   : > { %6763 = vrot.lane.b32.xlu0 %v7859_v5, %s6915_s30 }
 0x332   : > { %6778 = vrot.lane.b32.xlu1 %v7866_v63, %s6915_s30 }
 0x335   : > { %6783 = vrot.lane.b32.xlu0 %v7874_v12, %s6915_s30 }
 0x336   : > { %6788 = vrot.lane.b32.xlu1 %v7878_v13, %s6915_s30 }
 0x339   : > { %6793 = vrot.lane.b32.xlu0 %v7889_v18, %s6915_s30 }
 0x33a   : > { %6808 = vrot.lane.b32.xlu1 %v7896_v10, %s6915_s30 }
 0x33d   : > { %6798 = vrot.lane.b32.xlu0 %v7901_v41, %s6915_s30 }
 0x33e   : > { %6813 = vrot.lane.b32.xlu1 %v7906_v44, %s6915_s30 }
 0x341   : > { %6803 = vrot.lane.b32.xlu0 %v7859_v5, %s6916_s11 }
 0x342   : > { %6818 = vrot.lane.b32.xlu1 %v7866_v63, %s6916_s11 }
 0x345   : > { %6823 = vrot.lane.b32.xlu0 %v7874_v12, %s6916_s11 }
 0x346   : > { %6828 = vrot.lane.b32.xlu1 %v7878_v13, %s6916_s11 }
 0x349   : > { %6833 = vrot.lane.b32.xlu0 %v7889_v18, %s6916_s11 }
 0x34a   : > { %6848 = vrot.lane.b32.xlu1 %v7896_v10, %s6916_s11 }
 0x34d   : > { %6838 = vrot.lane.b32.xlu0 %v7901_v41, %s6916_s11 }
 0x34e   : > { %6853 = vrot.lane.b32.xlu1 %v7906_v44, %s6916_s11  ;;  %s5679_s11 = sshll.u32 %s8669_s14, 7 }
 0x34f   : > { %s8616_s16 = scalar_lea.vmem %s8667_s10, %s5679_s11 }
 0x351   : > { %6843 = vrot.lane.b32.xlu0 %v7859_v5, %s6917_s12 }
 0x352   : > { %6858 = vrot.lane.b32.xlu1 %v7866_v63, %s6917_s12 }
 0x353   : > { %v6574_v14 = vpop.permute.xlu0 %6573 }
 0x354   : > { %v6576_v17 = vunpack.i.h.bf16 %v6574_v14  ;;  %v6575_v34 = vunpack.i.l.bf16 %v6574_v14  ;;  %v6584_v46 = vpop.permute.xlu1 %6583 }
 0x355   : > { %v6586_v50 = vunpack.i.h.bf16 %v6584_v46  ;;  %v6585_v51 = vunpack.i.l.bf16 %v6584_v46  ;;  %6863 = vrot.lane.b32.xlu0 %v7874_v12, %s6917_s12 }
 0x356   : > { %6868 = vrot.lane.b32.xlu1 %v7878_v13, %s6917_s12 }
 0x357   : > { %v6579_v53 = vpop.permute.xlu0 %6578  ;;  %v3104_v56 = vsel %vm3095_vm10, %v6575_v34, %v6585_v51  ;;  %v3105_v58 = vsel %vm3095_vm10, %v6576_v17, %v6586_v50 }
 0x358   : > { %v6581_v61 = vunpack.i.h.bf16 %v6579_v53  ;;  %v6580_v5 = vunpack.i.l.bf16 %v6579_v53  ;;  %v6589_v7 = vpop.permute.xlu1 %6588  ;;  %v5824_v8 = vpack.c.bf16 %v3105_v58, %v3104_v56 }
 0x359   : > { %v6591_v63 = vunpack.i.h.bf16 %v6589_v7  ;;  %v6590_v11 = vunpack.i.l.bf16 %v6589_v7  ;;  %6873 = vrot.lane.b32.xlu0 %v7889_v18, %s6917_s12 }
 0x35a   : > { %v3100_v12 = vsel %vm3095_vm10, %v6585_v51, %v6580_v5  ;;  %5825 = vmatprep.subr.bf16.mxu0 %v5824_v8  ;;  %6883 = vrot.lane.b32.xlu1 %v7896_v10, %s6917_s12  ;;  %v3101_v13 = vsel %vm3095_vm10, %v6586_v50, %v6581_v61 }
 0x35b   : > { %v3109_v19 = vsel %vm3095_vm10, %v6591_v63, %v6576_v17  ;;  %v3108_v14 = vsel %vm3095_vm10, %v6590_v11, %v6575_v34  ;;  %v6594_v46 = vpop.permute.xlu0 %6593  ;;  %v3096_v18 = vsel %vm3095_vm10, %v6580_v5, %v6590_v11  ;;  %v3097_v10 = vsel %vm3095_vm10, %v6581_v61, %v6591_v63  ;;  %v5268_v34 = vld [vmem:[%s8665_s8] sm:$0xff]  ;;  %v5269_v61 = vld [vmem:[%s8665_s8 + $0x8] sm:$0xff] }
 0x35c   : > { %v5826_v53 = vpack.c.bf16 %v3109_v19, %v3108_v14  ;;  %v6596_v56 = vunpack.i.h.bf16 %v6594_v46  ;;  %v6595_v51 = vunpack.i.l.bf16 %v6594_v46  ;;  %v6609_v58 = vpop.permute.xlu1 %6608  ;;  %v5832_v17 = vpack.c.bf16 %v3097_v10, %v3096_v18  ;;  %v5270_v18 = vld [vmem:[%s8665_s8 + $0x10] sm:$0xff] }
 0x35d   : > { %v6611_v7 = vunpack.i.h.bf16 %v6609_v58  ;;  %v6610_v8 = vunpack.i.l.bf16 %v6609_v58  ;;  %6878 = vrot.lane.b32.xlu0 %v7901_v41, %s6917_s12  ;;  %v5834_v50 = vpack.c.bf16 %v3101_v13, %v3100_v12 }
 0x35e   : > { %5827 = vmatpush1.bf16.msra.mxu0 %v5826_v53  ;;  %6888 = vrot.lane.b32.xlu1 %v7906_v44, %s6917_s12 }
 0x35f   : > { %5833 = vmatprep.subr.bf16.mxu1 %v5832_v17  ;;  %v6599_v5 = vpop.permute.xlu0 %6598  ;;  %v3106_v63 = vsel %vm3095_vm10, %v6595_v51, %v6610_v8  ;;  %v3107_v41 = vsel %vm3095_vm10, %v6596_v56, %v6611_v7 }
 0x360   : > { %5835 = vmatpush1.bf16.msra.mxu1 %v5834_v50  ;;  %v6601_v11 = vunpack.i.h.bf16 %v6599_v5  ;;  %v6600_v12 = vunpack.i.l.bf16 %v6599_v5  ;;  %v6614_v44 = vpop.permute.xlu1 %6613  ;;  %v5828_v13 = vpack.c.bf16 %v3107_v41, %v3106_v63 }
 0x361   : > { %v6616_v19 = vunpack.i.h.bf16 %v6614_v44  ;;  %v6615_v14 = vunpack.i.l.bf16 %v6614_v44  ;;  %5274 = vperm.xlu0 %6250, %v5268_v34  }
 0x362   : > { %v3102_v46 = vsel %vm3095_vm10, %v6610_v8, %v6600_v12  ;;  %5279 = vperm.xlu1 %6251, %v5269_v61   ;;  %5829 = vmatprep.subr.bf16.mxu0 %v5828_v13  ;;  %v3103_v53 = vsel %vm3095_vm10, %v6611_v7, %v6601_v11  ;;  %v5271_v8 = vld [vmem:[%s8665_s8 + $0x18] sm:$0xff]  ;;  %v5308_v13 = vld [vmem:[%s8666_s9] sm:$0xff] }
 0x363   : > { %v3111_v58 = vsel %vm3095_vm10, %v6616_v19, %v6596_v56  ;;  %v3110_v10 = vsel %vm3095_vm10, %v6615_v14, %v6595_v51  ;;  %v6604_v17 = vpop.permute.xlu0 %6603  ;;  %v3098_v50 = vsel %vm3095_vm10, %v6600_v12, %v6615_v14  ;;  %v3099_v7 = vsel %vm3095_vm10, %v6601_v11, %v6616_v19  ;;  %v5572_v12 = vld [vmem:[%s8664_s7 + $0x20] sm:$0xff]  ;;  %v5309_v11 = vld [vmem:[%s8666_s9 + $0x8] sm:$0xff] }
 0x364   : > { %v5830_v34 = vpack.c.bf16 %v3111_v58, %v3110_v10  ;;  %v6606_v5 = vunpack.i.h.bf16 %v6604_v17  ;;  %v6605_v61 = vunpack.i.l.bf16 %v6604_v17  ;;  %v6619_v63 = vpop.permute.xlu1 %6618  ;;  %v5836_v44 = vpack.c.bf16 %v3099_v7, %v3098_v50 }
 0x365   : > { %v6621_v41 = vunpack.i.h.bf16 %v6619_v63  ;;  %v6620_v56 = vunpack.i.l.bf16 %v6619_v63  ;;  %5284 = vperm.xlu0 %6250, %v5270_v18   ;;  %v5838_v51 = vpack.c.bf16 %v3103_v53, %v3102_v46  ;;  %v5573_v63 = vld [vmem:[%s8664_s7 + $0x28] sm:$0xff] }
 0x366   : > { %5289 = vperm.xlu1 %6251, %v5271_v8   ;;  %5831 = vmatpush1.bf16.msra.mxu0 %v5830_v34  ;;  %v5310_v34 = vld [vmem:[%s8666_s9 + $0x10] sm:$0xff] }
 0x367   : > { %5837 = vmatprep.subr.bf16.mxu1 %v5836_v44  ;;  %v6624_v14 = vpop.permute.xlu0 %6623  ;;  %v3051_v19 = vsel %vm3042_vm11, %v6605_v61, %v6620_v56  ;;  %v3052_v46 = vsel %vm3042_vm11, %v6606_v5, %v6621_v41 }
 0x368   : > { %v6626_v18 = vunpack.i.h.bf16 %v6624_v14  ;;  %v6625_v53 = vunpack.i.l.bf16 %v6624_v14  ;;  %5839 = vmatpush1.bf16.msra.mxu1 %v5838_v51  ;;  %v6629_v58 = vpop.permute.xlu1 %6628  ;;  %v5840_v10 = vpack.c.bf16 %v3052_v46, %v3051_v19 }
 0x369   : > { %v6631_v17 = vunpack.i.h.bf16 %v6629_v58  ;;  %v6630_v8 = vunpack.i.l.bf16 %v6629_v58  ;;  %5314 = vperm.xlu0 %6250, %v5308_v13   ;;  %5576 = vmatmul.mubr.msk.f32.vlgmr.msra.gmra.mrb[16].mxu0 %vm746_vm3, %v5572_v12  ;;  %v5311_v13 = vld [vmem:[%s8666_s9 + $0x18] sm:$0xff] }
 0x36a   : > { %v3047_v50 = vsel %vm3042_vm11, %v6620_v56, %v6625_v53  ;;  %5319 = vperm.xlu1 %6251, %v5309_v11   ;;  %5841 = vmatprep.subr.bf16.mxu0 %v5840_v10  ;;  %v3048_v7 = vsel %vm3042_vm11, %v6621_v41, %v6626_v18  ;;  %v5574_v10 = vld [vmem:[%s8664_s7 + $0x30] sm:$0xff] }
 0x36b   : > { %v3056_v44 = vsel %vm3042_vm11, %v6631_v17, %v6606_v5  ;;  %v3055_v51 = vsel %vm3042_vm11, %v6630_v8, %v6605_v61  ;;  %5580 = vmatmul.mubr.msk.f32.vlgmr.msra.gmra.mrb[16].mxu1 %vm746_vm3, %v5572_v12  ;;  %v6634_v56 = vpop.permute.xlu0 %6633  ;;  %3199 = vmatprep.mubr.f32.mxu0 %v6900_v0  ;;  %v3043_v5 = vsel %vm3042_vm11, %v6625_v53, %v6630_v8 }
 0x36c   : > { %v5842_v14 = vpack.c.bf16 %v3056_v44, %v3055_v51  ;;  %v6636_v11 = vunpack.i.h.bf16 %v6634_v56  ;;  %v6635_v19 = vunpack.i.l.bf16 %v6634_v56  ;;  %v6649_v46 = vpop.permute.xlu1 %6648  ;;  %3288 = vmatprep.mubr.f32.mxu1 %v6900_v0  ;;  %v3044_v12 = vsel %vm3042_vm11, %v6626_v18, %v6631_v17 }
 0x36d   : > { %v6651_v41 = vunpack.i.h.bf16 %v6649_v46  ;;  %v6650_v61 = vunpack.i.l.bf16 %v6649_v46  ;;  %5324 = vperm.xlu0 %6250, %v5310_v34   ;;  %5577 = vmatmul.mubr.msk.f32.gmra.mrb[18].mxu0 %vm746_vm3, %v5573_v63  ;;  %v5848_v58 = vpack.c.bf16 %v3044_v12, %v3043_v5  ;;  %v5850_v44 = vpack.c.bf16 %v3048_v7, %v3047_v50 }
 0x36e   : > { %5329 = vperm.xlu1 %6251, %v5311_v13   ;;  %5843 = vmatpush1.bf16.msra.mxu0 %v5842_v14  ;;  %v5575_v13 = vld [vmem:[%s8664_s7 + $0x38] sm:$0xff] }
 0x36f   : > { %5581 = vmatmul.mubr.msk.f32.gmra.mrb[18].mxu1 %vm746_vm3, %v5573_v63  ;;  %v6639_v51 = vpop.permute.xlu0 %6638  ;;  %3205 = vmatprep.mubr.f32.mxu0 %v6900_v0  ;;  %v3053_v53 = vsel %vm3042_vm11, %v6635_v19, %v6650_v61  ;;  %v3054_v8 = vsel %vm3042_vm11, %v6636_v11, %v6651_v41 }
 0x370   : > { %5849 = vmatprep.subr.bf16.mxu1 %v5848_v58  ;;  %v6641_v18 = vunpack.i.h.bf16 %v6639_v51  ;;  %v6640_v17 = vunpack.i.l.bf16 %v6639_v51  ;;  %v6654_v34 = vpop.permute.xlu1 %6653  ;;  %3294 = vmatprep.mubr.f32.mxu1 %v6900_v0  ;;  %v5844_v56 = vpack.c.bf16 %v3054_v8, %v3053_v53 }
 0x371   : > { %5851 = vmatpush1.bf16.msra.mxu1 %v5850_v44  ;;  %v6656_v50 = vunpack.i.h.bf16 %v6654_v34  ;;  %v6655_v7 = vunpack.i.l.bf16 %v6654_v34  ;;  %5578 = vmatmul.mubr.msk.f32.gmra.mrb[20].mxu0 %vm746_vm3, %v5574_v10 }
 0x372   : > { %v3049_v63 = vsel %vm3042_vm11, %v6650_v61, %v6640_v17  ;;  %5845 = vmatprep.subr.bf16.mxu0 %v5844_v56  ;;  %3211 = vmatprep.mubr.f32.mxu0 %v6900_v0  ;;  %v3050_v14 = vsel %vm3042_vm11, %v6651_v41, %v6641_v18 }
 0x373   : > { %v3058_v46 = vsel %vm3042_vm11, %v6656_v50, %v6636_v11  ;;  %v3057_v5 = vsel %vm3042_vm11, %v6655_v7, %v6635_v19  ;;  %5582 = vmatmul.mubr.msk.f32.gmra.mrb[20].mxu1 %vm746_vm3, %v5574_v10  ;;  %v6644_v61 = vpop.permute.xlu0 %6643  ;;  %v3045_v12 = vsel %vm3042_vm11, %v6640_v17, %v6655_v7  ;;  %v3046_v41 = vsel %vm3042_vm11, %v6641_v18, %v6656_v50  ;;  %v3059_v10 = vld [vmem:[%s8664_s7] sm:$0xff] }
 0x374   : > { %v5846_v58 = vpack.c.bf16 %v3058_v46, %v3057_v5  ;;  %v6646_v44 = vunpack.i.h.bf16 %v6644_v61  ;;  %v6645_v51 = vunpack.i.l.bf16 %v6644_v61  ;;  %v6659_v53 = vpop.permute.xlu1 %6658  ;;  %3300 = vmatprep.mubr.f32.mxu1 %v6900_v0  ;;  %v5852_v19 = vpack.c.bf16 %v3046_v41, %v3045_v12  ;;  %v3060_v61 = vld [vmem:[%s8664_s7 + $0x8] sm:$0xff] }
 0x375   : > { %v6661_v8 = vunpack.i.h.bf16 %v6659_v53  ;;  %v6660_v11 = vunpack.i.l.bf16 %v6659_v53  ;;  %5579 = vmatmul.mubr.msk.f32.gmra.mrb[22].mxu0 %vm746_vm3, %v5575_v13  ;;  %v5854_v34 = vpack.c.bf16 %v3050_v14, %v3049_v63 }
 0x376   : > { %5847 = vmatpush1.bf16.msra.mxu0 %v5846_v58  ;;  %3383 = vmatprep.mubr.f32.mxu0 %v6900_v0 }
 0x377   : > { %5583 = vmatmul.mubr.msk.f32.gmra.mrb[22].mxu1 %vm746_vm3, %v5575_v13  ;;  %5853 = vmatprep.subr.bf16.mxu1 %v5852_v19  ;;  %v6664_v17 = vpop.permute.xlu0 %6663  ;;  %v3538_v18 = vsel %vm3529_vm12, %v6645_v51, %v6660_v11  ;;  %v3539_v56 = vsel %vm3529_vm12, %v6646_v44, %v6661_v8 }
 0x378   : > { %v6666_v50 = vunpack.i.h.bf16 %v6664_v17  ;;  %v6665_v7 = vunpack.i.l.bf16 %v6664_v17  ;;  %5855 = vmatpush1.bf16.msra.mxu1 %v5854_v34  ;;  %v6669_v63 = vpop.permute.xlu1 %6668  ;;  %3472 = vmatprep.mubr.f32.mxu1 %v6900_v0  ;;  %v5856_v14 = vpack.c.bf16 %v3539_v56, %v3538_v18 }
 0x379   : > { %v6671_v46 = vunpack.i.h.bf16 %v6669_v63  ;;  %v6670_v5 = vunpack.i.l.bf16 %v6669_v63  ;;  %5584 = vmatmul.mubr.msk.f32.vlgmr.msra.gmra.mrb[16].mxu0 %vm746_vm3, %v3059_v10 }
 0x37a   : > { %v3534_v13 = vsel %vm3529_vm12, %v6660_v11, %v6665_v7  ;;  %5857 = vmatprep.subr.bf16.mxu0 %v5856_v14  ;;  %3389 = vmatprep.mubr.f32.mxu0 %v6900_v0  ;;  %v3535_v12 = vsel %vm3529_vm12, %v6661_v8, %v6666_v50 }
 0x37b   : > { %v3543_v58 = vsel %vm3529_vm12, %v6671_v46, %v6646_v44  ;;  %v3542_v53 = vsel %vm3529_vm12, %v6670_v5, %v6645_v51  ;;  %5588 = vmatmul.mubr.msk.f32.vlgmr.msra.gmra.mrb[16].mxu1 %vm746_vm3, %v3059_v10  ;;  %v6674_v41 = vpop.permute.xlu0 %6673  ;;  %v3530_v11 = vsel %vm3529_vm12, %v6665_v7, %v6670_v5  ;;  %v3531_v8 = vsel %vm3529_vm12, %v6666_v50, %v6671_v46  ;;  %v3061_v10 = vld [vmem:[%s8664_s7 + $0x10] sm:$0xff] }
 0x37c   : > { %v5858_v19 = vpack.c.bf16 %v3543_v58, %v3542_v53  ;;  %v6676_v34 = vunpack.i.h.bf16 %v6674_v41  ;;  %v6675_v17 = vunpack.i.l.bf16 %v6674_v41  ;;  %v6689_v18 = vpop.permute.xlu1 %6688  ;;  %3478 = vmatprep.mubr.f32.mxu1 %v6900_v0  ;;  %v5864_v51 = vpack.c.bf16 %v3531_v8, %v3530_v11  ;;  %v3062_v41 = vld [vmem:[%s8664_s7 + $0x18] sm:$0xff] }
 0x37d   : > { %v6691_v56 = vunpack.i.h.bf16 %v6689_v18  ;;  %v6690_v44 = vunpack.i.l.bf16 %v6689_v18  ;;  %5585 = vmatmul.mubr.msk.f32.gmra.mrb[18].mxu0 %vm746_vm3, %v3060_v61  ;;  %v5866_v63 = vpack.c.bf16 %v3535_v12, %v3534_v13 }
 0x37e   : > { %5859 = vmatpush1.bf16.msra.mxu0 %v5858_v19  ;;  %3395 = vmatprep.mubr.f32.mxu0 %v6900_v0 }
 0x37f   : > { %5589 = vmatmul.mubr.msk.f32.gmra.mrb[18].mxu1 %vm746_vm3, %v3060_v61  ;;  %5865 = vmatprep.subr.bf16.mxu1 %v5864_v51  ;;  %v6679_v7 = vpop.permute.xlu0 %6678  ;;  %v3540_v50 = vsel %vm3529_vm12, %v6675_v17, %v6690_v44  ;;  %v3541_v14 = vsel %vm3529_vm12, %v6676_v34, %v6691_v56 }
 0x380   : > { %v6681_v46 = vunpack.i.h.bf16 %v6679_v7  ;;  %v6680_v5 = vunpack.i.l.bf16 %v6679_v7  ;;  %5867 = vmatpush1.bf16.msra.mxu1 %v5866_v63  ;;  %v6694_v13 = vpop.permute.xlu1 %6693  ;;  %3484 = vmatprep.mubr.f32.mxu1 %v6900_v0  ;;  %v5860_v12 = vpack.c.bf16 %v3541_v14, %v3540_v50 }
 0x381   : > { %v6696_v58 = vunpack.i.h.bf16 %v6694_v13  ;;  %v6695_v53 = vunpack.i.l.bf16 %v6694_v13  ;;  %5586 = vmatmul.mubr.msk.f32.gmra.mrb[20].mxu0 %vm746_vm3, %v3061_v10 }
 0x382   : > { %v3536_v61 = vsel %vm3529_vm12, %v6690_v44, %v6680_v5  ;;  %5861 = vmatprep.subr.bf16.mxu0 %v5860_v12  ;;  %3401 = vmatprep.mubr.f32.mxu0 %v6900_v0  ;;  %v3537_v11 = vsel %vm3529_vm12, %v6691_v56, %v6681_v46 }
 0x383   : > { %v3545_v19 = vsel %vm3529_vm12, %v6696_v58, %v6676_v34  ;;  %v3544_v18 = vsel %vm3529_vm12, %v6695_v53, %v6675_v17  ;;  %5590 = vmatmul.mubr.msk.f32.gmra.mrb[20].mxu1 %vm746_vm3, %v3061_v10  ;;  %v6684_v8 = vpop.permute.xlu0 %6683  ;;  %v3532_v44 = vsel %vm3529_vm12, %v6680_v5, %v6695_v53  ;;  %v3533_v56 = vsel %vm3529_vm12, %v6681_v46, %v6696_v58  ;;  %v5592_v10 = vld [vmem:[%s8664_s7 + $0x40] sm:$0xff] }
 0x384   : > { %v5862_v51 = vpack.c.bf16 %v3545_v19, %v3544_v18  ;;  %v6686_v63 = vunpack.i.h.bf16 %v6684_v8  ;;  %v6685_v7 = vunpack.i.l.bf16 %v6684_v8  ;;  %v6699_v50 = vpop.permute.xlu1 %6698  ;;  %3490 = vmatprep.mubr.f32.mxu1 %v6900_v0  ;;  %v5868_v17 = vpack.c.bf16 %v3533_v56, %v3532_v44  ;;  %v5593_v8 = vld [vmem:[%s8664_s7 + $0x48] sm:$0xff] }
 0x385   : > { %v6701_v14 = vunpack.i.h.bf16 %v6699_v50  ;;  %v6700_v34 = vunpack.i.l.bf16 %v6699_v50  ;;  %5587 = vmatmul.mubr.msk.f32.gmra.mrb[22].mxu0 %vm746_vm3, %v3062_v41  ;;  %v5870_v13 = vpack.c.bf16 %v3537_v11, %v3536_v61 }
 0x386   : > { %5863 = vmatpush1.bf16.msra.mxu0 %v5862_v51  ;;  %3627 = vmatprep.mubr.f32.mxu0 %v6900_v0 }
 0x387   : > { %5591 = vmatmul.mubr.msk.f32.gmra.mrb[22].mxu1 %vm746_vm3, %v3062_v41  ;;  %5869 = vmatprep.subr.bf16.mxu1 %v5868_v17  ;;  %v6704_v5 = vpop.permute.xlu0 %6703  ;;  %v3798_v46 = vsel %vm3789_vm13, %v6685_v7, %v6700_v34  ;;  %v3799_v12 = vsel %vm3789_vm13, %v6686_v63, %v6701_v14 }
 0x388   : > { %v6706_v58 = vunpack.i.h.bf16 %v6704_v5  ;;  %v6705_v53 = vunpack.i.l.bf16 %v6704_v5  ;;  %5871 = vmatpush1.bf16.msra.mxu1 %v5870_v13  ;;  %v6709_v61 = vpop.permute.xlu1 %6708  ;;  %3716 = vmatprep.mubr.f32.mxu1 %v6900_v0  ;;  %v5872_v11 = vpack.c.bf16 %v3799_v12, %v3798_v46 }
 0x389   : > { %v6711_v19 = vunpack.i.h.bf16 %v6709_v61  ;;  %v6710_v18 = vunpack.i.l.bf16 %v6709_v61  ;;  %5596 = vmatmul.mubr.msk.f32.vlgmr.msra.gmra.mrb[16].mxu0 %vm746_vm3, %v5592_v10 }
 0x38a   : > { %v3794_v41 = vsel %vm3789_vm13, %v6700_v34, %v6705_v53  ;;  %5873 = vmatprep.subr.bf16.mxu0 %v5872_v11  ;;  %3633 = vmatprep.mubr.f32.mxu0 %v6900_v0  ;;  %v3795_v44 = vsel %vm3789_vm13, %v6701_v14, %v6706_v58 }
 0x38b   : > { %v3803_v51 = vsel %vm3789_vm13, %v6711_v19, %v6686_v63  ;;  %v3802_v50 = vsel %vm3789_vm13, %v6710_v18, %v6685_v7  ;;  %5600 = vmatmul.mubr.msk.f32.vlgmr.msra.gmra.mrb[16].mxu1 %vm746_vm3, %v5592_v10  ;;  %v6714_v56 = vpop.permute.xlu0 %6713  ;;  %v3790_v34 = vsel %vm3789_vm13, %v6705_v53, %v6710_v18  ;;  %v3791_v14 = vsel %vm3789_vm13, %v6706_v58, %v6711_v19  ;;  %v5594_v10 = vld [vmem:[%s8664_s7 + $0x50] sm:$0xff] }
 0x38c   : > { %v5874_v17 = vpack.c.bf16 %v3803_v51, %v3802_v50  ;;  %v6716_v13 = vunpack.i.h.bf16 %v6714_v56  ;;  %v6715_v5 = vunpack.i.l.bf16 %v6714_v56  ;;  %v6724_v46 = vpop.permute.xlu1 %6723  ;;  %3722 = vmatprep.mubr.f32.mxu1 %v6900_v0  ;;  %v5880_v7 = vpack.c.bf16 %v3791_v14, %v3790_v34  ;;  %v5595_v56 = vld [vmem:[%s8664_s7 + $0x58] sm:$0xff] }
 0x38d   : > { %v6726_v12 = vunpack.i.h.bf16 %v6724_v46  ;;  %v6725_v63 = vunpack.i.l.bf16 %v6724_v46  ;;  %5597 = vmatmul.mubr.msk.f32.gmra.mrb[18].mxu0 %vm746_vm3, %v5593_v8  ;;  %v5882_v61 = vpack.c.bf16 %v3795_v44, %v3794_v41 }
 0x38e   : > { %5875 = vmatpush1.bf16.msra.mxu0 %v5874_v17  ;;  %3639 = vmatprep.mubr.f32.mxu0 %v6900_v0 }
 0x38f   : > { %5601 = vmatmul.mubr.msk.f32.gmra.mrb[18].mxu1 %vm746_vm3, %v5593_v8  ;;  %5881 = vmatprep.subr.bf16.mxu1 %v5880_v7  ;;  %v6719_v53 = vpop.permute.xlu0 %6718  ;;  %v3800_v58 = vsel %vm3789_vm13, %v6715_v5, %v6725_v63  ;;  %v3801_v11 = vsel %vm3789_vm13, %v6716_v13, %v6726_v12 }
 0x390   : > { %v6721_v19 = vunpack.i.h.bf16 %v6719_v53  ;;  %v6720_v18 = vunpack.i.l.bf16 %v6719_v53  ;;  %5883 = vmatpush1.bf16.msra.mxu1 %v5882_v61  ;;  %v6729_v41 = vpop.permute.xlu1 %6728  ;;  %3728 = vmatprep.mubr.f32.mxu1 %v6900_v0  ;;  %v5876_v44 = vpack.c.bf16 %v3801_v11, %v3800_v58 }
 0x391   : > { %v6731_v51 = vunpack.i.h.bf16 %v6729_v41  ;;  %v6730_v50 = vunpack.i.l.bf16 %v6729_v41  ;;  %5598 = vmatmul.mubr.msk.f32.gmra.mrb[20].mxu0 %vm746_vm3, %v5594_v10 }
 0x392   : > { %v3796_v8 = vsel %vm3789_vm13, %v6725_v63, %v6720_v18  ;;  %5877 = vmatprep.subr.bf16.mxu0 %v5876_v44  ;;  %3645 = vmatprep.mubr.f32.mxu0 %v6900_v0  ;;  %v3797_v34 = vsel %vm3789_vm13, %v6726_v12, %v6721_v19 }
 0x393   : > { %v3805_v17 = vsel %vm3789_vm13, %v6731_v51, %v6716_v13  ;;  %v3804_v46 = vsel %vm3789_vm13, %v6730_v50, %v6715_v5  ;;  %5602 = vmatmul.mubr.msk.f32.gmra.mrb[20].mxu1 %vm746_vm3, %v5594_v10  ;;  %v6734_v14 = vpop.permute.xlu0 %6733  ;;  %v3792_v63 = vsel %vm3789_vm13, %v6720_v18, %v6730_v50  ;;  %v3793_v53 = vsel %vm3789_vm13, %v6721_v19, %v6731_v51  ;;  %v5604_v5 = vld [vmem:[%s8664_s7 + $0x60] sm:$0xff] }
 0x394   : > { %v5878_v7 = vpack.c.bf16 %v3805_v17, %v3804_v46  ;;  %v6739_v61 = vpop.permute.xlu1 %6738  ;;  %3734 = vmatprep.mubr.f32.mxu1 %v6900_v0  ;;  %v5884_v12 = vpack.c.bf16 %v3793_v53, %v3792_v63  ;;  %v5886_v13 = vpack.c.bf16 %v3797_v34, %v3796_v8  ;;  %v6735_v50 = vunpack.i.l.bf16 %v6734_v14 }
 0x395   : > { %5599 = vmatmul.mubr.msk.f32.gmra.mrb[22].mxu0 %vm746_vm3, %v5595_v56  ;;  %v6741_v58 = vunpack.i.h.bf16 %v6739_v61  ;;  %v6740_v11 = vunpack.i.l.bf16 %v6739_v61  ;;  %v6736_v29 = vunpack.i.h.bf16 %v6734_v14  ;;  %v5616_v14 = vld [vmem:[%s8664_s7 + $0x80] sm:$0xff] }
 0x396   : > { %5879 = vmatpush1.bf16.msra.mxu0 %v5878_v7  ;;  %3887 = vmatprep.mubr.f32.mxu0 %v6900_v0 }
 0x397   : > { %5603 = vmatmul.mubr.msk.f32.gmra.mrb[22].mxu1 %vm746_vm3, %v5595_v56  ;;  %5885 = vmatprep.subr.bf16.mxu1 %v5884_v12  ;;  %v6744_v10 = vpop.permute.xlu0 %6743  ;;  %v4270_v23 = vsel %vm4260_vm14, %v6736_v29, %v6741_v58  ;;  %v4269_v38 = vsel %vm4260_vm14, %v6735_v50, %v6740_v11 }
 0x398   : > { %v6746_v18 = vunpack.i.h.bf16 %v6744_v10  ;;  %v6745_v41 = vunpack.i.l.bf16 %v6744_v10  ;;  %5887 = vmatpush1.bf16.msra.mxu1 %v5886_v13  ;;  %5889 = vmatprep.subr.bf16.mxu0 %v5888_v45  ;;  %v6749_v19 = vpop.permute.xlu1 %6748  ;;  %v5906_v46 = vpack.c.bf16 %v4270_v23, %v4269_v38 }
 0x399   : > { %v6751_v44 = vunpack.i.h.bf16 %v6749_v19  ;;  %v6750_v51 = vunpack.i.l.bf16 %v6749_v19  ;;  %5897 = vmatprep.subr.bf16.mxu1 %v5896_v22  ;;  %5608 = vmatmul.mubr.msk.f32.vlgmr.msra.gmra.mrb[16].mxu0 %vm746_vm3, %v5604_v5 }
 0x39a   : > { %3976 = vmatprep.mubr.f32.mxu1 %v6900_v0  ;;  %5891 = vmatpush1.bf16.msra.mxu0 %v5890_v24  ;;  %v4265_v15 = vsel %vm4260_vm14, %v6740_v11, %v6745_v41  ;;  %v4266_v1 = vsel %vm4260_vm14, %v6741_v58, %v6746_v18 }
 0x39b   : > { %5612 = vmatmul.mubr.msk.f32.vlgmr.msra.gmra.mrb[16].mxu1 %vm746_vm3, %v5604_v5  ;;  %v6754_v45 = vpop.permute.xlu0 %6753  ;;  %5893 = vmatprep.subr.bf16.mxu0 %v5892_v26  ;;  %v4273_v9 = vsel %vm4260_vm14, %v6750_v51, %v6735_v50  ;;  %v5904_v22 = vpack.c.bf16 %v4266_v1, %v4265_v15  ;;  %v4274_v49 = vsel %vm4260_vm14, %v6751_v44, %v6736_v29  ;;  %v5617_v1 = vld [vmem:[%s8664_s7 + $0x88] sm:$0xff] }
 0x39c   : > { %5899 = vmatpush1.bf16.msra.mxu1 %v5898_v39  ;;  %v6769_v47 = vpop.permute.xlu1 %6768  ;;  %3893 = vmatprep.mubr.f32.mxu0 %v6900_v0  ;;  %v5912_v6 = vpack.c.bf16 %v4274_v49, %v4273_v9  ;;  %v6756_v35 = vunpack.i.h.bf16 %v6754_v45  ;;  %v4261_v8 = vsel %vm4260_vm14, %v6745_v41, %v6750_v51  ;;  %v6755_v17 = vunpack.i.l.bf16 %v6754_v45 }
 0x39d   : > { %5901 = vmatprep.subr.bf16.mxu1 %v5900_v32  ;;  %5609 = vmatmul.mubr.msk.f32.gmra.mrb[18].mxu0 %vm746_vm3, %v5605_v43  ;;  %v6771_v26 = vunpack.i.h.bf16 %v6769_v47  ;;  %v6770_v56 = vunpack.i.l.bf16 %v6769_v47 }
 0x39e   : > { %3982 = vmatprep.mubr.f32.mxu1 %v6900_v0  ;;  %5895 = vmatpush1.bf16.msra.mxu0 %v5894_v42 }
 0x39f   : > { %5613 = vmatmul.mubr.msk.f32.gmra.mrb[18].mxu1 %vm746_vm3, %v5605_v43  ;;  %v6759_v21 = vpop.permute.xlu0 %6758  ;;  %5905 = vmatprep.subr.bf16.mxu0 %v5904_v22  ;;  %v4272_v53 = vsel %vm4260_vm14, %v6756_v35, %v6771_v26  ;;  %v4271_v19 = vsel %vm4260_vm14, %v6755_v17, %v6770_v56 }
 0x3a0   : > { %5903 = vmatpush1.bf16.msra.mxu1 %v5902_v48  ;;  %v6774_v16 = vpop.permute.xlu1 %6773  ;;  %3899 = vmatprep.mubr.f32.mxu0 %v6900_v0  ;;  %v6761_v20 = vunpack.i.h.bf16 %v6759_v21  ;;  %v6760_v24 = vunpack.i.l.bf16 %v6759_v21  ;;  %v4262_v48 = vsel %vm4260_vm14, %v6746_v18, %v6751_v44  ;;  %v5910_v21 = vpack.c.bf16 %v4272_v53, %v4271_v19 }
 0x3a1   : > { %5913 = vmatprep.subr.bf16.mxu1 %v5912_v6  ;;  %5610 = vmatmul.mubr.msk.f32.gmra.mrb[20].mxu0 %vm746_vm3, %v5606_v52  ;;  %v6776_v39 = vunpack.i.h.bf16 %v6774_v16  ;;  %v6775_v32 = vunpack.i.l.bf16 %v6774_v16  ;;  %v5914_v61 = vpack.c.bf16 %v4262_v48, %v4261_v8  ;;  %v5619_v48 = vld [vmem:[%s8664_s7 + $0x98] sm:$0xff] }
 0x3a2   : > { %3988 = vmatprep.mubr.f32.mxu1 %v6900_v0  ;;  %3905 = vmatprep.mubr.f32.mxu0 %v6900_v0  ;;  %v4267_v63 = vsel %vm4260_vm14, %v6770_v56, %v6760_v24  ;;  %v4268_v7 = vsel %vm4260_vm14, %v6771_v26, %v6761_v20 }
 0x3a3   : > { %5614 = vmatmul.mubr.msk.f32.gmra.mrb[20].mxu1 %vm746_vm3, %v5606_v52  ;;  %v8292_v42 = vpop.permute.xlu0 %6763  ;;  %v4275_v13 = vsel %vm4260_vm14, %v6775_v32, %v6755_v17  ;;  %v4276_v5 = vsel %vm4260_vm14, %v6776_v39, %v6756_v35  ;;  %v5908_v50 = vpack.c.bf16 %v4268_v7, %v4267_v63  ;;  %v4264_v43 = vsel %vm4260_vm14, %v6761_v20, %v6776_v39 }
 0x3a4   : > { %v8298_v34 = vpop.permute.xlu1 %6778  ;;  %3994 = vmatprep.mubr.f32.mxu1 %v6900_v0  ;;  %v6765_v15 = vunpack.i.l.bf16 %v8292_v42  ;;  %v4263_v47 = vsel %vm4260_vm14, %v6760_v24, %v6775_v32  ;;  %v6766_v9 = vunpack.i.h.bf16 %v8292_v42  ;;  %v5916_v49 = vpack.c.bf16 %v4276_v5, %v4275_v13  ;;  %v5618_v24 = vld [vmem:[%s8664_s7 + $0x90] sm:$0xff]  ;;  %v5628_v13 = vld [vmem:[%s8664_s7 + $0xa0] sm:$0xff] }
 0x3a5   : > { %5611 = vmatmul.mubr.msk.f32.gmra.mrb[22].mxu0 %vm746_vm3, %v5607_v57  ;;  %v6781_v10 = vunpack.i.h.bf16 %v8298_v34  ;;  %v6780_v58 = vunpack.i.l.bf16 %v8298_v34  ;;  %v5918_v38 = vpack.c.bf16 %v4264_v43, %v4263_v47 }
 0x3a6   : > { %4098 = vmatprep.mubr.f32.mxu0 %v6900_v0 }
 0x3a7   : > { %5615 = vmatmul.mubr.msk.f32.gmra.mrb[22].mxu1 %vm746_vm3, %v5607_v57  ;;  %v8314_v12 = vpop.permute.xlu0 %6783  ;;  %v4530_v26 = vsel %vm4520_vm15, %v6766_v9, %v6781_v10  ;;  %v4529_v39 = vsel %vm4520_vm15, %v6765_v15, %v6780_v58 }
 0x3a8   : > { %v6786_v11 = vunpack.i.h.bf16 %v8314_v12  ;;  %v6785_v18 = vunpack.i.l.bf16 %v8314_v12  ;;  %v6789_v41 = vpop.permute.xlu1 %6788  ;;  %4187 = vmatprep.mubr.f32.mxu1 %v6900_v0  ;;  %v5922_v12 = vpack.c.bf16 %v4530_v26, %v4529_v39 }
 0x3a9   : > { %v6791_v44 = vunpack.i.h.bf16 %v6789_v41  ;;  %v6790_v51 = vunpack.i.l.bf16 %v6789_v41  ;;  %5620 = vmatmul.mubr.msk.f32.vlgmr.msra.gmra.mrb[16].mxu0 %vm746_vm3, %v5616_v14 }
 0x3aa   : > { %5907 = vmatpush1.bf16.msra.mxu0 %v5906_v46  ;;  %4104 = vmatprep.mubr.f32.mxu0 %v6900_v0  ;;  %v4525_v29 = vsel %vm4520_vm15, %v6780_v58, %v6785_v18  ;;  %v4526_v45 = vsel %vm4520_vm15, %v6781_v10, %v6786_v11 }
 0x3ab   : > { %5624 = vmatmul.mubr.msk.f32.vlgmr.msra.gmra.mrb[16].mxu1 %vm746_vm3, %v5616_v14  ;;  %5909 = vmatprep.subr.bf16.mxu0 %v5908_v50  ;;  %v8343_v22 = vpop.permute.xlu0 %6793  ;;  %v5920_v52 = vpack.c.bf16 %v4526_v45, %v4525_v29  ;;  %v4533_v16 = vsel %vm4520_vm15, %v6790_v51, %v6765_v15  ;;  %v4534_v23 = vsel %vm4520_vm15, %v6791_v44, %v6766_v9 }
 0x3ac   : > { %5915 = vmatpush1.bf16.msra.mxu1 %v5914_v61  ;;  %v6809_v6 = vpop.permute.xlu1 %6808  ;;  %4193 = vmatprep.mubr.f32.mxu1 %v6900_v0  ;;  %v5928_v20 = vpack.c.bf16 %v4534_v23, %v4533_v16  ;;  %v6796_v8 = vunpack.i.h.bf16 %v8343_v22  ;;  %v4522_v14 = vsel %vm4520_vm15, %v6786_v11, %v6791_v44  ;;  %v4521_v63 = vsel %vm4520_vm15, %v6785_v18, %v6790_v51 }
 0x3ad   : > { %5917 = vmatprep.subr.bf16.mxu1 %v5916_v49  ;;  %5621 = vmatmul.mubr.msk.f32.gmra.mrb[18].mxu0 %vm746_vm3, %v5617_v1  ;;  %v6811_v56 = vunpack.i.h.bf16 %v6809_v6  ;;  %v6810_v7 = vunpack.i.l.bf16 %v6809_v6  ;;  %v6795_v53 = vunpack.i.l.bf16 %v8343_v22  ;;  %v5930_v58 = vpack.c.bf16 %v4522_v14, %v4521_v63  ;;  %v5629_v49 = vld [vmem:[%s8664_s7 + $0xa8] sm:$0xff]  ;;  %v5631_v14 = vld [vmem:[%s8664_s7 + $0xb8] sm:$0xff] }
 0x3ae   : > { %5911 = vmatpush1.bf16.msra.mxu0 %v5910_v21  ;;  %4110 = vmatprep.mubr.f32.mxu0 %v6900_v0 }
 0x3af   : > { %5625 = vmatmul.mubr.msk.f32.gmra.mrb[18].mxu1 %vm746_vm3, %v5617_v1  ;;  %5921 = vmatprep.subr.bf16.mxu0 %v5920_v52  ;;  %v6799_v57 = vpop.permute.xlu0 %6798  ;;  %v4532_v11 = vsel %vm4520_vm15, %v6796_v8, %v6811_v56  ;;  %v4531_v1 = vsel %vm4520_vm15, %v6795_v53, %v6810_v7 }
 0x3b0   : > { %5919 = vmatpush1.bf16.msra.mxu1 %v5918_v38  ;;  %v6814_v35 = vpop.permute.xlu1 %6813  ;;  %4199 = vmatprep.mubr.f32.mxu1 %v6900_v0  ;;  %v6801_v32 = vunpack.i.h.bf16 %v6799_v57  ;;  %v6800_v42 = vunpack.i.l.bf16 %v6799_v57 }
 0x3b1   : > { %5929 = vmatprep.subr.bf16.mxu1 %v5928_v20  ;;  %5622 = vmatmul.mubr.msk.f32.gmra.mrb[20].mxu0 %vm746_vm3, %v5618_v24  ;;  %v6816_v34 = vunpack.i.h.bf16 %v6814_v35  ;;  %v6815_v17 = vunpack.i.l.bf16 %v6814_v35 }
 0x3b2   : > { %4116 = vmatprep.mubr.f32.mxu0 %v6900_v0  ;;  %v4527_v5 = vsel %vm4520_vm15, %v6810_v7, %v6800_v42  ;;  %v4528_v10 = vsel %vm4520_vm15, %v6811_v56, %v6801_v32 }
 0x3b3   : > { %5626 = vmatmul.mubr.msk.f32.gmra.mrb[20].mxu1 %vm746_vm3, %v5618_v24  ;;  %v8368_v46 = vpop.permute.xlu0 %6803  ;;  %v4535_v41 = vsel %vm4520_vm15, %v6815_v17, %v6795_v53  ;;  %v4536_v19 = vsel %vm4520_vm15, %v6816_v34, %v6796_v8  ;;  %v5924_v47 = vpack.c.bf16 %v4528_v10, %v4527_v5  ;;  %v4524_v9 = vsel %vm4520_vm15, %v6801_v32, %v6816_v34 }
 0x3b4   : > { %v8374_v61 = vpop.permute.xlu1 %6818  ;;  %4205 = vmatprep.mubr.f32.mxu1 %v6900_v0  ;;  %v6805_v22 = vunpack.i.l.bf16 %v8368_v46  ;;  %v4523_v6 = vsel %vm4520_vm15, %v6800_v42, %v6815_v17  ;;  %v6806_v16 = vunpack.i.h.bf16 %v8368_v46  ;;  %v5932_v38 = vpack.c.bf16 %v4536_v19, %v4535_v41  ;;  %v5630_v42 = vld [vmem:[%s8664_s7 + $0xb0] sm:$0xff]  ;;  %v5640_v41 = vld [vmem:[%s8664_s7 + $0xc0] sm:$0xff] }
 0x3b5   : > { %5623 = vmatmul.mubr.msk.f32.gmra.mrb[22].mxu0 %vm746_vm3, %v5619_v48  ;;  %v6821_v44 = vunpack.i.h.bf16 %v8374_v61  ;;  %v6820_v51 = vunpack.i.l.bf16 %v8374_v61  ;;  %v5926_v24 = vpack.c.bf16 %v4532_v11, %v4531_v1  ;;  %v5934_v39 = vpack.c.bf16 %v4524_v9, %v4523_v6 }
 0x3b6   : > { %4358 = vmatprep.mubr.f32.mxu0 %v6900_v0 }
 0x3b7   : > { %5627 = vmatmul.mubr.msk.f32.gmra.mrb[22].mxu1 %vm746_vm3, %v5619_v48  ;;  %v8391_v18 = vpop.permute.xlu0 %6823  ;;  %v4790_v56 = vsel %vm4780_vm0, %v6806_v16, %v6821_v44  ;;  %v4789_v34 = vsel %vm4780_vm0, %v6805_v22, %v6820_v51 }
 0x3b8   : > { %v6826_v50 = vunpack.i.h.bf16 %v8391_v18  ;;  %v6825_v43 = vunpack.i.l.bf16 %v8391_v18  ;;  %v6829_v15 = vpop.permute.xlu1 %6828  ;;  %4447 = vmatprep.mubr.f32.mxu1 %v6900_v0  ;;  %v5938_v18 = vpack.c.bf16 %v4790_v56, %v4789_v34 }
 0x3b9   : > { %v6831_v29 = vunpack.i.h.bf16 %v6829_v15  ;;  %v6830_v45 = vunpack.i.l.bf16 %v6829_v15  ;;  %5632 = vmatmul.mubr.msk.f32.vlgmr.msra.gmra.mrb[16].mxu0 %vm746_vm3, %v5628_v13 }
 0x3ba   : > { %5923 = vmatpush1.bf16.msra.mxu0 %v5922_v12  ;;  %4364 = vmatprep.mubr.f32.mxu0 %v6900_v0  ;;  %v4785_v52 = vsel %vm4780_vm0, %v6820_v51, %v6825_v43  ;;  %v4786_v21 = vsel %vm4780_vm0, %v6821_v44, %v6826_v50 }
 0x3bb   : > { %5636 = vmatmul.mubr.msk.f32.vlgmr.msra.gmra.mrb[16].mxu1 %vm746_vm3, %v5628_v13  ;;  %5925 = vmatprep.subr.bf16.mxu0 %v5924_v47  ;;  %v8420_v23 = vpop.permute.xlu0 %6833  ;;  %v5936_v20 = vpack.c.bf16 %v4786_v21, %v4785_v52  ;;  %v4793_v35 = vsel %vm4780_vm0, %v6830_v45, %v6805_v22  ;;  %v4794_v26 = vsel %vm4780_vm0, %v6831_v29, %v6806_v16 }
 0x3bc   : > { %5931 = vmatpush1.bf16.msra.mxu1 %v5930_v58  ;;  %v6849_v57 = vpop.permute.xlu1 %6848  ;;  %4453 = vmatprep.mubr.f32.mxu1 %v6900_v0  ;;  %v5944_v32 = vpack.c.bf16 %v4794_v26, %v4793_v35  ;;  %v6836_v63 = vunpack.i.h.bf16 %v8420_v23  ;;  %v4782_v13 = vsel %vm4780_vm0, %v6826_v50, %v6831_v29  ;;  %v4781_v5 = vsel %vm4780_vm0, %v6825_v43, %v6830_v45 }
 0x3bd   : > { %5933 = vmatprep.subr.bf16.mxu1 %v5932_v38  ;;  %5633 = vmatmul.mubr.msk.f32.gmra.mrb[18].mxu0 %vm746_vm3, %v5629_v49  ;;  %v6851_v7 = vunpack.i.h.bf16 %v6849_v57  ;;  %v6850_v10 = vunpack.i.l.bf16 %v6849_v57  ;;  %v6835_v11 = vunpack.i.l.bf16 %v8420_v23  ;;  %v5946_v51 = vpack.c.bf16 %v4782_v13, %v4781_v5  ;;  %v5641_v38 = vld [vmem:[%s8664_s7 + $0xc8] sm:$0xff] }
 0x3be   : > { %5927 = vmatpush1.bf16.msra.mxu0 %v5926_v24  ;;  %4370 = vmatprep.mubr.f32.mxu0 %v6900_v0 }
 0x3bf   : > { %5637 = vmatmul.mubr.msk.f32.gmra.mrb[18].mxu1 %vm746_vm3, %v5629_v49  ;;  %5937 = vmatprep.subr.bf16.mxu0 %v5936_v20  ;;  %v6839_v48 = vpop.permute.xlu0 %6838  ;;  %v4792_v50 = vsel %vm4780_vm0, %v6836_v63, %v6851_v7  ;;  %v4791_v49 = vsel %vm4780_vm0, %v6835_v11, %v6850_v10 }
 0x3c0   : > { %5935 = vmatpush1.bf16.msra.mxu1 %v5934_v39  ;;  %v6854_v8 = vpop.permute.xlu1 %6853  ;;  %4459 = vmatprep.mubr.f32.mxu1 %v6900_v0  ;;  %v6841_v17 = vunpack.i.h.bf16 %v6839_v48  ;;  %v6840_v46 = vunpack.i.l.bf16 %v6839_v48 }
 0x3c1   : > { %5945 = vmatprep.subr.bf16.mxu1 %v5944_v32  ;;  %5634 = vmatmul.mubr.msk.f32.gmra.mrb[20].mxu0 %vm746_vm3, %v5630_v42  ;;  %v6856_v61 = vunpack.i.h.bf16 %v6854_v8  ;;  %v6855_v53 = vunpack.i.l.bf16 %v6854_v8 }
 0x3c2   : > { %4376 = vmatprep.mubr.f32.mxu0 %v6900_v0  ;;  %v4787_v19 = vsel %vm4780_vm0, %v6850_v10, %v6840_v46  ;;  %v4788_v44 = vsel %vm4780_vm0, %v6851_v7, %v6841_v17 }
 0x3c3   : > { %5638 = vmatmul.mubr.msk.f32.gmra.mrb[20].mxu1 %vm746_vm3, %v5630_v42  ;;  %v8445_v12 = vpop.permute.xlu0 %6843  ;;  %v4795_v15 = vsel %vm4780_vm0, %v6855_v53, %v6835_v11  ;;  %v4796_v1 = vsel %vm4780_vm0, %v6856_v61, %v6836_v63  ;;  %v5940_v6 = vpack.c.bf16 %v4788_v44, %v4787_v19  ;;  %v4784_v16 = vsel %vm4780_vm0, %v6841_v17, %v6856_v61  ;;  %v5652_v19 = vld [vmem:[%s8664_s7 + $0xe0] sm:$0xff] }
 0x3c4   : > { %v8451_v58 = vpop.permute.xlu1 %6858  ;;  %4465 = vmatprep.mubr.f32.mxu1 %v6900_v0  ;;  %v6845_v23 = vunpack.i.l.bf16 %v8445_v12  ;;  %v4783_v57 = vsel %vm4780_vm0, %v6840_v46, %v6855_v53  ;;  %v6846_v35 = vunpack.i.h.bf16 %v8445_v12  ;;  %v5948_v39 = vpack.c.bf16 %v4796_v1, %v4795_v15  ;;  %v5642_v46 = vld [vmem:[%s8664_s7 + $0xd0] sm:$0xff]  ;;  %v5643_v53 = vld [vmem:[%s8664_s7 + $0xd8] sm:$0xff] }
 0x3c5   : > { %5635 = vmatmul.mubr.msk.f32.gmra.mrb[22].mxu0 %vm746_vm3, %v5631_v14  ;;  %v6861_v29 = vunpack.i.h.bf16 %v8451_v58  ;;  %v6860_v45 = vunpack.i.l.bf16 %v8451_v58  ;;  %v5942_v42 = vpack.c.bf16 %v4792_v50, %v4791_v49  ;;  %v5950_v34 = vpack.c.bf16 %v4784_v16, %v4783_v57  ;;  %v5653_v49 = vld [vmem:[%s8664_s7 + $0xe8] sm:$0xff]  ;;  %v5666_v57 = vld [vmem:[%s8664_s7 + $0x110] sm:$0xff] }
 0x3c6   : > { %4618 = vmatprep.mubr.f32.mxu0 %v6900_v0 }
 0x3c7   : > { %5639 = vmatmul.mubr.msk.f32.gmra.mrb[22].mxu1 %vm746_vm3, %v5631_v14  ;;  %v8468_v43 = vpop.permute.xlu0 %6863  ;;  %v5050_v58 = vsel %vm5040_vm1, %v6846_v35, %v6861_v29  ;;  %v5049_v11 = vsel %vm5040_vm1, %v6845_v23, %v6860_v45 }
 0x3c8   : > { %v6866_v47 = vunpack.i.h.bf16 %v8468_v43  ;;  %v6865_v9 = vunpack.i.l.bf16 %v8468_v43  ;;  %v8478_v22 = vpop.permute.xlu1 %6868  ;;  %4707 = vmatprep.mubr.f32.mxu1 %v6900_v0  ;;  %v5954_v1 = vpack.c.bf16 %v5050_v58, %v5049_v11 }
 0x3c9   : > { %v6871_v52 = vunpack.i.h.bf16 %v8478_v22  ;;  %v6870_v21 = vunpack.i.l.bf16 %v8478_v22  ;;  %5644 = vmatmul.mubr.msk.f32.vlgmr.msra.gmra.mrb[16].mxu0 %vm746_vm3, %v5640_v41 }
 0x3ca   : > { %5939 = vmatpush1.bf16.msra.mxu0 %v5938_v18  ;;  %4624 = vmatprep.mubr.f32.mxu0 %v6900_v0  ;;  %v5045_v20 = vsel %vm5040_vm1, %v6860_v45, %v6865_v9  ;;  %v5046_v24 = vsel %vm5040_vm1, %v6861_v29, %v6866_v47 }
 0x3cb   : > { %5648 = vmatmul.mubr.msk.f32.vlgmr.msra.gmra.mrb[16].mxu1 %vm746_vm3, %v5640_v41  ;;  %5941 = vmatprep.subr.bf16.mxu0 %v5940_v6  ;;  %v6874_v26 = vpop.permute.xlu0 %6873  ;;  %v5952_v32 = vpack.c.bf16 %v5046_v24, %v5045_v20  ;;  %v5053_v8 = vsel %vm5040_vm1, %v6870_v21, %v6845_v23  ;;  %v5054_v56 = vsel %vm5040_vm1, %v6871_v52, %v6846_v35  ;;  %v5664_v20 = vld [vmem:[%s8664_s7 + $0x100] sm:$0xff]  ;;  %v5665_v24 = vld [vmem:[%s8664_s7 + $0x108] sm:$0xff]  ;;  %v5667_v35 = vld [vmem:[%s8664_s7 + $0x118] sm:$0xff] }
 0x3cc   : > { %5947 = vmatpush1.bf16.msra.mxu1 %v5946_v51  ;;  %v6884_v48 = vpop.permute.xlu1 %6883  ;;  %4713 = vmatprep.mubr.f32.mxu1 %v6900_v0  ;;  %v5960_v17 = vpack.c.bf16 %v5054_v56, %v5053_v8  ;;  %v6876_v18 = vunpack.i.h.bf16 %v6874_v26  ;;  %v6875_v41 = vunpack.i.l.bf16 %v6874_v26  ;;  %v5042_v50 = vsel %vm5040_vm1, %v6866_v47, %v6871_v52 }
 0x3cd   : > { %5949 = vmatprep.subr.bf16.mxu1 %v5948_v39  ;;  %5645 = vmatmul.mubr.msk.f32.gmra.mrb[18].mxu0 %vm746_vm3, %v5641_v38  ;;  %v6886_v12 = vunpack.i.h.bf16 %v6884_v48  ;;  %v6885_v13 = vunpack.i.l.bf16 %v6884_v48  ;;  %v5041_v15 = vsel %vm5040_vm1, %v6865_v9, %v6870_v21 }
 0x3ce   : > { %5943 = vmatpush1.bf16.msra.mxu0 %v5942_v42  ;;  %4630 = vmatprep.mubr.f32.mxu0 %v6900_v0  ;;  %v5962_v9 = vpack.c.bf16 %v5042_v50, %v5041_v15 }
 0x3cf   : > { %5649 = vmatmul.mubr.msk.f32.gmra.mrb[18].mxu1 %vm746_vm3, %v5641_v38  ;;  %5953 = vmatprep.subr.bf16.mxu0 %v5952_v32  ;;  %v6879_v14 = vpop.permute.xlu0 %6878  ;;  %v5052_v22 = vsel %vm5040_vm1, %v6876_v18, %v6886_v12  ;;  %v5051_v43 = vsel %vm5040_vm1, %v6875_v41, %v6885_v13  ;;  %v5655_v38 = vld [vmem:[%s8664_s7 + $0xf8] sm:$0xff] }
 0x3d0   : > { %5951 = vmatpush1.bf16.msra.mxu1 %v5950_v34  ;;  %4719 = vmatprep.mubr.f32.mxu1 %v6900_v0  ;;  %v6889_v63 = vpop.permute.xlu1 %6888  ;;  %v6881_v7 = vunpack.i.h.bf16 %v6879_v14  ;;  %v6880_v61 = vunpack.i.l.bf16 %v6879_v14  ;;  %v5958_v16 = vpack.c.bf16 %v5052_v22, %v5051_v43 }
 0x3d1   : > { %5961 = vmatprep.subr.bf16.mxu1 %v5960_v17  ;;  %5646 = vmatmul.mubr.msk.f32.gmra.mrb[20].mxu0 %vm746_vm3, %v5642_v46  ;;  %v6891_v5 = vunpack.i.h.bf16 %v6889_v63  ;;  %v6890_v10 = vunpack.i.l.bf16 %v6889_v63 }
 0x3d2   : > { %4636 = vmatprep.mubr.f32.mxu0 %v6900_v0  ;;  %v5047_v44 = vsel %vm5040_vm1, %v6885_v13, %v6880_v61  ;;  %v5048_v51 = vsel %vm5040_vm1, %v6886_v12, %v6881_v7 }
 0x3d3   : > { %5650 = vmatmul.mubr.msk.f32.gmra.mrb[20].mxu1 %vm746_vm3, %v5642_v46  ;;  %v5055_v29 = vsel %vm5040_vm1, %v6890_v10, %v6875_v41  ;;  %v5056_v45 = vsel %vm5040_vm1, %v6891_v5, %v6876_v18  ;;  %v5956_v47 = vpack.c.bf16 %v5048_v51, %v5047_v44  ;;  %v5044_v52 = vsel %vm5040_vm1, %v6881_v7, %v6891_v5 }
 0x3d4   : > { %4725 = vmatprep.mubr.f32.mxu1 %v6900_v0  ;;  %v5043_v21 = vsel %vm5040_vm1, %v6880_v61, %v6890_v10  ;;  %v5964_v6 = vpack.c.bf16 %v5056_v45, %v5055_v29 }
 0x3d5   : > { %5647 = vmatmul.mubr.msk.f32.gmra.mrb[22].mxu0 %vm746_vm3, %v5643_v53  ;;  %v5966_v23 = vpack.c.bf16 %v5044_v52, %v5043_v21 }
 0x3d6   : > { %4878 = vmatprep.mubr.f32.mxu0 %v6900_v0 }
 0x3d7   : > { %5651 = vmatmul.mubr.msk.f32.gmra.mrb[22].mxu1 %vm746_vm3, %v5643_v53 }
 0x3d8   : > { %4967 = vmatprep.mubr.f32.mxu1 %v6900_v0 }
 0x3d9   : > { %5656 = vmatmul.mubr.msk.f32.vlgmr.msra.gmra.mrb[16].mxu0 %vm746_vm3, %v5652_v19 }
 0x3da   : > { %5955 = vmatpush1.bf16.msra.mxu0 %v5954_v1  ;;  %4884 = vmatprep.mubr.f32.mxu0 %v6900_v0 }
 0x3db   : > { %5660 = vmatmul.mubr.msk.f32.vlgmr.msra.gmra.mrb[16].mxu1 %vm746_vm3, %v5652_v19  ;;  %5957 = vmatprep.subr.bf16.mxu0 %v5956_v47 }
 0x3dc   : > { %5963 = vmatpush1.bf16.msra.mxu1 %v5962_v9  ;;  %4973 = vmatprep.mubr.f32.mxu1 %v6900_v0 }
 0x3dd   : > { %5965 = vmatprep.subr.bf16.mxu1 %v5964_v6  ;;  %5657 = vmatmul.mubr.msk.f32.gmra.mrb[18].mxu0 %vm746_vm3, %v5653_v49 }
 0x3de   : > { %5959 = vmatpush1.bf16.msra.mxu0 %v5958_v16  ;;  %4890 = vmatprep.mubr.f32.mxu0 %v6900_v0 }
 0x3df   : > { %5661 = vmatmul.mubr.msk.f32.gmra.mrb[18].mxu1 %vm746_vm3, %v5653_v49 }
 0x3e0   : > { %5967 = vmatpush1.bf16.msra.mxu1 %v5966_v23  ;;  %4979 = vmatprep.mubr.f32.mxu1 %v6900_v0  ;;  %v5275_v26 = vpop.permute.xlu0 %5274 }
 0x3e1   : > { %5658 = vmatmul.mubr.msk.f32.gmra.mrb[20].mxu0 %vm746_vm3, %v5654_v40  ;;  %v5280_v39 = vpop.permute.xlu1 %5279 }
 0x3e2   : > { %4896 = vmatprep.mubr.f32.mxu0 %v6900_v0 }
 0x3e3   : > { %5662 = vmatmul.mubr.msk.f32.gmra.mrb[20].mxu1 %vm746_vm3, %v5654_v40 }
 0x3e4   : > { %4985 = vmatprep.mubr.f32.mxu1 %v6900_v0  ;;  %v5285_v32 = vpop.permute.xlu0 %5284 }
 0x3e5   : > { %5659 = vmatmul.mubr.msk.f32.gmra.mrb[22].mxu0 %vm746_vm3, %v5655_v38  ;;  %v8610_v42 = vpop.permute.xlu1 %5289 }
 0x3e6   : > { %5138 = vmatprep.mubr.f32.mxu0 %v6900_v0 }
 0x3e7   : > { %5663 = vmatmul.mubr.msk.f32.gmra.mrb[22].mxu1 %vm746_vm3, %v5655_v38 }
 0x3e8   : > { %5227 = vmatprep.mubr.f32.mxu1 %v6900_v0  ;;  %v5315_v34 = vpop.permute.xlu0 %5314 }
 0x3e9   : > { %5668 = vmatmul.mubr.msk.f32.vlgmr.msra.gmra.mrb[16].mxu0 %vm746_vm3, %v5664_v20  ;;  %v5320_v58 = vpop.permute.xlu1 %5319 }
 0x3ea   : > { %5144 = vmatprep.mubr.f32.mxu0 %v6900_v0 }
 0x3eb   : > { %5672 = vmatmul.mubr.msk.f32.vlgmr.msra.gmra.mrb[16].mxu1 %vm746_vm3, %v5664_v20 }
 0x3ec   : > { %5233 = vmatprep.mubr.f32.mxu1 %v6900_v0  ;;  %v5325_v6 = vpop.permute.xlu0 %5324 }
 0x3ed   : > { %5669 = vmatmul.mubr.msk.f32.gmra.mrb[18].mxu0 %vm746_vm3, %v5665_v24 }
 0x3ee   : > { %5150 = vmatprep.mubr.f32.mxu0 %v6900_v0 }
 0x3ef   : > { %5673 = vmatmul.mubr.msk.f32.gmra.mrb[18].mxu1 %vm746_vm3, %v5665_v24 }
 0x3f0   : > { %5239 = vmatprep.mubr.f32.mxu1 %v6900_v0 }
 0x3f1   : > { %5670 = vmatmul.mubr.msk.f32.gmra.mrb[20].mxu0 %vm746_vm3, %v5666_v57 }
 0x3f2   : > { %5156 = vmatprep.mubr.f32.mxu0 %v6900_v0 }
 0x3f3   : > { %5674 = vmatmul.mubr.msk.f32.gmra.mrb[20].mxu1 %vm746_vm3, %v5666_v57 }
 0x3f4   : > { %5245 = vmatprep.mubr.f32.mxu1 %v6900_v0 }
 0x3f5   : > { %5671 = vmatmul.mubr.msk.f32.gmra.mrb[22].mxu0 %vm746_vm3, %v5667_v35 }
 0x3f7   : > { %5675 = vmatmul.mubr.msk.f32.gmra.mrb[22].mxu1 %vm746_vm3, %v5667_v35 }
 0x4bc   : > { %v5140_v48 = vpop.f32.mrb[16].mxu0 }
 0x4bd   : > { %v5292_v8 = vmul.f32 %v5275_v26, %v5140_v48  ;;  %v5142_v56 = vpop.f32.mrb[17].mxu0 }
 0x4be   : > { %v5293_v17 = vmul.f32 %v5275_v26, %v5142_v56  ;;  %v5229_v46 = vpop.f32.mrb[16].mxu1 }
 0x4bf   : > { %v5332_v14 = vadd.f32 %v5315_v34, %v5292_v8  ;;  %v5294_v63 = vmul.f32 %v5275_v26, %v5229_v46  ;;  %v5231_v7 = vpop.f32.mrb[17].mxu1 }
 0x4c0   : > { %v5333_v0 = vadd.f32 %v5315_v34, %v5293_v17  ;;  %v5295_v61 = vmul.f32 %v5275_v26, %v5231_v7  ;;  %v5146_v53 = vpop.f32.mrb[18].mxu0 }
 0x4c1   : > { %v5348_v12 = vmax.f32 %v5332_v14, 0.0  ;;  %v5334_v13 = vadd.f32 %v5315_v34, %v5294_v63  ;;  %v5296_v5 = vmul.f32 %v5280_v39, %v5146_v53  ;;  %v5148_v10 = vpop.f32.mrb[19].mxu0  ;;  %v5330_v14 = vpop.permute.xlu1 %5329 }
 0x4c2   : > { %v5349_v11 = vmax.f32 %v5333_v0, 0.0  ;;  %v5335_v18 = vadd.f32 %v5315_v34, %v5295_v61  ;;  %v5297_v41 = vmul.f32 %v5280_v39, %v5148_v10  ;;  %v5235_v19 = vpop.f32.mrb[18].mxu1 }
 0x4c3   : > { %v5364_v44 = vadd.f32 %v5348_v12, %v7042_v54  ;;  %v5350_v51 = vmax.f32 %v5334_v13, 0.0  ;;  %v5336_v50 = vadd.f32 %v5320_v58, %v5296_v5  ;;  %v5298_v15 = vmul.f32 %v5280_v39, %v5235_v19  ;;  %v5237_v1 = vpop.f32.mrb[19].mxu1 }
 0x4c4   : > { %v5365_v29 = vadd.f32 %v5349_v11, %v7048_v59  ;;  %v5351_v45 = vmax.f32 %v5335_v18, 0.0  ;;  %v5337_v22 = vadd.f32 %v5320_v58, %v5297_v41  ;;  %v5299_v43 = vmul.f32 %v5280_v39, %v5237_v1  ;;  %v5152_v47 = vpop.f32.mrb[20].mxu0 }
 0x4c5   : > { %5380 = vst [vmem:[%s8616_s16] sm:$0xff] %v5364_v44  ;;  %v5366_v9 = vadd.f32 %v5350_v51, %v7061_v2  ;;  %v5352_v49 = vmax.f32 %v5336_v50, 0.0  ;;  %v5338_v52 = vadd.f32 %v5320_v58, %v5298_v15  ;;  %v5300_v21 = vmul.f32 %v5285_v32, %v5152_v47  ;;  %v5154_v54 = vpop.f32.mrb[21].mxu0 }
 0x4c6   : > { %5381 = vst [vmem:[%s8616_s16 + $0x8] sm:$0xff] %v5365_v29  ;;  %v5367_v16 = vadd.f32 %v5351_v45, %v7064_v3  ;;  %v5353_v23 = vmax.f32 %v5337_v22, 0.0  ;;  %v5339_v59 = vadd.f32 %v5320_v58, %v5299_v43  ;;  %v5301_v40 = vmul.f32 %v5285_v32, %v5154_v54  ;;  %v5241_v38 = vpop.f32.mrb[20].mxu1 }
 0x4c7   : > { %5382 = vst [vmem:[%s8616_s16 + $0x10] sm:$0xff] %v5366_v9  ;;  %v5368_v20 = vadd.f32 %v5352_v49, %v7045_v55  ;;  %v5354_v24 = vmax.f32 %v5338_v52, 0.0  ;;  %v5340_v57 = vadd.f32 %v5325_v6, %v5300_v21  ;;  %v5302_v2 = vmul.f32 %v5285_v32, %v5241_v38  ;;  %v5243_v35 = vpop.f32.mrb[21].mxu1 }
 0x4c8   : > { %5383 = vst [vmem:[%s8616_s16 + $0x18] sm:$0xff] %v5367_v16  ;;  %v5369_v26 = vadd.f32 %v5353_v23, %v7051_v60  ;;  %v5355_v39 = vmax.f32 %v5339_v59, 0.0  ;;  %v5341_v48 = vadd.f32 %v5325_v6, %v5301_v40  ;;  %v5303_v3 = vmul.f32 %v5285_v32, %v5243_v35  ;;  %v5158_v8 = vpop.f32.mrb[22].mxu0 }
 0x4c9   : > { %5384 = vst [vmem:[%s8616_s16 + $0x20] sm:$0xff] %v5368_v20  ;;  %v5370_v56 = vadd.f32 %v5354_v24, %v7054_v62  ;;  %v5356_v34 = vmax.f32 %v5340_v57, 0.0  ;;  %v5342_v17 = vadd.f32 %v5325_v6, %v5302_v2  ;;  %v5304_v55 = vmul.f32 %v8610_v42, %v5158_v8  ;;  %v5160_v46 = vpop.f32.mrb[23].mxu0 }
 0x4ca   : > { %5385 = vst [vmem:[%s8616_s16 + $0x28] sm:$0xff] %v5369_v26  ;;  %v5371_v63 = vadd.f32 %v5355_v39, %v7067_v4  ;;  %v5357_v60 = vmax.f32 %v5341_v48, 0.0  ;;  %v5343_v7 = vadd.f32 %v5325_v6, %v5303_v3  ;;  %v5305_v0 = vmul.f32 %v8610_v42, %v5160_v46  ;;  %v5247_v32 = vpop.f32.mrb[22].mxu1 }
 0x4cb   : > { %5386 = vst [vmem:[%s8616_s16 + $0x30] sm:$0xff] %v5370_v56  ;;  %v5372_v62 = vadd.f32 %v5356_v34, %v7086_v25  ;;  %v5358_v61 = vmax.f32 %v5342_v17, 0.0  ;;  %v5344_v53 = vadd.f32 %v5330_v14, %v5304_v55  ;;  %v5306_v12 = vmul.f32 %v8610_v42, %v5247_v32  ;;  %v5249_v13 = vpop.f32.mrb[23].mxu1 }
 0x4cc   : > { %5387 = vst [vmem:[%s8616_s16 + $0x38] sm:$0xff] %v5371_v63  ;;  %v5373_v4 = vadd.f32 %v5357_v60, %v7094_v28  ;;  %v5359_v5 = vmax.f32 %v5343_v7, 0.0  ;;  %v5345_v10 = vadd.f32 %v5330_v14, %v5305_v0  ;;  %v5307_v58 = vmul.f32 %v8610_v42, %v5249_v13 }
 0x4cd   : > { %5388 = vst [vmem:[%s8616_s16 + $0x40] sm:$0xff] %v5372_v62  ;;  %v5374_v11 = vadd.f32 %v5358_v61, %v7116_v36  ;;  %v5360_v25 = vmax.f32 %v5344_v53, 0.0  ;;  %v5346_v18 = vadd.f32 %v5330_v14, %v5306_v12 }
 0x4ce   : > { %5389 = vst [vmem:[%s8616_s16 + $0x48] sm:$0xff] %v5373_v4  ;;  %v5375_v41 = vadd.f32 %v5359_v5, %v7121_v37  ;;  %v5361_v19 = vmax.f32 %v5345_v10, 0.0  ;;  %v5347_v44 = vadd.f32 %v5330_v14, %v5307_v58 }
 0x4cf   : > { %5390 = vst [vmem:[%s8616_s16 + $0x50] sm:$0xff] %v5374_v11  ;;  %v5376_v28 = vadd.f32 %v5360_v25, %v7089_v27  ;;  %v5362_v51 = vmax.f32 %v5346_v18, 0.0 }
 0x4d0   : > { %5391 = vst [vmem:[%s8616_s16 + $0x58] sm:$0xff] %v5375_v41  ;;  %v5377_v42 = vadd.f32 %v5361_v19, %v7097_v30  ;;  %v5363_v50 = vmax.f32 %v5347_v44, 0.0 }
 0x4d1   : > { %5392 = vst [vmem:[%s8616_s16 + $0x60] sm:$0xff] %v5376_v28  ;;  %v5378_v36 = vadd.f32 %v5362_v51, %v7102_v31 }
 0x4d2   : > { %5393 = vst [vmem:[%s8616_s16 + $0x68] sm:$0xff] %v5377_v42  ;;  %v5379_v15 = vadd.f32 %v5363_v50, %v7109_v33 }
 0x4d3   : > { %5394 = vst [vmem:[%s8616_s16 + $0x70] sm:$0xff] %v5378_v36 }
 0x4d4   : > { %5395 = vst [vmem:[%s8616_s16 + $0x78] sm:$0xff] %v5379_v15 }
 0x4d5 PF: > { %s20_s13 = sadd.s32 1, %s6898_s13  }
 0x4d6   : > { %p17_p4 = scmp.ge.s32.totalorder %s20_s13, 4  }
 0x4d8   :  { %19 = sbr.rel (!%p17_p4) target bundleno = 1 (0x1), region = 106 }

</bundles_post_ra>
